<compile_context>
chip_gen: v7x
topology: tpu7x:2x2x1
jax: 0.10.0
libtpu: 0.0.40
codegen_flags: <defaults>
</compile_context>

<pallas_src>
import functools

import jax
import jax.numpy as jnp
from jax.experimental import pallas as pl
from jax.experimental.pallas import tpu as pltpu


# ----------------------------------------------------------------------------
# Pallas matmul: full-K, 2-D parallel grid, bf16 operands, f32 accumulation
# ----------------------------------------------------------------------------
def _matmul_kernel(a_ref, b_ref, o_ref):
    o_ref[...] = jnp.dot(a_ref[...], b_ref[...],
                         preferred_element_type=jnp.float32)


def _pick_tiles(M, N):
    """Tile sizes such that blocks either divide (8,128) or span the full dim."""
    if M % 8 != 0:
        # Tiny ragged M (e.g. the 2-row latent GEMM): one full-array block.
        return M, N
    tm = next((t for t in (256, 128, 64, 32, 16, 8) if M % t == 0), M)
    if N % 128 != 0:
        return tm, N                       # e.g. to_rgb N = Co*K*K = 27: full-N block
    tn = 256 if N % 256 == 0 else 128
    # Keep >= 2 parallel grid cells when cheap so both v7x TensorCores get work.
    if M // tm == 1 and N // tn == 1 and tn == 256:
        tn = 128
    return tm, tn


def pallas_matmul(a, b):
    """(M,K) @ (K,N) -> f32 (M,N).  K is small (<=512) so it is not tiled."""
    M, K = a.shape
    K2, N = b.shape
    assert K == K2
    tm, tn = _pick_tiles(M, N)

    a_bf = a.astype(jnp.bfloat16)
    b_bf = b.astype(jnp.bfloat16)

    return pl.pallas_call(
        _matmul_kernel,
        out_shape=jax.ShapeDtypeStruct((M, N), jnp.float32),
        grid_spec=pltpu.PrefetchScalarGridSpec(
            num_scalar_prefetch=0,
            grid=(M // tm, N // tn),
            in_specs=[pl.BlockSpec((tm, K), lambda i, j: (i, 0)),
                      pl.BlockSpec((K, tn), lambda i, j: (0, j))],
            out_specs=pl.BlockSpec((tm, tn), lambda i, j: (i, j))),
        compiler_params=pltpu.CompilerParams(
            dimension_semantics=("parallel", "parallel")),
    )(a_bf, b_bf)


# ----------------------------------------------------------------------------
# Fused BatchNorm(batch stats) + activation, single VMEM-resident pass
# ----------------------------------------------------------------------------
def _bn_act_kernel(x_ref, g_ref, b_ref, o_ref, *, bn, act, eps):
    x = x_ref[...]                                           # (M, C) f32
    if bn:
        mean = jnp.mean(x, axis=0, keepdims=True)
        var = jnp.mean(jnp.square(x - mean), axis=0, keepdims=True)   # biased
        y = (x - mean) * (g_ref[...] * jax.lax.rsqrt(var + eps)) + b_ref[...]
    else:
        y = x
    if act == "relu":
        y = jnp.maximum(y, 0.0)
    elif act == "tanh":
        y = jnp.tanh(y)
    o_ref[...] = y


def pallas_bn_act(x, gamma, beta, *, bn, act, eps=1e-5):
    """x: (M, C) f32 conv output (M = B*Ho*Wo, C = channels).

    Batch statistics, per-channel affine and the activation are computed in one
    pallas_call; at these sizes the whole activation fits in VMEM as one block.
    """
    M, C = x.shape
    g = gamma.reshape(1, C).astype(jnp.float32)
    b = beta.reshape(1, C).astype(jnp.float32)
    return pl.pallas_call(
        functools.partial(_bn_act_kernel, bn=bn, act=act, eps=eps),
        out_shape=jax.ShapeDtypeStruct((M, C), jnp.float32),
        grid=(1,),
        in_specs=[pl.BlockSpec((M, C), lambda i: (0, 0)),
                  pl.BlockSpec((1, C), lambda i: (0, 0)),
                  pl.BlockSpec((1, C), lambda i: (0, 0))],
        out_specs=pl.BlockSpec((M, C), lambda i: (0, 0)),
    )(x, g, b)


# ----------------------------------------------------------------------------
# ConvTranspose2d = direct GEMM (Pallas) + col2im overlap-add (XLA glue)
# ----------------------------------------------------------------------------
def conv_transpose2d(x_nhwc, w_iokk, stride, padding):
    """x: (B,H,W,Ci) NHWC.  w: (Ci,Co,K,K) PyTorch ConvTranspose2d layout."""
    B, H, W, Ci = x_nhwc.shape
    _, Co, K, _ = w_iokk.shape

    a = x_nhwc.reshape(B * H * W, Ci)
    b = w_iokk.reshape(Ci, Co * K * K)            # [ci, co*K*K + kh*K + kw]
    cols = pallas_matmul(a, b).reshape(B, H, W, Co, K, K)

    # TODO(synk): col2im overlap-add (K*K strided scatter-adds) stays in XLA glue;
    # a data-dependent scatter has no clean BlockSpec expression at these sizes.
    Hf = (H - 1) * stride + K
    Wf = (W - 1) * stride + K
    out = jnp.zeros((B, Hf, Wf, Co), jnp.float32)
    for kh in range(K):
        for kw in range(K):
            out = out.at[:, kh:kh + (H - 1) * stride + 1:stride,
                            kw:kw + (W - 1) * stride + 1:stride, :].add(
                cols[:, :, :, :, kh, kw])
    if padding > 0:
        out = out[:, padding:Hf - padding, padding:Wf - padding, :]
    return out


# ----------------------------------------------------------------------------
# Generator parameters + forward
# ----------------------------------------------------------------------------
def build_generator(key, nz, n_scales):
    """Returns (weights pytree for jit, static per-layer configs)."""
    def convt_w(k, cin, cout, ksize):
        return 0.05 * jax.random.normal(k, (cin, cout, ksize, ksize), jnp.float32)

    keys = jax.random.split(key, n_scales + 2)
    weights = {"prog": [], "to_rgb": None}
    configs = []

    # prog[0]: ConvTranspose2d(nz, nz, 4, stride=1, padding=0) + BN + ReLU
    weights["prog"].append({"w": convt_w(keys[0], nz, nz, 4),
                            "gamma": jnp.ones((nz,), jnp.float32),
                            "beta": jnp.zeros((nz,), jnp.float32)})
    configs.append({"stride": 1, "padding": 0})

    nf, min_f = nz, 16
    for s in range(n_scales):
        nfo = max(min_f, nf // 2)
        weights["prog"].append({"w": convt_w(keys[1 + s], nf, nfo, 4),
                                "gamma": jnp.ones((nfo,), jnp.float32),
                                "beta": jnp.zeros((nfo,), jnp.float32)})
        configs.append({"stride": 2, "padding": 1})
        nf = nfo

    # to_rgb: ConvTranspose2d(nf, 3, 3, stride=1, padding=1) + Tanh
    weights["to_rgb"] = convt_w(keys[-1], nf, 3, 3)
    return weights, configs


def generator_forward(z_nchw, weights, configs):
    x = jnp.transpose(z_nchw, (0, 2, 3, 1)).astype(jnp.float32)    # NCHW -> NHWC

    for layer, cfg in zip(weights["prog"], configs):
        y = conv_transpose2d(x, layer["w"], cfg["stride"], cfg["padding"])
        B, Ho, Wo, Co = y.shape
        mat = pallas_bn_act(y.reshape(B * Ho * Wo, Co),
                            layer["gamma"], layer["beta"],
                            bn=True, act="relu")
        x = mat.reshape(B, Ho, Wo, Co)

    y = conv_transpose2d(x, weights["to_rgb"], 1, 1)
    B, Ho, Wo, Co = y.shape
    mat = pallas_bn_act(y.reshape(B * Ho * Wo, Co),
                        jnp.ones((Co,), jnp.float32),
                        jnp.zeros((Co,), jnp.float32),
                        bn=False, act="tanh")
    x = mat.reshape(B, Ho, Wo, Co)
    return jnp.transpose(x, (0, 3, 1, 2))                          # NHWC -> NCHW


if __name__ == "__main__":
    nz = 32          # latent size
    n_scales = 2     # progressive upsampling scales -> output 3 x 16 x 16
    batch = 2

    key = jax.random.PRNGKey(0)
    k_params, k_input = jax.random.split(key)
    weights, configs = build_generator(k_params, nz, n_scales)
    z = jax.random.normal(k_input, (batch, nz, 1, 1), jnp.float32)   # NCHW latent

    # stride / padding are static Python ints captured by closure (not jit args).
    fwd = jax.jit(lambda zz, ww: generator_forward(zz, ww, configs))
    out = jax.block_until_ready(fwd(z, weights))

    expected = (batch, 3, 4 * (2 ** n_scales), 4 * (2 ** n_scales))
    assert out.shape == expected, (out.shape, expected)
    assert bool(jnp.all(jnp.isfinite(out)))
    assert bool(jnp.all(jnp.abs(out) <= 1.0 + 1e-6))   # tanh range
    print("KERNEL_OK")
</pallas_src>

<mosaic_0001>
module attributes {stable_mosaic.version = 11 : i64} {
  func.func @_matmul_kernel(%arg0: i32, %arg1: i32, %arg2: memref<2x32xbf16, #tpu.memory_space<vmem>>, %arg3: memref<32x512xbf16, #tpu.memory_space<vmem>>, %arg4: memref<2x512xf32, #tpu.memory_space<vmem>>) attributes {dimension_semantics = [#tpu.dimension_semantics<parallel>, #tpu.dimension_semantics<parallel>], iteration_bounds = array<i64: 1, 1>, scalar_prefetch = 0 : i64, scratch_operands = 0 : i64, tpu.core_type = #tpu.core_type<tc>, window_params = [{transform_indices = @transform_0, window_bounds = array<i64: 2, 32>}, {transform_indices = @transform_1, window_bounds = array<i64: 32, 512>}, {transform_indices = @transform_2, window_bounds = array<i64: 2, 512>}]} {
    %c0 = arith.constant 0 : index
    %c0_0 = arith.constant 0 : index
    %0 = vector.load %arg2[%c0, %c0_0] : memref<2x32xbf16, #tpu.memory_space<vmem>>, vector<2x32xbf16>
    %c0_1 = arith.constant 0 : index
    %c0_2 = arith.constant 0 : index
    %1 = vector.load %arg3[%c0_1, %c0_2] : memref<32x512xbf16, #tpu.memory_space<vmem>>, vector<32x512xbf16>
    %cst = arith.constant dense<0.000000e+00> : vector<2x512xf32>
    %2 = tpu.matmul %0, %1, %cst {dimension_numbers = #tpu.dot_dimension_numbers<[1], [0], [0], [1], [0, 0, 1, 1], [], []>} : vector<2x32xbf16>, vector<32x512xbf16>, vector<2x512xf32> -> vector<2x512xf32>
    %c0_3 = arith.constant 0 : index
    %c0_4 = arith.constant 0 : index
    %3 = vector.load %arg4[%c0_3, %c0_4] : memref<2x512xf32, #tpu.memory_space<vmem>>, vector<2x512xf32>
    tpu.vector_store %arg4[%c0_3, %c0_4], %2 {strides = array<i32>} : memref<2x512xf32, #tpu.memory_space<vmem>>, vector<2x512xf32>,
    return
  }
  func.func @transform_0(%arg0: i32, %arg1: i32) -> (i32, i32) {
    %c0_i32 = arith.constant 0 : i32
    %c0_i32_0 = arith.constant 0 : i32
    return %arg0, %c0_i32 : i32, i32
  }
  func.func @transform_1(%arg0: i32, %arg1: i32) -> (i32, i32) {
    %c0_i32 = arith.constant 0 : i32
    %c0_i32_0 = arith.constant 0 : i32
    return %c0_i32, %arg1 : i32, i32
  }
  func.func @transform_2(%arg0: i32, %arg1: i32) -> (i32, i32) {
    %c0_i32 = arith.constant 0 : i32
    return %arg0, %arg1 : i32, i32
  }
}

module attributes {stable_mosaic.version = 11 : i64} {
  func.func @_bn_act_kernel(%arg0: i32, %arg1: memref<32x32xf32, #tpu.memory_space<vmem>>, %arg2: memref<1x32xf32, #tpu.memory_space<vmem>>, %arg3: memref<1x32xf32, #tpu.memory_space<vmem>>, %arg4: memref<32x32xf32, #tpu.memory_space<vmem>>) attributes {dimension_semantics = [#tpu.dimension_semantics<arbitrary>], iteration_bounds = array<i64: 1>, scalar_prefetch = 0 : i64, scratch_operands = 0 : i64, tpu.core_type = #tpu.core_type<tc>, window_params = [{pipeline_mode = #tpu.pipeline_mode<synchronous>, transform_indices = @transform_0, window_bounds = array<i64: 32, 32>}, {pipeline_mode = #tpu.pipeline_mode<synchronous>, transform_indices = @transform_1, window_bounds = array<i64: 1, 32>}, {pipeline_mode = #tpu.pipeline_mode<synchronous>, transform_indices = @transform_2, window_bounds = array<i64: 1, 32>}, {pipeline_mode = #tpu.pipeline_mode<synchronous>, transform_indices = @transform_3, window_bounds = array<i64: 32, 32>}]} {
    %c0 = arith.constant 0 : index
    %c0_0 = arith.constant 0 : index
    %0 = vector.load %arg1[%c0, %c0_0] : memref<32x32xf32, #tpu.memory_space<vmem>>, vector<32x32xf32>
    %cst = arith.constant dense<0.000000e+00> : vector<32xf32>
    %1 = vector.multi_reduction <add>, %0, %cst [0] : vector<32x32xf32> to vector<32xf32>
    %2 = vector.shape_cast %1 : vector<32xf32> to vector<1x32xf32>
    %cst_1 = arith.constant 3.200000e+01 : f32
    %3 = vector.broadcast %cst_1 : f32 to vector<1x32xf32>
    %4 = arith.divf %2, %3 : vector<1x32xf32>
    %5 = vector.broadcast %4 : vector<1x32xf32> to vector<32x32xf32>
    %6 = arith.subf %0, %5 : vector<32x32xf32>
    %7 = arith.mulf %6, %6 : vector<32x32xf32>
    %cst_2 = arith.constant dense<0.000000e+00> : vector<32xf32>
    %8 = vector.multi_reduction <add>, %7, %cst_2 [0] : vector<32x32xf32> to vector<32xf32>
    %9 = vector.shape_cast %8 : vector<32xf32> to vector<1x32xf32>
    %cst_3 = arith.constant 3.200000e+01 : f32
    %10 = vector.broadcast %cst_3 : f32 to vector<1x32xf32>
    %11 = arith.divf %9, %10 : vector<1x32xf32>
    %12 = vector.broadcast %4 : vector<1x32xf32> to vector<32x32xf32>
    %13 = arith.subf %0, %12 : vector<32x32xf32>
    %c0_4 = arith.constant 0 : index
    %c0_5 = arith.constant 0 : index
    %14 = vector.load %arg2[%c0_4, %c0_5] : memref<1x32xf32, #tpu.memory_space<vmem>>, vector<1x32xf32>
    %cst_6 = arith.constant 9.99999974E-6 : f32
    %15 = vector.broadcast %cst_6 : f32 to vector<1x32xf32>
    %16 = arith.addf %11, %15 : vector<1x32xf32>
    %17 = math.rsqrt %16 : vector<1x32xf32>
    %18 = arith.mulf %14, %17 : vector<1x32xf32>
    %19 = vector.broadcast %18 : vector<1x32xf32> to vector<32x32xf32>
    %20 = arith.mulf %13, %19 : vector<32x32xf32>
    %c0_7 = arith.constant 0 : index
    %c0_8 = arith.constant 0 : index
    %21 = vector.load %arg3[%c0_7, %c0_8] : memref<1x32xf32, #tpu.memory_space<vmem>>, vector<1x32xf32>
    %22 = vector.broadcast %21 : vector<1x32xf32> to vector<32x32xf32>
    %23 = arith.addf %20, %22 : vector<32x32xf32>
    %cst_9 = arith.constant 0.000000e+00 : f32
    %24 = vector.broadcast %cst_9 : f32 to vector<32x32xf32>
    %25 = arith.maximumf %23, %24 : vector<32x32xf32>
    %c0_10 = arith.constant 0 : index
    %c0_11 = arith.constant 0 : index
    %26 = vector.load %arg4[%c0_10, %c0_11] : memref<32x32xf32, #tpu.memory_space<vmem>>, vector<32x32xf32>
    tpu.vector_store %arg4[%c0_10, %c0_11], %25 {strides = array<i32>} : memref<32x32xf32, #tpu.memory_space<vmem>>, vector<32x32xf32>,
    return
  }
  func.func @transform_0(%arg0: i32) -> (i32, i32) {
    %c0_i32 = arith.constant 0 : i32
    %c0_i32_0 = arith.constant 0 : i32
    %c0_i32_1 = arith.constant 0 : i32
    return %c0_i32, %c0_i32_0 : i32, i32
  }
  func.func @transform_1(%arg0: i32) -> (i32, i32) {
    %c0_i32 = arith.constant 0 : i32
    %c0_i32_0 = arith.constant 0 : i32
    %c0_i32_1 = arith.constant 0 : i32
    return %c0_i32, %c0_i32_0 : i32, i32
  }
  func.func @transform_2(%arg0: i32) -> (i32, i32) {
    %c0_i32 = arith.constant 0 : i32
    %c0_i32_0 = arith.constant 0 : i32
    %c0_i32_1 = arith.constant 0 : i32
    return %c0_i32, %c0_i32_0 : i32, i32
  }
  func.func @transform_3(%arg0: i32) -> (i32, i32) {
    %c0_i32 = arith.constant 0 : i32
    %c0_i32_0 = arith.constant 0 : i32
    %c0_i32_1 = arith.constant 0 : i32
    return %c0_i32, %c0_i32_0 : i32, i32
  }
}

module attributes {stable_mosaic.version = 11 : i64} {
  func.func @_matmul_kernel(%arg0: i32, %arg1: i32, %arg2: memref<32x32xbf16, #tpu.memory_space<vmem>>, %arg3: memref<32x128xbf16, #tpu.memory_space<vmem>>, %arg4: memref<32x128xf32, #tpu.memory_space<vmem>>) attributes {dimension_semantics = [#tpu.dimension_semantics<parallel>, #tpu.dimension_semantics<parallel>], iteration_bounds = array<i64: 1, 2>, scalar_prefetch = 0 : i64, scratch_operands = 0 : i64, tpu.core_type = #tpu.core_type<tc>, window_params = [{transform_indices = @transform_0, window_bounds = array<i64: 32, 32>}, {transform_indices = @transform_1, window_bounds = array<i64: 32, 128>}, {transform_indices = @transform_2, window_bounds = array<i64: 32, 128>}]} {
    %c0 = arith.constant 0 : index
    %c0_0 = arith.constant 0 : index
    %0 = vector.load %arg2[%c0, %c0_0] : memref<32x32xbf16, #tpu.memory_space<vmem>>, vector<32x32xbf16>
    %c0_1 = arith.constant 0 : index
    %c0_2 = arith.constant 0 : index
    %1 = vector.load %arg3[%c0_1, %c0_2] : memref<32x128xbf16, #tpu.memory_space<vmem>>, vector<32x128xbf16>
    %cst = arith.constant dense<0.000000e+00> : vector<32x128xf32>
    %2 = tpu.matmul %0, %1, %cst {dimension_numbers = #tpu.dot_dimension_numbers<[1], [0], [0], [1], [0, 0, 1, 1], [], []>} : vector<32x32xbf16>, vector<32x128xbf16>, vector<32x128xf32> -> vector<32x128xf32>
    %c0_3 = arith.constant 0 : index
    %c0_4 = arith.constant 0 : index
    %3 = vector.load %arg4[%c0_3, %c0_4] : memref<32x128xf32, #tpu.memory_space<vmem>>, vector<32x128xf32>
    tpu.vector_store %arg4[%c0_3, %c0_4], %2 {strides = array<i32>} : memref<32x128xf32, #tpu.memory_space<vmem>>, vector<32x128xf32>,
    return
  }
  func.func @transform_0(%arg0: i32, %arg1: i32) -> (i32, i32) {
    %c0_i32 = arith.constant 0 : i32
    %c0_i32_0 = arith.constant 0 : i32
    return %arg0, %c0_i32 : i32, i32
  }
  func.func @transform_1(%arg0: i32, %arg1: i32) -> (i32, i32) {
    %c0_i32 = arith.constant 0 : i32
    %c0_i32_0 = arith.constant 0 : i32
    return %c0_i32, %arg1 : i32, i32
  }
  func.func @transform_2(%arg0: i32, %arg1: i32) -> (i32, i32) {
    %c0_i32 = arith.constant 0 : i32
    return %arg0, %arg1 : i32, i32
  }
}

module attributes {stable_mosaic.version = 11 : i64} {
  func.func @_bn_act_kernel(%arg0: i32, %arg1: memref<128x16xf32, #tpu.memory_space<vmem>>, %arg2: memref<1x16xf32, #tpu.memory_space<vmem>>, %arg3: memref<1x16xf32, #tpu.memory_space<vmem>>, %arg4: memref<128x16xf32, #tpu.memory_space<vmem>>) attributes {dimension_semantics = [#tpu.dimension_semantics<arbitrary>], iteration_bounds = array<i64: 1>, scalar_prefetch = 0 : i64, scratch_operands = 0 : i64, tpu.core_type = #tpu.core_type<tc>, window_params = [{pipeline_mode = #tpu.pipeline_mode<synchronous>, transform_indices = @transform_0, window_bounds = array<i64: 128, 16>}, {pipeline_mode = #tpu.pipeline_mode<synchronous>, transform_indices = @transform_1, window_bounds = array<i64: 1, 16>}, {pipeline_mode = #tpu.pipeline_mode<synchronous>, transform_indices = @transform_2, window_bounds = array<i64: 1, 16>}, {pipeline_mode = #tpu.pipeline_mode<synchronous>, transform_indices = @transform_3, window_bounds = array<i64: 128, 16>}]} {
    %c0 = arith.constant 0 : index
    %c0_0 = arith.constant 0 : index
    %0 = vector.load %arg1[%c0, %c0_0] : memref<128x16xf32, #tpu.memory_space<vmem>>, vector<128x16xf32>
    %cst = arith.constant dense<0.000000e+00> : vector<16xf32>
    %1 = vector.multi_reduction <add>, %0, %cst [0] : vector<128x16xf32> to vector<16xf32>
    %2 = vector.shape_cast %1 : vector<16xf32> to vector<1x16xf32>
    %cst_1 = arith.constant 1.280000e+02 : f32
    %3 = vector.broadcast %cst_1 : f32 to vector<1x16xf32>
    %4 = arith.divf %2, %3 : vector<1x16xf32>
    %5 = vector.broadcast %4 : vector<1x16xf32> to vector<128x16xf32>
    %6 = arith.subf %0, %5 : vector<128x16xf32>
    %7 = arith.mulf %6, %6 : vector<128x16xf32>
    %cst_2 = arith.constant dense<0.000000e+00> : vector<16xf32>
    %8 = vector.multi_reduction <add>, %7, %cst_2 [0] : vector<128x16xf32> to vector<16xf32>
    %9 = vector.shape_cast %8 : vector<16xf32> to vector<1x16xf32>
    %cst_3 = arith.constant 1.280000e+02 : f32
    %10 = vector.broadcast %cst_3 : f32 to vector<1x16xf32>
    %11 = arith.divf %9, %10 : vector<1x16xf32>
    %12 = vector.broadcast %4 : vector<1x16xf32> to vector<128x16xf32>
    %13 = arith.subf %0, %12 : vector<128x16xf32>
    %c0_4 = arith.constant 0 : index
    %c0_5 = arith.constant 0 : index
    %14 = vector.load %arg2[%c0_4, %c0_5] : memref<1x16xf32, #tpu.memory_space<vmem>>, vector<1x16xf32>
    %cst_6 = arith.constant 9.99999974E-6 : f32
    %15 = vector.broadcast %cst_6 : f32 to vector<1x16xf32>
    %16 = arith.addf %11, %15 : vector<1x16xf32>
    %17 = math.rsqrt %16 : vector<1x16xf32>
    %18 = arith.mulf %14, %17 : vector<1x16xf32>
    %19 = vector.broadcast %18 : vector<1x16xf32> to vector<128x16xf32>
    %20 = arith.mulf %13, %19 : vector<128x16xf32>
    %c0_7 = arith.constant 0 : index
    %c0_8 = arith.constant 0 : index
    %21 = vector.load %arg3[%c0_7, %c0_8] : memref<1x16xf32, #tpu.memory_space<vmem>>, vector<1x16xf32>
    %22 = vector.broadcast %21 : vector<1x16xf32> to vector<128x16xf32>
    %23 = arith.addf %20, %22 : vector<128x16xf32>
    %cst_9 = arith.constant 0.000000e+00 : f32
    %24 = vector.broadcast %cst_9 : f32 to vector<128x16xf32>
    %25 = arith.maximumf %23, %24 : vector<128x16xf32>
    %c0_10 = arith.constant 0 : index
    %c0_11 = arith.constant 0 : index
    %26 = vector.load %arg4[%c0_10, %c0_11] : memref<128x16xf32, #tpu.memory_space<vmem>>, vector<128x16xf32>
    tpu.vector_store %arg4[%c0_10, %c0_11], %25 {strides = array<i32>} : memref<128x16xf32, #tpu.memory_space<vmem>>, vector<128x16xf32>,
    return
  }
  func.func @transform_0(%arg0: i32) -> (i32, i32) {
    %c0_i32 = arith.constant 0 : i32
    %c0_i32_0 = arith.constant 0 : i32
    %c0_i32_1 = arith.constant 0 : i32
    return %c0_i32, %c0_i32_0 : i32, i32
  }
  func.func @transform_1(%arg0: i32) -> (i32, i32) {
    %c0_i32 = arith.constant 0 : i32
    %c0_i32_0 = arith.constant 0 : i32
    %c0_i32_1 = arith.constant 0 : i32
    return %c0_i32, %c0_i32_0 : i32, i32
  }
  func.func @transform_2(%arg0: i32) -> (i32, i32) {
    %c0_i32 = arith.constant 0 : i32
    %c0_i32_0 = arith.constant 0 : i32
    %c0_i32_1 = arith.constant 0 : i32
    return %c0_i32, %c0_i32_0 : i32, i32
  }
  func.func @transform_3(%arg0: i32) -> (i32, i32) {
    %c0_i32 = arith.constant 0 : i32
    %c0_i32_0 = arith.constant 0 : i32
    %c0_i32_1 = arith.constant 0 : i32
    return %c0_i32, %c0_i32_0 : i32, i32
  }
}

module attributes {stable_mosaic.version = 11 : i64} {
  func.func @_matmul_kernel(%arg0: i32, %arg1: i32, %arg2: memref<128x16xbf16, #tpu.memory_space<vmem>>, %arg3: memref<16x128xbf16, #tpu.memory_space<vmem>>, %arg4: memref<128x128xf32, #tpu.memory_space<vmem>>) attributes {dimension_semantics = [#tpu.dimension_semantics<parallel>, #tpu.dimension_semantics<parallel>], iteration_bounds = array<i64: 1, 2>, scalar_prefetch = 0 : i64, scratch_operands = 0 : i64, tpu.core_type = #tpu.core_type<tc>, window_params = [{transform_indices = @transform_0, window_bounds = array<i64: 128, 16>}, {transform_indices = @transform_1, window_bounds = array<i64: 16, 128>}, {transform_indices = @transform_2, window_bounds = array<i64: 128, 128>}]} {
    %c0 = arith.constant 0 : index
    %c0_0 = arith.constant 0 : index
    %0 = vector.load %arg2[%c0, %c0_0] : memref<128x16xbf16, #tpu.memory_space<vmem>>, vector<128x16xbf16>
    %c0_1 = arith.constant 0 : index
    %c0_2 = arith.constant 0 : index
    %1 = vector.load %arg3[%c0_1, %c0_2] : memref<16x128xbf16, #tpu.memory_space<vmem>>, vector<16x128xbf16>
    %cst = arith.constant dense<0.000000e+00> : vector<128x128xf32>
    %2 = tpu.matmul %0, %1, %cst {dimension_numbers = #tpu.dot_dimension_numbers<[1], [0], [0], [1], [0, 0, 1, 1], [], []>} : vector<128x16xbf16>, vector<16x128xbf16>, vector<128x128xf32> -> vector<128x128xf32>
    %c0_3 = arith.constant 0 : index
    %c0_4 = arith.constant 0 : index
    %3 = vector.load %arg4[%c0_3, %c0_4] : memref<128x128xf32, #tpu.memory_space<vmem>>, vector<128x128xf32>
    tpu.vector_store %arg4[%c0_3, %c0_4], %2 {strides = array<i32>} : memref<128x128xf32, #tpu.memory_space<vmem>>, vector<128x128xf32>,
    return
  }
  func.func @transform_0(%arg0: i32, %arg1: i32) -> (i32, i32) {
    %c0_i32 = arith.constant 0 : i32
    %c0_i32_0 = arith.constant 0 : i32
    return %arg0, %c0_i32 : i32, i32
  }
  func.func @transform_1(%arg0: i32, %arg1: i32) -> (i32, i32) {
    %c0_i32 = arith.constant 0 : i32
    %c0_i32_0 = arith.constant 0 : i32
    return %c0_i32, %arg1 : i32, i32
  }
  func.func @transform_2(%arg0: i32, %arg1: i32) -> (i32, i32) {
    %c0_i32 = arith.constant 0 : i32
    return %arg0, %arg1 : i32, i32
  }
}

module attributes {stable_mosaic.version = 11 : i64} {
  func.func @_bn_act_kernel(%arg0: i32, %arg1: memref<512x16xf32, #tpu.memory_space<vmem>>, %arg2: memref<1x16xf32, #tpu.memory_space<vmem>>, %arg3: memref<1x16xf32, #tpu.memory_space<vmem>>, %arg4: memref<512x16xf32, #tpu.memory_space<vmem>>) attributes {dimension_semantics = [#tpu.dimension_semantics<arbitrary>], iteration_bounds = array<i64: 1>, scalar_prefetch = 0 : i64, scratch_operands = 0 : i64, tpu.core_type = #tpu.core_type<tc>, window_params = [{pipeline_mode = #tpu.pipeline_mode<synchronous>, transform_indices = @transform_0, window_bounds = array<i64: 512, 16>}, {pipeline_mode = #tpu.pipeline_mode<synchronous>, transform_indices = @transform_1, window_bounds = array<i64: 1, 16>}, {pipeline_mode = #tpu.pipeline_mode<synchronous>, transform_indices = @transform_2, window_bounds = array<i64: 1, 16>}, {pipeline_mode = #tpu.pipeline_mode<synchronous>, transform_indices = @transform_3, window_bounds = array<i64: 512, 16>}]} {
    %c0 = arith.constant 0 : index
    %c0_0 = arith.constant 0 : index
    %0 = vector.load %arg1[%c0, %c0_0] : memref<512x16xf32, #tpu.memory_space<vmem>>, vector<512x16xf32>
    %cst = arith.constant dense<0.000000e+00> : vector<16xf32>
    %1 = vector.multi_reduction <add>, %0, %cst [0] : vector<512x16xf32> to vector<16xf32>
    %2 = vector.shape_cast %1 : vector<16xf32> to vector<1x16xf32>
    %cst_1 = arith.constant 5.120000e+02 : f32
    %3 = vector.broadcast %cst_1 : f32 to vector<1x16xf32>
    %4 = arith.divf %2, %3 : vector<1x16xf32>
    %5 = vector.broadcast %4 : vector<1x16xf32> to vector<512x16xf32>
    %6 = arith.subf %0, %5 : vector<512x16xf32>
    %7 = arith.mulf %6, %6 : vector<512x16xf32>
    %cst_2 = arith.constant dense<0.000000e+00> : vector<16xf32>
    %8 = vector.multi_reduction <add>, %7, %cst_2 [0] : vector<512x16xf32> to vector<16xf32>
    %9 = vector.shape_cast %8 : vector<16xf32> to vector<1x16xf32>
    %cst_3 = arith.constant 5.120000e+02 : f32
    %10 = vector.broadcast %cst_3 : f32 to vector<1x16xf32>
    %11 = arith.divf %9, %10 : vector<1x16xf32>
    %12 = vector.broadcast %4 : vector<1x16xf32> to vector<512x16xf32>
    %13 = arith.subf %0, %12 : vector<512x16xf32>
    %c0_4 = arith.constant 0 : index
    %c0_5 = arith.constant 0 : index
    %14 = vector.load %arg2[%c0_4, %c0_5] : memref<1x16xf32, #tpu.memory_space<vmem>>, vector<1x16xf32>
    %cst_6 = arith.constant 9.99999974E-6 : f32
    %15 = vector.broadcast %cst_6 : f32 to vector<1x16xf32>
    %16 = arith.addf %11, %15 : vector<1x16xf32>
    %17 = math.rsqrt %16 : vector<1x16xf32>
    %18 = arith.mulf %14, %17 : vector<1x16xf32>
    %19 = vector.broadcast %18 : vector<1x16xf32> to vector<512x16xf32>
    %20 = arith.mulf %13, %19 : vector<512x16xf32>
    %c0_7 = arith.constant 0 : index
    %c0_8 = arith.constant 0 : index
    %21 = vector.load %arg3[%c0_7, %c0_8] : memref<1x16xf32, #tpu.memory_space<vmem>>, vector<1x16xf32>
    %22 = vector.broadcast %21 : vector<1x16xf32> to vector<512x16xf32>
    %23 = arith.addf %20, %22 : vector<512x16xf32>
    %cst_9 = arith.constant 0.000000e+00 : f32
    %24 = vector.broadcast %cst_9 : f32 to vector<512x16xf32>
    %25 = arith.maximumf %23, %24 : vector<512x16xf32>
    %c0_10 = arith.constant 0 : index
    %c0_11 = arith.constant 0 : index
    %26 = vector.load %arg4[%c0_10, %c0_11] : memref<512x16xf32, #tpu.memory_space<vmem>>, vector<512x16xf32>
    tpu.vector_store %arg4[%c0_10, %c0_11], %25 {strides = array<i32>} : memref<512x16xf32, #tpu.memory_space<vmem>>, vector<512x16xf32>,
    return
  }
  func.func @transform_0(%arg0: i32) -> (i32, i32) {
    %c0_i32 = arith.constant 0 : i32
    %c0_i32_0 = arith.constant 0 : i32
    %c0_i32_1 = arith.constant 0 : i32
    return %c0_i32, %c0_i32_0 : i32, i32
  }
  func.func @transform_1(%arg0: i32) -> (i32, i32) {
    %c0_i32 = arith.constant 0 : i32
    %c0_i32_0 = arith.constant 0 : i32
    %c0_i32_1 = arith.constant 0 : i32
    return %c0_i32, %c0_i32_0 : i32, i32
  }
  func.func @transform_2(%arg0: i32) -> (i32, i32) {
    %c0_i32 = arith.constant 0 : i32
    %c0_i32_0 = arith.constant 0 : i32
    %c0_i32_1 = arith.constant 0 : i32
    return %c0_i32, %c0_i32_0 : i32, i32
  }
  func.func @transform_3(%arg0: i32) -> (i32, i32) {
    %c0_i32 = arith.constant 0 : i32
    %c0_i32_0 = arith.constant 0 : i32
    %c0_i32_1 = arith.constant 0 : i32
    return %c0_i32, %c0_i32_0 : i32, i32
  }
}

module attributes {stable_mosaic.version = 11 : i64} {
  func.func @_matmul_kernel(%arg0: i32, %arg1: i32, %arg2: memref<256x16xbf16, #tpu.memory_space<vmem>>, %arg3: memref<16x27xbf16, #tpu.memory_space<vmem>>, %arg4: memref<256x27xf32, #tpu.memory_space<vmem>>) attributes {dimension_semantics = [#tpu.dimension_semantics<parallel>, #tpu.dimension_semantics<parallel>], iteration_bounds = array<i64: 2, 1>, scalar_prefetch = 0 : i64, scratch_operands = 0 : i64, tpu.core_type = #tpu.core_type<tc>, window_params = [{transform_indices = @transform_0, window_bounds = array<i64: 256, 16>}, {transform_indices = @transform_1, window_bounds = array<i64: 16, 27>}, {transform_indices = @transform_2, window_bounds = array<i64: 256, 27>}]} {
    %c0 = arith.constant 0 : index
    %c0_0 = arith.constant 0 : index
    %0 = vector.load %arg2[%c0, %c0_0] : memref<256x16xbf16, #tpu.memory_space<vmem>>, vector<256x16xbf16>
    %c0_1 = arith.constant 0 : index
    %c0_2 = arith.constant 0 : index
    %1 = vector.load %arg3[%c0_1, %c0_2] : memref<16x27xbf16, #tpu.memory_space<vmem>>, vector<16x27xbf16>
    %cst = arith.constant dense<0.000000e+00> : vector<256x27xf32>
    %2 = tpu.matmul %0, %1, %cst {dimension_numbers = #tpu.dot_dimension_numbers<[1], [0], [0], [1], [0, 0, 1, 1], [], []>} : vector<256x16xbf16>, vector<16x27xbf16>, vector<256x27xf32> -> vector<256x27xf32>
    %c0_3 = arith.constant 0 : index
    %c0_4 = arith.constant 0 : index
    %3 = vector.load %arg4[%c0_3, %c0_4] : memref<256x27xf32, #tpu.memory_space<vmem>>, vector<256x27xf32>
    tpu.vector_store %arg4[%c0_3, %c0_4], %2 {strides = array<i32>} : memref<256x27xf32, #tpu.memory_space<vmem>>, vector<256x27xf32>,
    return
  }
  func.func @transform_0(%arg0: i32, %arg1: i32) -> (i32, i32) {
    %c0_i32 = arith.constant 0 : i32
    %c0_i32_0 = arith.constant 0 : i32
    return %arg0, %c0_i32 : i32, i32
  }
  func.func @transform_1(%arg0: i32, %arg1: i32) -> (i32, i32) {
    %c0_i32 = arith.constant 0 : i32
    %c0_i32_0 = arith.constant 0 : i32
    return %c0_i32, %arg1 : i32, i32
  }
  func.func @transform_2(%arg0: i32, %arg1: i32) -> (i32, i32) {
    %c0_i32 = arith.constant 0 : i32
    return %arg0, %arg1 : i32, i32
  }
}

module attributes {stable_mosaic.version = 11 : i64} {
  func.func @_bn_act_kernel(%arg0: i32, %arg1: memref<512x3xf32, #tpu.memory_space<vmem>>, %arg2: memref<1x3xf32, #tpu.memory_space<vmem>>, %arg3: memref<1x3xf32, #tpu.memory_space<vmem>>, %arg4: memref<512x3xf32, #tpu.memory_space<vmem>>) attributes {dimension_semantics = [#tpu.dimension_semantics<arbitrary>], iteration_bounds = array<i64: 1>, scalar_prefetch = 0 : i64, scratch_operands = 0 : i64, tpu.core_type = #tpu.core_type<tc>, window_params = [{pipeline_mode = #tpu.pipeline_mode<synchronous>, transform_indices = @transform_0, window_bounds = array<i64: 512, 3>}, {pipeline_mode = #tpu.pipeline_mode<synchronous>, transform_indices = @transform_1, window_bounds = array<i64: 1, 3>}, {pipeline_mode = #tpu.pipeline_mode<synchronous>, transform_indices = @transform_2, window_bounds = array<i64: 1, 3>}, {pipeline_mode = #tpu.pipeline_mode<synchronous>, transform_indices = @transform_3, window_bounds = array<i64: 512, 3>}]} {
    %c0 = arith.constant 0 : index
    %c0_0 = arith.constant 0 : index
    %0 = vector.load %arg1[%c0, %c0_0] : memref<512x3xf32, #tpu.memory_space<vmem>>, vector<512x3xf32>
    %1 = math.tanh %0 : vector<512x3xf32>
    %c0_1 = arith.constant 0 : index
    %c0_2 = arith.constant 0 : index
    %2 = vector.load %arg4[%c0_1, %c0_2] : memref<512x3xf32, #tpu.memory_space<vmem>>, vector<512x3xf32>
    tpu.vector_store %arg4[%c0_1, %c0_2], %1 {strides = array<i32>} : memref<512x3xf32, #tpu.memory_space<vmem>>, vector<512x3xf32>,
    return
  }
  func.func @transform_0(%arg0: i32) -> (i32, i32) {
    %c0_i32 = arith.constant 0 : i32
    %c0_i32_0 = arith.constant 0 : i32
    %c0_i32_1 = arith.constant 0 : i32
    return %c0_i32, %c0_i32_0 : i32, i32
  }
  func.func @transform_1(%arg0: i32) -> (i32, i32) {
    %c0_i32 = arith.constant 0 : i32
    %c0_i32_0 = arith.constant 0 : i32
    %c0_i32_1 = arith.constant 0 : i32
    return %c0_i32, %c0_i32_0 : i32, i32
  }
  func.func @transform_2(%arg0: i32) -> (i32, i32) {
    %c0_i32 = arith.constant 0 : i32
    %c0_i32_0 = arith.constant 0 : i32
    %c0_i32_1 = arith.constant 0 : i32
    return %c0_i32, %c0_i32_0 : i32, i32
  }
  func.func @transform_3(%arg0: i32) -> (i32, i32) {
    %c0_i32 = arith.constant 0 : i32
    %c0_i32_0 = arith.constant 0 : i32
    %c0_i32_1 = arith.constant 0 : i32
    return %c0_i32, %c0_i32_0 : i32, i32
  }
}

</mosaic_0001>

<bundles_post_ra>
// kernel: _lambda_.8
= control target key start
LH: loop header
LB: loop body
LE: loop exit
PB: predicated region body
PF: predicated region fallthrough
CT: control target
= control target key end

     0   :  { %v198_v1 = vmov 0   ;;  %vm61_vm0 = vcmask 261120   ;;  %v199_v10 = vmov 1983009808   ;;  %v156_v12 = vlaneseq  ;;  %s245_s1 = inlined_call_operand.vmem [shape: bf16[32,512], index: 1, kind: input, shape index: {}]   ;;  %s246_s0 = inlined_call_operand.vmem [shape: bf16[2,32], index: 0, kind: input, shape index: {}]   ;;  %s247_s2 = inlined_call_operand.vmem [shape: f32[2,512], index: 2, kind: output, shape index: {}]  }
   0x1   :  { %v186_v0 = vld [vmem:[%s245_s1 + $0x4] ss:$16 sps:$4 sm:$0xff]   ;;  %97 = vmatprep.mubr.bf16.mxu0 %v198_v1  ;;  %138 = vmatprep.mubr.bf16.mxu1 %v198_v1  ;;  %v188_v2 = vld [vmem:[%s245_s1 + $0xc] ss:$16 sps:$4 sm:$0xff]   ;;  %v190_v3 = vld [vmem:[%s245_s1] ss:$16 sps:$4 sm:$0xff]   ;;  %v154_v11 = vunpack.c.l.s4 %v199_v10 }
   0x2   :  { %65 = vmatprep.subr.bf16.mxu0 %v186_v0  ;;  %v191_v4 = vld [vmem:[%s245_s1 + $0x8] ss:$16 sps:$4 sm:$0xff]   ;;  %106 = vmatprep.subr.bf16.mxu1 %v188_v2  ;;  %v192_v5 = vld [vmem:[%s245_s1 + $0x24] ss:$16 sps:$4 sm:$0xff]   ;;  %v194_v6 = vld [vmem:[%s245_s1 + $0x2c] ss:$16 sps:$4 sm:$0xff]  }
   0x3   :  { %66 = vmatpush1.bf16.msra.mxu0 %v190_v3  ;;  %107 = vmatpush1.bf16.msra.mxu1 %v191_v4  ;;  %v196_v7 = vld [vmem:[%s245_s1 + $0x20] ss:$16 sps:$4 sm:$0xff]   ;;  %v197_v8 = vld [vmem:[%s245_s1 + $0x28] ss:$16 sps:$4 sm:$0xff]   ;;  %v155_v13 = vunpack.c.0.s8 %v154_v11  ;;  %v157_v14 = vshrl.u32 %v156_v12, 7 }
   0x4   :  { %67 = vmatprep.subr.bf16.mxu0 %v192_v5  ;;  %108 = vmatprep.subr.bf16.mxu1 %v194_v6  ;;  %v12_v9 = vld [vmem:[%s246_s0] sm:$0x1] }
   0x5   :  { %v158_v17 = vsub.s32 %v155_v13, %v157_v14 }
   0x7   :  { %68 = vmatpush1.bf16.msra.mxu0 %v196_v7  ;;  %109 = vmatpush1.bf16.msra.mxu1 %v197_v8 }
   0xa   :  { %182 = vmatmul.mubr.msk.bf16.vlgmr.msra.gmra.mrb[0].mxu0 %vm61_vm0, %v12_v9  ;;  %183 = vmatmul.mubr.msk.bf16.vlgmr.msra.gmra.mrb[0].mxu1 %vm61_vm0, %v12_v9 }
  0xdd   :  { %v99_v15 = vpop.f32.mrb[0].mxu0  ;;  %v140_v16 = vpop.f32.mrb[0].mxu1 }
  0xde   :  { %v101_v18 = vpop.f32.mrb[1].mxu0  ;;  %v142_v19 = vpop.f32.mrb[1].mxu1 }
  0xdf   :  { %v151_v20 = vcombine.low %v99_v15, %v101_v18  ;;  %v152_v21 = vcombine.low %v140_v16, %v142_v19  ;;  %v103_v22 = vpop.f32.mrb[2].mxu0  ;;  %v144_v23 = vpop.f32.mrb[2].mxu1 }
  0xe0   :  { %v104_v24 = vpop.f32.mrb[3].mxu0  ;;  %v145_v25 = vpop.f32.mrb[3].mxu1 }
  0xe1   :  { %v159_v26 = vrot.slane %v151_v20, %v158_v17  ;;  %v166_v27 = vrot.slane %v152_v21, %v158_v17 }
  0xe3   :  { %v167_v28 = vcombine.low %v159_v26, %v166_v27 }
  0xe5   :  { %169 = vst [vmem:[%s247_s2] sm:$0xff] %v167_v28 }

// kernel: _lambda_.9
= control target key start
LH: loop header
LB: loop body
LE: loop exit
PB: predicated region body
PF: predicated region fallthrough
CT: control target
= control target key end

     0   :  { %8 = vsyncpa [#allocation3], 0  ;;  %s254_s0 = inlined_call_operand.vmem [shape: f32[32,32], index: 0, kind: input, shape index: {}]   ;;  %s255_s1 = inlined_call_operand.hbm [shape: f32[1,32], index: 1, kind: input, shape index: {}]   ;;  %s256_s2 = inlined_call_operand.hbm [shape: f32[1,32], index: 2, kind: input, shape index: {}]   ;;  %s257_s3 = inlined_call_operand.vmem [shape: f32[32,32], index: 3, kind: output, shape index: {}]  }
   0x1   :  { %9 = vsyncpa [#allocation5], 0  ;;  %s172_s12 = smov [#allocation2]   ;;  %s173_s14 = smov [#allocation4]  }
   0x2   :  { %s18_s13 = sshll.u32 %s172_s12, 4  ;;  %s28_s15 = sshll.u32 %s173_s14, 4  ;;  %s19_s13 = int_to_ptr.vmem [resolvable:$true] %s18_s13  ;;  %s29_s15 = int_to_ptr.vmem [resolvable:$true] %s28_s15 }
   0x3   :  { %s124_s18 = scalar_lea.hbm %s255_s1, 16 }
   0x4   :  { %p125_p0 = scmp.ne.s32.totalorder %s255_s1, %s124_s18  ;;  %p128_p1 = scmp.lt.u32.totalorder %s124_s18, %s255_s1 }
   0x6   :  { %p130_p2 = pnand %p128_p1, %p125_p0 }
   0x8   :  { %133 = shalt.err (!%p130_p2)
}
   0x9   :  { %s134_s23 = scalar_lea.vmem %s19_s13, 16  ;;  %s138_s24 = scalar_lea.vmem %s19_s13, 32 }
   0xa   :  { %p135_p3 = scmp.ne.s32.totalorder %s19_s13, %s134_s23  ;;  %p139_p4 = scmp.lt.s32.totalorder %s19_s13, %s19_s13 }
   0xb   :  { %p140_p5 = scmp.lt.s32.totalorder %s138_s24, %s134_s23 }
   0xd   :  { %p141_p6 = por %p140_p5, %p139_p4 }
   0xf   :  { %p142_p7 = pnand %p141_p6, %p135_p3 }
  0x11   :  { %145 = shalt.err (!%p142_p7)
}
  0x12   :  { %21 = dma.hbm_to_vmem [thread:$0]  %s255_s1, 16, %s19_s13, [#allocation3]  }
  0x13   :  { %s146_s29 = scalar_lea.hbm %s256_s2, 16 }
  0x14   :  { %p147_p8 = scmp.ne.s32.totalorder %s256_s2, %s146_s29  ;;  %p150_p9 = scmp.lt.u32.totalorder %s146_s29, %s256_s2 }
  0x16   :  { %p152_p10 = pnand %p150_p9, %p147_p8 }
  0x18   :  { %155 = shalt.err (!%p152_p10)
}
  0x19   :  { %s156_s7 = scalar_lea.vmem %s29_s15, 16  ;;  %s160_s8 = scalar_lea.vmem %s29_s15, 32 }
  0x1a   :  { %p157_p11 = scmp.ne.s32.totalorder %s29_s15, %s156_s7  ;;  %p161_p12 = scmp.lt.s32.totalorder %s29_s15, %s29_s15 }
  0x1b   :  { %p162_p13 = scmp.lt.s32.totalorder %s160_s8, %s156_s7 }
  0x1d   :  { %p163_p0 = por %p162_p13, %p161_p12 }
  0x1f   :  { %p164_p1 = pnand %p163_p0, %p157_p11 }
  0x21   :  { %167 = shalt.err (!%p164_p1)
}
  0x22   :  { %31 = dma.hbm_to_vmem [thread:$0]  %s256_s2, 16, %s29_s15, [#allocation5]  }
  0x23   :  { %168 = dma.done.wait [#allocation3], 16  }
  0x24   :  { %169 = vsyncadd [#allocation3], 4294967280 }
  0x25   :  { %170 = dma.done.wait [#allocation5], 16  }
  0x26   :  { %171 = vsyncadd [#allocation5], 4294967280  ;;  %vm42_vm0 = vcmask 261120   ;;  %v38_v0 = vld [vmem:[%s254_s0] sm:$0xff]  ;;  %v39_v1 = vld [vmem:[%s254_s0 + $0x8] sm:$0xff]  ;;  %v85_v41 = vlaneseq }
  0x27   :  { %v40_v2 = vld [vmem:[%s254_s0 + $0x10] sm:$0xff]  ;;  %v41_v3 = vld [vmem:[%s254_s0 + $0x18] sm:$0xff]  ;;  %v43_v4 = vsel %vm42_vm0, %v38_v0, 0.0  ;;  %v44_v5 = vsel %vm42_vm0, %v39_v1, 0.0  ;;  %v80_v43 = vld [vmem:[#allocation2] sm:$0x1] }
  0x28   :  { %v46_v6 = vsel %vm42_vm0, %v40_v2, 0.0  ;;  %v45_v7 = vadd.f32 %v44_v5, %v43_v4  ;;  %v48_v8 = vsel %vm42_vm0, %v41_v3, 0.0  ;;  %v86_v42 = vshrl.u32 %v85_v41, 7  ;;  %v119_v48 = vld [vmem:[#allocation4] ss:$0 sm:$0xff] }
  0x2a   :  { %v47_v9 = vadd.f32 %v46_v6, %v45_v7  ;;  %v87_v44 = vsub.s32 0, %v86_v42 }
  0x2c   :  { %v49_v10 = vadd.f32 %v48_v8, %v47_v9 }
  0x2e   :  { %v50_v11 = vrot.slane %v49_v10, 4 }
  0x30   :  { %v51_v12 = vadd.f32 %v50_v11, %v49_v10 }
  0x32   :  { %v52_v13 = vrot.slane %v51_v12, 2 }
  0x34   :  { %v53_v14 = vadd.f32 %v52_v13, %v51_v12 }
  0x36   :  { %v54_v15 = vrot.slane %v53_v14, 1 }
  0x38   :  { %v55_v16 = vadd.f32 %v54_v15, %v53_v14 }
  0x3a   :  { %v57_v17 = vmul.f32 0.03125, %v55_v16 }
  0x3c   :  { %v58_v18 = vsub.f32 %v38_v0, %v57_v17  ;;  %v59_v19 = vsub.f32 %v39_v1, %v57_v17  ;;  %v60_v20 = vsub.f32 %v40_v2, %v57_v17  ;;  %v61_v21 = vsub.f32 %v41_v3, %v57_v17 }
  0x3e   :  { %v62_v22 = vmul.f32 %v58_v18, %v58_v18  ;;  %v63_v23 = vmul.f32 %v59_v19, %v59_v19  ;;  %v64_v24 = vmul.f32 %v60_v20, %v60_v20  ;;  %v65_v25 = vmul.f32 %v61_v21, %v61_v21 }
  0x40   :  { %v66_v26 = vsel %vm42_vm0, %v62_v22, 0.0  ;;  %v67_v27 = vsel %vm42_vm0, %v63_v23, 0.0  ;;  %v69_v28 = vsel %vm42_vm0, %v64_v24, 0.0  ;;  %v71_v30 = vsel %vm42_vm0, %v65_v25, 0.0 }
  0x41   :  { %v68_v29 = vadd.f32 %v67_v27, %v66_v26 }
  0x43   :  { %v70_v31 = vadd.f32 %v69_v28, %v68_v29 }
  0x45   :  { %v72_v32 = vadd.f32 %v71_v30, %v70_v31 }
  0x47   :  { %v73_v33 = vrot.slane %v72_v32, 4 }
  0x49   :  { %v74_v34 = vadd.f32 %v73_v33, %v72_v32 }
  0x4b   :  { %v75_v35 = vrot.slane %v74_v34, 2 }
  0x4d   :  { %v76_v36 = vadd.f32 %v75_v35, %v74_v34 }
  0x4f   :  { %v77_v37 = vrot.slane %v76_v36, 1 }
  0x51   :  { %v78_v38 = vadd.f32 %v77_v37, %v76_v36 }
  0x53   :  { %v79_v39 = vmul.f32 0.03125, %v78_v38 }
  0x55   :  { %v81_v40 = vadd.f32 1e-05, %v79_v39 }
  0x57   :  { %122 = vrsqrt.f32 %v81_v40 }
  0x61   :  { %v123_v45 = vpop.eup %122 }
  0x62   :  { %v83_v46 = vmul.f32 %v123_v45, %v80_v43 }
  0x64   :  { %v88_v47 = vrot.slane %v83_v46, %v87_v44 }
  0x66   :  { %v90_v49 = vmul.f32 %v88_v47, %v58_v18  ;;  %v91_v50 = vmul.f32 %v88_v47, %v59_v19  ;;  %v92_v51 = vmul.f32 %v88_v47, %v60_v20  ;;  %v93_v52 = vmul.f32 %v88_v47, %v61_v21 }
  0x68   :  { %v101_v53 = vadd.f32 %v119_v48, %v90_v49  ;;  %v102_v54 = vadd.f32 %v119_v48, %v91_v50  ;;  %v103_v55 = vadd.f32 %v119_v48, %v92_v51  ;;  %v104_v56 = vadd.f32 %v119_v48, %v93_v52 }
  0x6a   :  { %v105_v57 = vmax.f32 %v101_v53, 0.0  ;;  %v106_v58 = vmax.f32 %v102_v54, 0.0  ;;  %v107_v59 = vmax.f32 %v103_v55, 0.0  ;;  %v108_v60 = vmax.f32 %v104_v56, 0.0 }
  0x6c   :  { %109 = vst.msk [vmem:[%s257_s3] sm:$0xff] %vm42_vm0, %v105_v57  ;;  %110 = vst.msk [vmem:[%s257_s3 + $0x8] sm:$0xff] %vm42_vm0, %v106_v58 }
  0x6d   :  { %111 = vst.msk [vmem:[%s257_s3 + $0x10] sm:$0xff] %vm42_vm0, %v107_v59  ;;  %112 = vst.msk [vmem:[%s257_s3 + $0x18] sm:$0xff] %vm42_vm0, %v108_v60 }
  0x6e   :  { %117 = vsyncpa [#allocation3], 1 }
  0x6f   :  { %118 = vsyncpa [#allocation5], 1 }

// kernel: _lambda_.10
= control target key start
LH: loop header
LB: loop body
LE: loop exit
PB: predicated region body
PF: predicated region fallthrough
CT: control target
= control target key end

     0   :  { %s588_s9 = smov 0   ;;  %s590_s10 = smov 0   ;;  %s666_s0 = inlined_call_operand.vmem [shape: bf16[32,32], index: 0, kind: input, shape index: {}]   ;;  %s667_s1 = inlined_call_operand.vmem [shape: bf16[32,256], index: 1, kind: input, shape index: {}]   ;;  %s668_s2 = inlined_call_operand.vmem [shape: f32[32,256], index: 2, kind: output, shape index: {}]  }
   0x1   :  { %s592_s11 = smov 0   ;;  %s594_s12 = smov 0  }
   0x2   :  { %s596_s13 = smov 0  }
   0x3 LB: > { %s21_s14 = sadd.s32 1, %s567_s12  ;;  %s457_s15 = sadd.s32 4294967295, %s571_s13   ;;  %s571_s13 = sphi %s596_s13, %s12_s13   ;;  %s567_s12 = sphi %s594_s12, %s673_s12   ;;  %s563_s11 = sphi %s592_s11, %s672_s11   ;;  %s559_s10 = sphi %s590_s10, %s671_s10   ;;  %s555_s9 = sphi %s588_s9, %s670_s9  }
   0x4   : > { %p22_p0 = scmp.ge.s32.totalorder %s21_s14, 2  ;;  %p64_p1 = scmp.ne.s32.totalorder %s559_s10, %s555_s9 }
   0x5   : > { %p65_p2 = scmp.eq.s32.totalorder %s571_s13, 0  ;;  %p96_p4 = scmp.eq.s32.totalorder %s457_s15, 1 }
   0x6   : > { %s675_s14 = smov (%p22_p0, %s21_s14), 0  ;;  %s57_s17 = sadd.s32 1, %s559_s10 }
   0x7   : > { %p66_p3 = por %p65_p2, %p64_p1  ;;  %s54_s16 = ssub.s32 %s567_s12, %s675_s14 }
   0x8   : > { %p55_p5 = scmp.eq.s32.totalorder %s54_s16, 0  ;;  %p623_p6 = por %p96_p4, %p64_p1 }
   0x9   : > { %p461_p7 = scmp.ge.s32.totalorder %s571_s13, 2 }
   0xa   : > { %s628_s19 = scalar_select %p55_p5, %s559_s10, %s57_s17  }
   0xb   : > { %127 = sbr.rel (%p461_p7) target bundleno = 25 (0x19), region = 20 }
  0x12   : > { %130 = sbr.rel (!%p66_p3) target bundleno = 25 (0x19), region = 24  ;;  %s132_s20 = sand.u32 (%p66_p3), 1, %s559_s10  }
  0x13   : > { %s463_s21 = sshll.u32 (%p66_p3), %s567_s12, 2  ;;  %s462_s22 = sshll.u32 (%p66_p3), %s132_s20, 4 }
  0x14   : > { %s136_s25 = scalar_lea.vmem (%p66_p3), %s667_s1, %s463_s21  ;;  %s134_s26 = scalar_lea.vmem (%p66_p3), [#allocation2], %s462_s22 }
  0x15   : > { %v152_v0 = vld [vmem:[%s136_s25] sm:$0xf] (%p66_p3)  ;;  %v154_v1 = vld [vmem:[%s136_s25 + $0x8] sm:$0xf] (%p66_p3)  ;;  %v156_v2 = vld [vmem:[%s136_s25 + $0x10] sm:$0xf] (%p66_p3) }
  0x16   : > { %153 = vst [vmem:[%s134_s26] sm:$0xf] (%p66_p3), %v152_v0  ;;  %155 = vst [vmem:[%s134_s26 + $0x4] sm:$0xf] (%p66_p3), %v154_v1  ;;  %v158_v3 = vld [vmem:[%s136_s25 + $0x18] sm:$0xf] (%p66_p3) }
  0x17   : > { %157 = vst [vmem:[%s134_s26 + $0x8] sm:$0xf] (%p66_p3), %v156_v2  ;;  %159 = vst [vmem:[%s134_s26 + $0xc] sm:$0xf] (%p66_p3), %v158_v3 }
  0x19 PF: > { %p464_p8 = scmp.ge.s32.totalorder %s571_s13, 1  ;;  %p189_p9 = scmp.lt.s32.totalorder %s571_s13, 3 }
  0x1b   : > { %p190_p10 = pnand %p464_p8, %p189_p9 }
  0x1c   : > { %s196_s27 = sand.u32 (!%p190_p10), 1, %s555_s9   ;;  %v531_v4 = vld [vmem:[%s666_s0] sm:$0xff] (!%p190_p10)   ;;  %vm259_vm0 = vcmask (!%p190_p10), 261120   ;;  %v532_v7 = vld [vmem:[%s666_s0 + $0x8] sm:$0xff] (!%p190_p10)  }
  0x1d   : > { %193 = sbr.rel (%p190_p10) target bundleno = 264 (0x108), region = 65  ;;  %s465_s30 = sshll.u32 (!%p190_p10), %s196_s27, 4  ;;  %485 = vmatprep.mubr.msk.bf16.mxu0 (!%p190_p10), %vm259_vm0, %v531_v4 }
  0x1e   : > { %s198_s3 = scalar_lea.vmem (!%p190_p10), [#allocation2], %s465_s30  ;;  %s466_s6 = sshll.u32 (!%p190_p10), %s196_s27, 5 }
  0x1f   : > { %v529_v5 = vld [vmem:[%s198_s3] sm:$0xff] (!%p190_p10)   ;;  %v530_v6 = vld [vmem:[%s198_s3 + $0x8] sm:$0xff] (!%p190_p10)   ;;  %s220_s7 = scalar_lea.vmem (!%p190_p10), [#allocation3], %s466_s6 }
  0x20   : > { %481 = vmatprep.subr.bf16.mxu0 (!%p190_p10), %v529_v5 }
  0x21   : > { %482 = vmatpush3.bf16.msra.mxu0 (!%p190_p10), %v529_v5 }
  0x22   : > { %483 = vmatprep.subr.bf16.mxu0 (!%p190_p10), %v530_v6 }
  0x24   : > { %s474_s8 = sshll.u32 (%p623_p6), %s563_s11, 3 }
  0x25   : > { %484 = vmatpush3.bf16.msra.mxu0 %v530_v6  ;;  %s330_s16 = scalar_lea.vmem (%p623_p6), %s668_s2, %s474_s8 }
  0x28   : > { %486 = vmatmul.mubr.msk.bf16.vlgmr.msra.gmra.mrb[0].mxu0 %vm259_vm0, %v532_v7 }
  0xf9   : > { %325 = sbr.rel (!%p623_p6) target bundleno = 264 (0x108), region = 73 }
  0xfb   : > { %v487_v8 = vpop.f32.mrb[0].mxu0 }
  0xfc   : > { %317 = vst [vmem:[%s220_s7 + $0x10] sm:$0xff] %v487_v8  ;;  %v300_v9 = vpop.f32.mrb[1].mxu0 }
  0xfd   : > { %315 = vst [vmem:[%s220_s7] sm:$0xff] %v300_v9  ;;  %v488_v10 = vpop.f32.mrb[2].mxu0 }
  0xfe   : > { %318 = vst [vmem:[%s220_s7 + $0x18] sm:$0xff] %v488_v10  ;;  %v303_v11 = vpop.f32.mrb[3].mxu0 }
  0xff   : > { %316 = vst [vmem:[%s220_s7 + $0x8] sm:$0xff] %v303_v11 }
 0x103   : > { %v368_v14 = vld [vmem:[%s220_s7 + $0x10] sm:$0xff] }
 0x104   : > { %v364_v12 = vld [vmem:[%s220_s7] sm:$0xff]  ;;  %369 = vst [vmem:[%s330_s16 + $0x20] sm:$0xff] %v368_v14 }
 0x105   : > { %v370_v15 = vld [vmem:[%s220_s7 + $0x18] sm:$0xff]  ;;  %365 = vst [vmem:[%s330_s16] sm:$0xff] %v364_v12 }
 0x106   : > { %v366_v13 = vld [vmem:[%s220_s7 + $0x8] sm:$0xff]  ;;  %371 = vst [vmem:[%s330_s16 + $0x30] sm:$0xff] %v370_v15 }
 0x107   : > { %367 = vst [vmem:[%s330_s16 + $0x10] sm:$0xff] %v366_v13 }
 0x108 PF: > { %s12_s13 = sadd.s32 1, %s571_s13   ;;  %s670_s9 = smov %s559_s10 }
 0x109   : > { %p9_p11 = scmp.ge.s32.totalorder %s12_s13, 4   ;;  %s671_s10 = smov %s628_s19 }
 0x10a   : > { %s672_s11 = smov %s567_s12  ;;  %s673_s12 = smov %s675_s14 }
 0x10b   :  { %11 = sbr.rel (!%p9_p11) target bundleno = 3 (0x3), region = 145 }

// kernel: _lambda_.11
= control target key start
LH: loop header
LB: loop body
LE: loop exit
PB: predicated region body
PF: predicated region fallthrough
CT: control target
= control target key end

     0   :  { %vm30_vm0 = vcmask 130048   ;;  %s478_s0 = inlined_call_operand.vmem [shape: f32[128,16], index: 0, kind: input, shape index: {}]   ;;  %s479_s1 = inlined_call_operand.vmem [shape: f32[1,16], index: 1, kind: input, shape index: {}]   ;;  %s480_s2 = inlined_call_operand.vmem [shape: f32[1,16], index: 2, kind: input, shape index: {}]   ;;  %s481_s3 = inlined_call_operand.vmem [shape: f32[128,16], index: 3, kind: output, shape index: {}]  }
   0x1   :  { %v14_v0 = vld [vmem:[%s478_s0] sm:$0xff]  ;;  %v15_v1 = vld [vmem:[%s478_s0 + $0x8] sm:$0xff]  ;;  %v16_v2 = vld [vmem:[%s478_s0 + $0x10] sm:$0xff] }
   0x2   :  { %v17_v3 = vld [vmem:[%s478_s0 + $0x18] sm:$0xff]  ;;  %v31_v4 = vsel %vm30_vm0, %v14_v0, 0.0  ;;  %v32_v5 = vsel %vm30_vm0, %v15_v1, 0.0  ;;  %v34_v6 = vsel %vm30_vm0, %v16_v2, 0.0  ;;  %v18_v7 = vld [vmem:[%s478_s0 + $0x20] sm:$0xff]  ;;  %v19_v10 = vld [vmem:[%s478_s0 + $0x28] sm:$0xff] }
   0x3   :  { %v33_v8 = vadd.f32 %v32_v5, %v31_v4  ;;  %v36_v9 = vsel %vm30_vm0, %v17_v3, 0.0  ;;  %v38_v12 = vsel %vm30_vm0, %v18_v7, 0.0  ;;  %v20_v13 = vld [vmem:[%s478_s0 + $0x30] sm:$0xff]  ;;  %v40_v15 = vsel %vm30_vm0, %v19_v10, 0.0  ;;  %v21_v16 = vld [vmem:[%s478_s0 + $0x38] sm:$0xff]  ;;  %v22_v19 = vld [vmem:[%s478_s0 + $0x40] sm:$0xff] }
   0x4   :  { %v42_v18 = vsel %vm30_vm0, %v20_v13, 0.0  ;;  %v44_v21 = vsel %vm30_vm0, %v21_v16, 0.0  ;;  %v23_v22 = vld [vmem:[%s478_s0 + $0x48] sm:$0xff]  ;;  %v46_v24 = vsel %vm30_vm0, %v22_v19, 0.0  ;;  %v24_v25 = vld [vmem:[%s478_s0 + $0x50] sm:$0xff]  ;;  %v25_v28 = vld [vmem:[%s478_s0 + $0x58] sm:$0xff] }
   0x5   :  { %v35_v11 = vadd.f32 %v34_v6, %v33_v8  ;;  %v48_v27 = vsel %vm30_vm0, %v23_v22, 0.0  ;;  %v50_v30 = vsel %vm30_vm0, %v24_v25, 0.0  ;;  %v26_v31 = vld [vmem:[%s478_s0 + $0x60] sm:$0xff]  ;;  %v52_v33 = vsel %vm30_vm0, %v25_v28, 0.0  ;;  %v27_v34 = vld [vmem:[%s478_s0 + $0x68] sm:$0xff]  ;;  %v28_v37 = vld [vmem:[%s478_s0 + $0x70] sm:$0xff] }
   0x6   :  { %v54_v36 = vsel %vm30_vm0, %v26_v31, 0.0  ;;  %v56_v39 = vsel %vm30_vm0, %v27_v34, 0.0  ;;  %v29_v40 = vld [vmem:[%s478_s0 + $0x78] sm:$0xff]  ;;  %v58_v42 = vsel %vm30_vm0, %v28_v37, 0.0 }
   0x7   :  { %v37_v14 = vadd.f32 %v36_v9, %v35_v11  ;;  %v60_v44 = vsel %vm30_vm0, %v29_v40, 0.0 }
   0x9   :  { %v39_v17 = vadd.f32 %v38_v12, %v37_v14 }
   0xb   :  { %v41_v20 = vadd.f32 %v40_v15, %v39_v17 }
   0xd   :  { %v43_v23 = vadd.f32 %v42_v18, %v41_v20 }
   0xf   :  { %v45_v26 = vadd.f32 %v44_v21, %v43_v23 }
  0x11   :  { %v47_v29 = vadd.f32 %v46_v24, %v45_v26 }
  0x13   :  { %v49_v32 = vadd.f32 %v48_v27, %v47_v29 }
  0x15   :  { %v51_v35 = vadd.f32 %v50_v30, %v49_v32 }
  0x17   :  { %v53_v38 = vadd.f32 %v52_v33, %v51_v35 }
  0x19   :  { %v55_v41 = vadd.f32 %v54_v36, %v53_v38 }
  0x1b   :  { %v57_v43 = vadd.f32 %v56_v39, %v55_v41 }
  0x1d   :  { %v59_v45 = vadd.f32 %v58_v42, %v57_v43 }
  0x1f   :  { %v61_v46 = vadd.f32 %v60_v44, %v59_v45 }
  0x21   :  { %v62_v47 = vrot.slane %v61_v46, 4 }
  0x23   :  { %v63_v48 = vadd.f32 %v62_v47, %v61_v46 }
  0x25   :  { %v64_v49 = vrot.slane %v63_v48, 2 }
  0x27   :  { %v65_v50 = vadd.f32 %v64_v49, %v63_v48 }
  0x29   :  { %v66_v51 = vrot.slane %v65_v50, 1 }
  0x2b   :  { %v67_v52 = vadd.f32 %v66_v51, %v65_v50 }
  0x2d   :  { %v69_v53 = vmul.f32 0.0078125, %v67_v52 }
  0x2f   :  { %v312_v54 = vsub.f32 %v14_v0, %v69_v53  ;;  %v314_v55 = vsub.f32 %v15_v1, %v69_v53  ;;  %v316_v56 = vsub.f32 %v16_v2, %v69_v53  ;;  %v318_v57 = vsub.f32 %v17_v3, %v69_v53 }
  0x30   :  { %v320_v58 = vsub.f32 %v18_v7, %v69_v53  ;;  %v328_v62 = vsub.f32 %v19_v10, %v69_v53  ;;  %v332_v0 = vsub.f32 %v20_v13, %v69_v53  ;;  %v339_v6 = vsub.f32 %v21_v16, %v69_v53 }
  0x31   :  { %v86_v59 = vmul.f32 %v312_v54, %v312_v54  ;;  %v87_v60 = vmul.f32 %v314_v55, %v314_v55  ;;  %v88_v61 = vmul.f32 %v316_v56, %v316_v56  ;;  %v89_v63 = vmul.f32 %v318_v57, %v318_v57 }
  0x32   :  { %v90_v1 = vmul.f32 %v320_v58, %v320_v58  ;;  %v91_v7 = vmul.f32 %v328_v62, %v328_v62  ;;  %v344_v10 = vsub.f32 %v22_v19, %v69_v53  ;;  %v92_v11 = vmul.f32 %v332_v0, %v332_v0 }
  0x33   :  { %v102_v2 = vsel %vm30_vm0, %v86_v59, 0.0  ;;  %v103_v3 = vsel %vm30_vm0, %v87_v60, 0.0  ;;  %v105_v4 = vsel %vm30_vm0, %v88_v61, 0.0  ;;  %v107_v8 = vsel %vm30_vm0, %v89_v63, 0.0 }
  0x34   :  { %v104_v5 = vadd.f32 %v103_v3, %v102_v2  ;;  %v109_v12 = vsel %vm30_vm0, %v90_v1, 0.0  ;;  %v349_v14 = vsub.f32 %v23_v22, %v69_v53  ;;  %v93_v15 = vmul.f32 %v339_v6, %v339_v6 }
  0x35   :  { %v111_v16 = vsel %vm30_vm0, %v91_v7, 0.0  ;;  %v354_v18 = vsub.f32 %v24_v25, %v69_v53  ;;  %v94_v19 = vmul.f32 %v344_v10, %v344_v10  ;;  %v113_v20 = vsel %vm30_vm0, %v92_v11, 0.0  ;;  %v140_v7 = vld [vmem:[%s479_s1] sm:$0x1] }
  0x36   :  { %v106_v9 = vadd.f32 %v105_v4, %v104_v5  ;;  %v359_v23 = vsub.f32 %v25_v28, %v69_v53  ;;  %v95_v22 = vmul.f32 %v349_v14, %v349_v14  ;;  %v115_v24 = vsel %vm30_vm0, %v93_v15, 0.0 }
  0x37   :  { %v364_v27 = vsub.f32 %v26_v31, %v69_v53  ;;  %v96_v25 = vmul.f32 %v354_v18, %v354_v18  ;;  %v117_v29 = vsel %vm30_vm0, %v94_v19, 0.0  ;;  %v369_v32 = vsub.f32 %v27_v34, %v69_v53 }
  0x38   :  { %v108_v13 = vadd.f32 %v107_v8, %v106_v9  ;;  %v97_v28 = vmul.f32 %v359_v23, %v359_v23  ;;  %v119_v33 = vsel %vm30_vm0, %v95_v22, 0.0  ;;  %v374_v36 = vsub.f32 %v28_v37, %v69_v53 }
  0x39   :  { %v98_v31 = vmul.f32 %v364_v27, %v364_v27  ;;  %v121_v38 = vsel %vm30_vm0, %v96_v25, 0.0  ;;  %v379_v41 = vsub.f32 %v29_v40, %v69_v53  ;;  %v99_v34 = vmul.f32 %v369_v32, %v369_v32 }
  0x3a   :  { %v110_v17 = vadd.f32 %v109_v12, %v108_v13  ;;  %v123_v42 = vsel %vm30_vm0, %v97_v28, 0.0  ;;  %v100_v44 = vmul.f32 %v374_v36, %v374_v36  ;;  %v145_v4 = vlaneseq  ;;  %v225_v13 = vld [vmem:[%s480_s2] ss:$0 sm:$0xff] }
  0x3b   :  { %v125_v37 = vsel %vm30_vm0, %v98_v31, 0.0  ;;  %v101_v46 = vmul.f32 %v379_v41, %v379_v41  ;;  %v127_v47 = vsel %vm30_vm0, %v99_v34, 0.0 }
  0x3c   :  { %v112_v21 = vadd.f32 %v111_v16, %v110_v17  ;;  %v129_v40 = vsel %vm30_vm0, %v100_v44, 0.0  ;;  %v146_v5 = vshrl.u32 %v145_v4, 7 }
  0x3d   :  { %v131_v50 = vsel %vm30_vm0, %v101_v46, 0.0 }
  0x3e   :  { %v114_v26 = vadd.f32 %v113_v20, %v112_v21  ;;  %v147_v8 = vsub.s32 0, %v146_v5 }
  0x40   :  { %v116_v30 = vadd.f32 %v115_v24, %v114_v26 }
  0x42   :  { %v118_v35 = vadd.f32 %v117_v29, %v116_v30 }
  0x44   :  { %v120_v39 = vadd.f32 %v119_v33, %v118_v35 }
  0x46   :  { %v122_v43 = vadd.f32 %v121_v38, %v120_v39 }
  0x48   :  { %v124_v45 = vadd.f32 %v123_v42, %v122_v43 }
  0x4a   :  { %v126_v48 = vadd.f32 %v125_v37, %v124_v45 }
  0x4c   :  { %v128_v49 = vadd.f32 %v127_v47, %v126_v48 }
  0x4e   :  { %v130_v51 = vadd.f32 %v129_v40, %v128_v49 }
  0x50   :  { %v132_v52 = vadd.f32 %v131_v50, %v130_v51 }
  0x52   :  { %v133_v53 = vrot.slane %v132_v52, 4 }
  0x54   :  { %v134_v59 = vadd.f32 %v133_v53, %v132_v52 }
  0x56   :  { %v135_v60 = vrot.slane %v134_v59, 2 }
  0x58   :  { %v136_v61 = vadd.f32 %v135_v60, %v134_v59 }
  0x5a   :  { %v137_v63 = vrot.slane %v136_v61, 1 }
  0x5c   :  { %v138_v1 = vadd.f32 %v137_v63, %v136_v61 }
  0x5e   :  { %v139_v2 = vmul.f32 0.0078125, %v138_v1 }
  0x60   :  { %v141_v3 = vadd.f32 1e-05, %v139_v2 }
  0x62   :  { %226 = vrsqrt.f32 %v141_v3 }
  0x6c   :  { %v227_v9 = vpop.eup %226 }
  0x6d   :  { %v143_v11 = vmul.f32 %v227_v9, %v140_v7 }
  0x6f   :  { %v148_v12 = vrot.slane %v143_v11, %v147_v8 }
  0x71   :  { %v150_v15 = vmul.f32 %v148_v12, %v312_v54  ;;  %v151_v16 = vmul.f32 %v148_v12, %v314_v55  ;;  %v152_v17 = vmul.f32 %v148_v12, %v316_v56  ;;  %v153_v19 = vmul.f32 %v148_v12, %v318_v57 }
  0x72   :  { %v154_v20 = vmul.f32 %v148_v12, %v320_v58  ;;  %v155_v21 = vmul.f32 %v148_v12, %v328_v62  ;;  %v156_v22 = vmul.f32 %v148_v12, %v332_v0  ;;  %v157_v24 = vmul.f32 %v148_v12, %v339_v6 }
  0x73   :  { %v173_v26 = vadd.f32 %v225_v13, %v150_v15  ;;  %v174_v25 = vadd.f32 %v225_v13, %v151_v16  ;;  %v175_v29 = vadd.f32 %v225_v13, %v152_v17  ;;  %v176_v30 = vadd.f32 %v225_v13, %v153_v19 }
  0x74   :  { %v177_v28 = vadd.f32 %v225_v13, %v154_v20  ;;  %v178_v54 = vadd.f32 %v225_v13, %v155_v21  ;;  %v179_v33 = vadd.f32 %v225_v13, %v156_v22  ;;  %v180_v55 = vadd.f32 %v225_v13, %v157_v24 }
  0x75   :  { %v189_v35 = vmax.f32 %v173_v26, 0.0  ;;  %v190_v56 = vmax.f32 %v174_v25, 0.0  ;;  %v191_v31 = vmax.f32 %v175_v29, 0.0  ;;  %v192_v57 = vmax.f32 %v176_v30, 0.0 }
  0x76   :  { %v193_v38 = vmax.f32 %v177_v28, 0.0  ;;  %v194_v58 = vmax.f32 %v178_v54, 0.0  ;;  %v195_v39 = vmax.f32 %v179_v33, 0.0  ;;  %v196_v62 = vmax.f32 %v180_v55, 0.0 }
  0x77   :  { %205 = vst.msk [vmem:[%s481_s3] sm:$0xff] %vm30_vm0, %v189_v35  ;;  %206 = vst.msk [vmem:[%s481_s3 + $0x8] sm:$0xff] %vm30_vm0, %v190_v56  ;;  %v158_v0 = vmul.f32 %v148_v12, %v344_v10  ;;  %v159_v6 = vmul.f32 %v148_v12, %v349_v14  ;;  %v160_v34 = vmul.f32 %v148_v12, %v354_v18 }
  0x78   :  { %207 = vst.msk [vmem:[%s481_s3 + $0x10] sm:$0xff] %vm30_vm0, %v191_v31  ;;  %208 = vst.msk [vmem:[%s481_s3 + $0x18] sm:$0xff] %vm30_vm0, %v192_v57  ;;  %v161_v42 = vmul.f32 %v148_v12, %v359_v23  ;;  %v162_v10 = vmul.f32 %v148_v12, %v364_v27  ;;  %v163_v14 = vmul.f32 %v148_v12, %v369_v32 }
  0x79   :  { %209 = vst.msk [vmem:[%s481_s3 + $0x20] sm:$0xff] %vm30_vm0, %v193_v38  ;;  %210 = vst.msk [vmem:[%s481_s3 + $0x28] sm:$0xff] %vm30_vm0, %v194_v58  ;;  %v164_v18 = vmul.f32 %v148_v12, %v374_v36  ;;  %v165_v23 = vmul.f32 %v148_v12, %v379_v41  ;;  %v181_v43 = vadd.f32 %v225_v13, %v158_v0 }
  0x7a   :  { %211 = vst.msk [vmem:[%s481_s3 + $0x30] sm:$0xff] %vm30_vm0, %v195_v39  ;;  %212 = vst.msk [vmem:[%s481_s3 + $0x38] sm:$0xff] %vm30_vm0, %v196_v62  ;;  %v182_v44 = vadd.f32 %v225_v13, %v159_v6  ;;  %v183_v37 = vadd.f32 %v225_v13, %v160_v34  ;;  %v184_v45 = vadd.f32 %v225_v13, %v161_v42 }
  0x7b   :  { %v185_v46 = vadd.f32 %v225_v13, %v162_v10  ;;  %v186_v47 = vadd.f32 %v225_v13, %v163_v14  ;;  %v187_v48 = vadd.f32 %v225_v13, %v164_v18  ;;  %v188_v40 = vadd.f32 %v225_v13, %v165_v23 }
  0x7c   :  { %v197_v49 = vmax.f32 %v181_v43, 0.0  ;;  %v198_v50 = vmax.f32 %v182_v44, 0.0  ;;  %v199_v51 = vmax.f32 %v183_v37, 0.0  ;;  %v200_v52 = vmax.f32 %v184_v45, 0.0 }
  0x7d   :  { %v201_v53 = vmax.f32 %v185_v46, 0.0  ;;  %v202_v27 = vmax.f32 %v186_v47, 0.0  ;;  %v203_v59 = vmax.f32 %v187_v48, 0.0  ;;  %v204_v32 = vmax.f32 %v188_v40, 0.0 }
  0x7e   :  { %213 = vst.msk [vmem:[%s481_s3 + $0x40] sm:$0xff] %vm30_vm0, %v197_v49  ;;  %214 = vst.msk [vmem:[%s481_s3 + $0x48] sm:$0xff] %vm30_vm0, %v198_v50 }
  0x7f   :  { %215 = vst.msk [vmem:[%s481_s3 + $0x50] sm:$0xff] %vm30_vm0, %v199_v51  ;;  %216 = vst.msk [vmem:[%s481_s3 + $0x58] sm:$0xff] %vm30_vm0, %v200_v52 }
  0x80   :  { %217 = vst.msk [vmem:[%s481_s3 + $0x60] sm:$0xff] %vm30_vm0, %v201_v53  ;;  %218 = vst.msk [vmem:[%s481_s3 + $0x68] sm:$0xff] %vm30_vm0, %v202_v27 }
  0x81   :  { %219 = vst.msk [vmem:[%s481_s3 + $0x70] sm:$0xff] %vm30_vm0, %v203_v59  ;;  %220 = vst.msk [vmem:[%s481_s3 + $0x78] sm:$0xff] %vm30_vm0, %v204_v32 }

// kernel: _lambda_.12
= control target key start
LH: loop header
LB: loop body
LE: loop exit
PB: predicated region body
PF: predicated region fallthrough
CT: control target
= control target key end

     0   :  { %s773_s9 = smov 0   ;;  %s775_s10 = smov 0   ;;  %s911_s0 = inlined_call_operand.vmem [shape: bf16[128,16], index: 0, kind: input, shape index: {}]   ;;  %s912_s1 = inlined_call_operand.vmem [shape: bf16[16,256], index: 1, kind: input, shape index: {}]   ;;  %s913_s2 = inlined_call_operand.vmem [shape: f32[128,256], index: 2, kind: output, shape index: {}]  }
   0x1   :  { %s777_s11 = smov 0   ;;  %s779_s12 = smov 0  }
   0x2   :  { %s781_s13 = smov 0  }
   0x3 LB: > { %s21_s14 = sadd.s32 1, %s752_s12  ;;  %s609_s15 = sadd.s32 4294967295, %s756_s13   ;;  %s756_s13 = sphi %s781_s13, %s12_s13   ;;  %s752_s12 = sphi %s779_s12, %s918_s12   ;;  %s748_s11 = sphi %s777_s11, %s917_s11   ;;  %s744_s10 = sphi %s775_s10, %s916_s10   ;;  %s740_s9 = sphi %s773_s9, %s915_s9  }
   0x4   : > { %p22_p0 = scmp.ge.s32.totalorder %s21_s14, 2  ;;  %p64_p1 = scmp.ne.s32.totalorder %s744_s10, %s740_s9 }
   0x5   : > { %p65_p2 = scmp.eq.s32.totalorder %s756_s13, 0  ;;  %p96_p4 = scmp.eq.s32.totalorder %s609_s15, 1 }
   0x6   : > { %s920_s14 = smov (%p22_p0, %s21_s14), 0  ;;  %s57_s17 = sadd.s32 1, %s744_s10 }
   0x7   : > { %p66_p3 = por %p65_p2, %p64_p1  ;;  %s54_s16 = ssub.s32 %s752_s12, %s920_s14 }
   0x8   : > { %p55_p5 = scmp.eq.s32.totalorder %s54_s16, 0  ;;  %p808_p6 = por %p96_p4, %p64_p1 }
   0x9   : > { %p613_p7 = scmp.ge.s32.totalorder %s756_s13, 2 }
   0xa   : > { %s813_s19 = scalar_select %p55_p5, %s744_s10, %s57_s17  }
   0xb   : > { %127 = sbr.rel (%p613_p7) target bundleno = 25 (0x19), region = 20 }
  0x12   : > { %130 = sbr.rel (!%p66_p3) target bundleno = 25 (0x19), region = 24  ;;  %s132_s20 = sand.u32 (%p66_p3), 1, %s744_s10  }
  0x13   : > { %s615_s21 = sshll.u32 (%p66_p3), %s752_s12, 2  ;;  %s614_s22 = sshll.u32 (%p66_p3), %s132_s20, 3 }
  0x14   : > { %s136_s25 = scalar_lea.vmem (%p66_p3), %s912_s1, %s615_s21  ;;  %s134_s26 = scalar_lea.vmem (%p66_p3), [#allocation2], %s614_s22 }
  0x15   : > { %v152_v0 = vld [vmem:[%s136_s25] sm:$0xf] (%p66_p3)  ;;  %v154_v1 = vld [vmem:[%s136_s25 + $0x8] sm:$0xf] (%p66_p3) }
  0x16   : > { %153 = vst [vmem:[%s134_s26] sm:$0xf] (%p66_p3), %v152_v0  ;;  %155 = vst [vmem:[%s134_s26 + $0x4] sm:$0xf] (%p66_p3), %v154_v1 }
  0x19 PF: > { %p616_p8 = scmp.ge.s32.totalorder %s756_s13, 1  ;;  %p181_p9 = scmp.lt.s32.totalorder %s756_s13, 3 }
  0x1b   : > { %p182_p10 = pnand %p616_p8, %p181_p9 }
  0x1c   : > { %s188_s27 = sand.u32 (!%p182_p10), 1, %s740_s9   ;;  %v710_v2 = vld [vmem:[%s911_s0] sm:$0xff] (!%p182_p10)   ;;  %vm285_vm0 = vcmask (!%p182_p10), 130048   ;;  %v712_v5 = vld [vmem:[%s911_s0 + $0x8] sm:$0xff] (!%p182_p10)   ;;  %v714_v7 = vld [vmem:[%s911_s0 + $0x10] sm:$0xff] (!%p182_p10)  }
  0x1d   : > { %185 = sbr.rel (%p182_p10) target bundleno = 269 (0x10d), region = 65  ;;  %s617_s30 = sshll.u32 (!%p182_p10), %s188_s27, 3  ;;  %v711_v3 = vld [vmem:[%s911_s0 + $0x20] sm:$0xff] (!%p182_p10)   ;;  %651 = vmatprep.mubr.msk.bf16.mxu0 (!%p182_p10), %vm285_vm0, %v710_v2  ;;  %v713_v6 = vld [vmem:[%s911_s0 + $0x28] sm:$0xff] (!%p182_p10)   ;;  %v715_v8 = vld [vmem:[%s911_s0 + $0x30] sm:$0xff] (!%p182_p10)  }
  0x1e   : > { %s190_s5 = scalar_lea.vmem (!%p182_p10), [#allocation2], %s617_s30  ;;  %659 = vmatprep.mubr.msk.bf16.mxu1 (!%p182_p10), %vm285_vm0, %v711_v3  ;;  %v716_v9 = vld [vmem:[%s911_s0 + $0x18] sm:$0xff] (!%p182_p10)   ;;  %s618_s25 = sshll.u32 (!%p182_p10), %s188_s27, 7 }
  0x1f   : > { %v709_v4 = vld [vmem:[%s190_s5] sm:$0xff] (!%p182_p10)   ;;  %v717_v10 = vld [vmem:[%s911_s0 + $0x38] sm:$0xff] (!%p182_p10)   ;;  %s856_s26 = scalar_lea.vmem (!%p182_p10), [#allocation3], %s618_s25 }
  0x20   : > { %649 = vmatprep.subr.bf16.mxu0 (!%p182_p10), %v709_v4  ;;  %667 = vmatprep.subr.bf16.mxu1 (!%p182_p10), %v709_v4 }
  0x21   : > { %650 = vmatpush3.bf16.msra.mxu0 (!%p182_p10), %v709_v4  ;;  %668 = vmatpush3.bf16.msra.mxu1 (!%p182_p10), %v709_v4 }
  0x24   : > { %652 = vmatmul.mubr.msk.bf16.vlgmr.msra.gmra.mrb[0].mxu0 %vm285_vm0, %v712_v5  ;;  %660 = vmatmul.mubr.msk.bf16.vlgmr.msra.gmra.mrb[0].mxu1 %vm285_vm0, %v713_v6  ;;  %s637_s27 = sshll.u32 (%p808_p6), %s748_s11, 3 }
  0x25   : > { %655 = vmatprep.mubr.msk.bf16.mxu0 %vm285_vm0, %v714_v7  ;;  %663 = vmatprep.mubr.msk.bf16.mxu1 %vm285_vm0, %v715_v8  ;;  %s434_s30 = scalar_lea.vmem (%p808_p6), %s913_s2, %s637_s27 }
  0x2c   : > { %656 = vmatmul.mubr.msk.bf16.gmra.mrb[4].mxu0 %vm285_vm0, %v716_v9  ;;  %664 = vmatmul.mubr.msk.bf16.gmra.mrb[4].mxu1 %vm285_vm0, %v717_v10 }
  0xf7   : > { %v653_v11 = vpop.f32.mrb[0].mxu0  ;;  %v661_v12 = vpop.f32.mrb[0].mxu1 }
  0xf8   : > { %409 = vst [vmem:[%s856_s26 + $0x10] sm:$0xff] %v653_v11  ;;  %417 = vst [vmem:[%s856_s26 + $0x50] sm:$0xff] %v661_v12  ;;  %v344_v13 = vpop.f32.mrb[1].mxu0  ;;  %v376_v14 = vpop.f32.mrb[1].mxu1 }
  0xf9   : > { %407 = vst [vmem:[%s856_s26] sm:$0xff] %v344_v13  ;;  %415 = vst [vmem:[%s856_s26 + $0x40] sm:$0xff] %v376_v14  ;;  %v654_v15 = vpop.f32.mrb[2].mxu0  ;;  %v662_v16 = vpop.f32.mrb[2].mxu1 }
  0xfa   : > { %410 = vst [vmem:[%s856_s26 + $0x18] sm:$0xff] %v654_v15  ;;  %418 = vst [vmem:[%s856_s26 + $0x58] sm:$0xff] %v662_v16  ;;  %v347_v17 = vpop.f32.mrb[3].mxu0  ;;  %v379_v18 = vpop.f32.mrb[3].mxu1 }
  0xfb   : > { %408 = vst [vmem:[%s856_s26 + $0x8] sm:$0xff] %v347_v17  ;;  %416 = vst [vmem:[%s856_s26 + $0x48] sm:$0xff] %v379_v18 }
  0xfd   : > { %429 = sbr.rel (!%p808_p6) target bundleno = 269 (0x10d), region = 73 }
  0xff   : > { %v657_v19 = vpop.f32.mrb[4].mxu0  ;;  %v665_v20 = vpop.f32.mrb[4].mxu1  ;;  %v496_v29 = vld [vmem:[%s856_s26 + $0x10] sm:$0xff] (%p808_p6) }
 0x100   : > { %413 = vst [vmem:[%s856_s26 + $0x30] sm:$0xff] %v657_v19  ;;  %421 = vst [vmem:[%s856_s26 + $0x70] sm:$0xff] %v665_v20  ;;  %v360_v21 = vpop.f32.mrb[5].mxu0  ;;  %v392_v22 = vpop.f32.mrb[5].mxu1  ;;  %v492_v27 = vld [vmem:[%s856_s26] sm:$0xff] (%p808_p6)  ;;  %v512_v37 = vld [vmem:[%s856_s26 + $0x50] sm:$0xff] (%p808_p6) }
 0x101   : > { %411 = vst [vmem:[%s856_s26 + $0x20] sm:$0xff] %v360_v21  ;;  %419 = vst [vmem:[%s856_s26 + $0x60] sm:$0xff] %v392_v22  ;;  %v658_v23 = vpop.f32.mrb[6].mxu0  ;;  %v666_v24 = vpop.f32.mrb[6].mxu1  ;;  %v498_v30 = vld [vmem:[%s856_s26 + $0x18] sm:$0xff] (%p808_p6)  ;;  %v508_v35 = vld [vmem:[%s856_s26 + $0x40] sm:$0xff] (%p808_p6) }
 0x102   : > { %414 = vst [vmem:[%s856_s26 + $0x38] sm:$0xff] %v658_v23  ;;  %422 = vst [vmem:[%s856_s26 + $0x78] sm:$0xff] %v666_v24  ;;  %v363_v25 = vpop.f32.mrb[7].mxu0  ;;  %v395_v26 = vpop.f32.mrb[7].mxu1  ;;  %v494_v28 = vld [vmem:[%s856_s26 + $0x8] sm:$0xff] (%p808_p6)  ;;  %v514_v38 = vld [vmem:[%s856_s26 + $0x58] sm:$0xff] (%p808_p6) }
 0x103   : > { %412 = vst [vmem:[%s856_s26 + $0x28] sm:$0xff] %v363_v25  ;;  %420 = vst [vmem:[%s856_s26 + $0x68] sm:$0xff] %v395_v26  ;;  %v510_v36 = vld [vmem:[%s856_s26 + $0x48] sm:$0xff] (%p808_p6) }
 0x104   : > { %493 = vst [vmem:[%s434_s30] sm:$0xff] %v492_v27  ;;  %495 = vst [vmem:[%s434_s30 + $0x10] sm:$0xff] %v494_v28 }
 0x105   : > { %497 = vst [vmem:[%s434_s30 + $0x20] sm:$0xff] %v496_v29  ;;  %499 = vst [vmem:[%s434_s30 + $0x30] sm:$0xff] %v498_v30 }
 0x106   : > { %509 = vst [vmem:[%s434_s30 + $0x80] sm:$0xff] %v508_v35  ;;  %511 = vst [vmem:[%s434_s30 + $0x90] sm:$0xff] %v510_v36 }
 0x107   : > { %v504_v33 = vld [vmem:[%s856_s26 + $0x30] sm:$0xff]  ;;  %513 = vst [vmem:[%s434_s30 + $0xa0] sm:$0xff] %v512_v37  ;;  %515 = vst [vmem:[%s434_s30 + $0xb0] sm:$0xff] %v514_v38 }
 0x108   : > { %v500_v31 = vld [vmem:[%s856_s26 + $0x20] sm:$0xff]  ;;  %505 = vst [vmem:[%s434_s30 + $0x60] sm:$0xff] %v504_v33  ;;  %v520_v41 = vld [vmem:[%s856_s26 + $0x70] sm:$0xff] }
 0x109   : > { %501 = vst [vmem:[%s434_s30 + $0x40] sm:$0xff] %v500_v31  ;;  %v506_v34 = vld [vmem:[%s856_s26 + $0x38] sm:$0xff]  ;;  %v516_v39 = vld [vmem:[%s856_s26 + $0x60] sm:$0xff]  ;;  %521 = vst [vmem:[%s434_s30 + $0xe0] sm:$0xff] %v520_v41 }
 0x10a   : > { %v502_v32 = vld [vmem:[%s856_s26 + $0x28] sm:$0xff]  ;;  %507 = vst [vmem:[%s434_s30 + $0x70] sm:$0xff] %v506_v34  ;;  %517 = vst [vmem:[%s434_s30 + $0xc0] sm:$0xff] %v516_v39  ;;  %v522_v42 = vld [vmem:[%s856_s26 + $0x78] sm:$0xff] }
 0x10b   : > { %503 = vst [vmem:[%s434_s30 + $0x50] sm:$0xff] %v502_v32  ;;  %v518_v40 = vld [vmem:[%s856_s26 + $0x68] sm:$0xff]  ;;  %523 = vst [vmem:[%s434_s30 + $0xf0] sm:$0xff] %v522_v42 }
 0x10c   : > { %519 = vst [vmem:[%s434_s30 + $0xd0] sm:$0xff] %v518_v40 }
 0x10d PF: > { %s12_s13 = sadd.s32 1, %s756_s13   ;;  %s915_s9 = smov %s744_s10 }
 0x10e   : > { %p9_p11 = scmp.ge.s32.totalorder %s12_s13, 4   ;;  %s916_s10 = smov %s813_s19 }
 0x10f   : > { %s917_s11 = smov %s752_s12  ;;  %s918_s12 = smov %s920_s14 }
 0x110   :  { %11 = sbr.rel (!%p9_p11) target bundleno = 3 (0x3), region = 145 }

// kernel: _lambda_.14
= control target key start
LH: loop header
LB: loop body
LE: loop exit
PB: predicated region body
PF: predicated region fallthrough
CT: control target
= control target key end

     0   :  { %s816_s9 = smov 0   ;;  %s818_s10 = smov 0   ;;  %s956_s0 = inlined_call_operand.vmem [shape: bf16[512,16], index: 0, kind: input, shape index: {}]   ;;  %s957_s1 = inlined_call_operand.vmem [shape: bf16[16,27], index: 1, kind: input, shape index: {}]   ;;  %s958_s2 = inlined_call_operand.vmem [shape: f32[512,27], index: 2, kind: output, shape index: {}]  }
   0x1   :  { %s820_s11 = smov 0  }
   0x2 LB: > { %s24_s12 = sadd.s32 1, %s795_s10  ;;  %p643_p0 = scmp.ge.s32.totalorder %s799_s11, 1  ;;  %s799_s11 = sphi %s820_s11, %s12_s11   ;;  %s795_s10 = sphi %s818_s10, %s960_s10   ;;  %s791_s9 = sphi %s816_s9, %s959_s9  }
   0x3   : > { %p26_p1 = scmp.ge.s32.totalorder %s24_s12, 2  ;;  %p136_p2 = scmp.lt.s32.totalorder %s799_s11, 3 }
   0x5   : > { %s962_s12 = smov (%p26_p1, %s24_s12), 0  ;;  %p137_p3 = pnand %p643_p0, %p136_p2 }
   0x6   : > { %v760_v0 = vld [vmem:[%s957_s1] sm:$0xff] (!%p137_p3)   ;;  %s644_s15 = sshll.u32 (!%p137_p3), %s791_s9, 5  ;;  %vm305_vm0 = vcmask (!%p137_p3), 130048   ;;  %vm515_vm1 = vcmask (!%p137_p3), 220160  }
   0x7   : > { %140 = sbr.rel (%p137_p3) target bundleno = 260 (0x104), region = 28  ;;  %p166_p4 = scmp.lt.s32.totalorder (!%p137_p3), %s644_s15, 63  ;;  %700 = vmatprep.subr.bf16.mxu0 (!%p137_p3), %v760_v0  ;;  %734 = vmatprep.subr.bf16.mxu1 (!%p137_p3), %v760_v0 }
   0x8   : > { %701 = vmatpush3.bf16.msra.mxu0 (!%p137_p3), %v760_v0  ;;  %735 = vmatpush3.bf16.msra.mxu1 (!%p137_p3), %v760_v0 }
   0xe   : > { %s964_s15 = smov (!%p166_p4, %s644_s15), 63 }
   0xf   : > { %s645_s16 = sshll.u32 %s964_s15, 2  ;;  %s647_s20 = sshll.u32 %s964_s15, 3 }
  0x10   : > { %s843_s19 = scalar_lea.vmem %s956_s0, %s645_s16  ;;  %s881_s23 = scalar_lea.vmem %s958_s2, %s647_s20 }
  0x11   : > { %v761_v1 = vld [vmem:[%s843_s19] sm:$0xff]   ;;  %v763_v3 = vld [vmem:[%s843_s19 + $0x8] sm:$0xff]   ;;  %v765_v5 = vld [vmem:[%s843_s19 + $0x10] sm:$0xff]  }
  0x12   : > { %v762_v2 = vld [vmem:[%s843_s19 + $0x40] sm:$0xff]   ;;  %702 = vmatprep.mubr.msk.bf16.mxu0 %vm305_vm0, %v761_v1  ;;  %v764_v4 = vld [vmem:[%s843_s19 + $0x48] sm:$0xff]   ;;  %v766_v6 = vld [vmem:[%s843_s19 + $0x50] sm:$0xff]  }
  0x13   : > { %718 = vmatprep.mubr.msk.bf16.mxu1 %vm305_vm0, %v762_v2  ;;  %703 = vmatmul.mubr.msk.bf16.vlgmr.msra.gmra.mrb[0].mxu0 %vm305_vm0, %v763_v3  ;;  %v767_v7 = vld [vmem:[%s843_s19 + $0x18] sm:$0xff]   ;;  %v769_v9 = vld [vmem:[%s843_s19 + $0x20] sm:$0xff]   ;;  %v771_v11 = vld [vmem:[%s843_s19 + $0x28] sm:$0xff]  }
  0x14   : > { %719 = vmatmul.mubr.msk.bf16.vlgmr.msra.gmra.mrb[0].mxu1 %vm305_vm0, %v764_v4  ;;  %706 = vmatprep.mubr.msk.bf16.mxu0 %vm305_vm0, %v765_v5  ;;  %v768_v8 = vld [vmem:[%s843_s19 + $0x58] sm:$0xff]   ;;  %v770_v10 = vld [vmem:[%s843_s19 + $0x60] sm:$0xff]   ;;  %v772_v12 = vld [vmem:[%s843_s19 + $0x68] sm:$0xff]  }
  0x15   : > { %722 = vmatprep.mubr.msk.bf16.mxu1 %vm305_vm0, %v766_v6  ;;  %v773_v13 = vld [vmem:[%s843_s19 + $0x30] sm:$0xff]   ;;  %v775_v15 = vld [vmem:[%s843_s19 + $0x38] sm:$0xff]  }
  0x16   : > { %v774_v14 = vld [vmem:[%s843_s19 + $0x70] sm:$0xff]   ;;  %v776_v16 = vld [vmem:[%s843_s19 + $0x78] sm:$0xff]  }
  0x1b   : > { %707 = vmatmul.mubr.msk.bf16.gmra.mrb[4].mxu0 %vm305_vm0, %v767_v7 }
  0x1c   : > { %723 = vmatmul.mubr.msk.bf16.gmra.mrb[4].mxu1 %vm305_vm0, %v768_v8  ;;  %710 = vmatprep.mubr.msk.bf16.mxu0 %vm305_vm0, %v769_v9 }
  0x1d   : > { %726 = vmatprep.mubr.msk.bf16.mxu1 %vm305_vm0, %v770_v10 }
  0x23   : > { %711 = vmatmul.mubr.msk.bf16.gmra.mrb[8].mxu0 %vm305_vm0, %v771_v11 }
  0x24   : > { %727 = vmatmul.mubr.msk.bf16.gmra.mrb[8].mxu1 %vm305_vm0, %v772_v12  ;;  %714 = vmatprep.mubr.msk.bf16.mxu0 %vm305_vm0, %v773_v13 }
  0x25   : > { %730 = vmatprep.mubr.msk.bf16.mxu1 %vm305_vm0, %v774_v14 }
  0x2b   : > { %715 = vmatmul.mubr.msk.bf16.gmra.mrb[12].mxu0 %vm305_vm0, %v775_v15 }
  0x2c   : > { %731 = vmatmul.mubr.msk.bf16.gmra.mrb[12].mxu1 %vm305_vm0, %v776_v16 }
  0xe6   : > { %v704_v17 = vpop.f32.mrb[0].mxu0 }
  0xe7   : > { %518 = vst.msk [vmem:[%s881_s23 + $0x10] sm:$0xff] %vm515_vm1, %v704_v17  ;;  %v720_v18 = vpop.f32.mrb[0].mxu1  ;;  %v388_v19 = vpop.f32.mrb[1].mxu0 }
  0xe8   : > { %534 = vst.msk [vmem:[%s881_s23 + $0x90] sm:$0xff] %vm515_vm1, %v720_v18  ;;  %516 = vst.msk [vmem:[%s881_s23] sm:$0xff] %vm515_vm1, %v388_v19  ;;  %v452_v20 = vpop.f32.mrb[1].mxu1  ;;  %v705_v21 = vpop.f32.mrb[2].mxu0 }
  0xe9   : > { %532 = vst.msk [vmem:[%s881_s23 + $0x80] sm:$0xff] %vm515_vm1, %v452_v20  ;;  %519 = vst.msk [vmem:[%s881_s23 + $0x18] sm:$0xff] %vm515_vm1, %v705_v21  ;;  %v721_v22 = vpop.f32.mrb[2].mxu1  ;;  %v391_v23 = vpop.f32.mrb[3].mxu0 }
  0xea   : > { %535 = vst.msk [vmem:[%s881_s23 + $0x98] sm:$0xff] %vm515_vm1, %v721_v22  ;;  %517 = vst.msk [vmem:[%s881_s23 + $0x8] sm:$0xff] %vm515_vm1, %v391_v23  ;;  %v455_v24 = vpop.f32.mrb[3].mxu1 }
  0xeb   : > { %533 = vst.msk [vmem:[%s881_s23 + $0x88] sm:$0xff] %vm515_vm1, %v455_v24 }
  0xee   : > { %v708_v25 = vpop.f32.mrb[4].mxu0 }
  0xef   : > { %522 = vst.msk [vmem:[%s881_s23 + $0x30] sm:$0xff] %vm515_vm1, %v708_v25  ;;  %v724_v26 = vpop.f32.mrb[4].mxu1  ;;  %v404_v27 = vpop.f32.mrb[5].mxu0 }
  0xf0   : > { %538 = vst.msk [vmem:[%s881_s23 + $0xb0] sm:$0xff] %vm515_vm1, %v724_v26  ;;  %520 = vst.msk [vmem:[%s881_s23 + $0x20] sm:$0xff] %vm515_vm1, %v404_v27  ;;  %v468_v28 = vpop.f32.mrb[5].mxu1  ;;  %v709_v29 = vpop.f32.mrb[6].mxu0 }
  0xf1   : > { %536 = vst.msk [vmem:[%s881_s23 + $0xa0] sm:$0xff] %vm515_vm1, %v468_v28  ;;  %523 = vst.msk [vmem:[%s881_s23 + $0x38] sm:$0xff] %vm515_vm1, %v709_v29  ;;  %v725_v30 = vpop.f32.mrb[6].mxu1  ;;  %v407_v31 = vpop.f32.mrb[7].mxu0 }
  0xf2   : > { %539 = vst.msk [vmem:[%s881_s23 + $0xb8] sm:$0xff] %vm515_vm1, %v725_v30  ;;  %521 = vst.msk [vmem:[%s881_s23 + $0x28] sm:$0xff] %vm515_vm1, %v407_v31  ;;  %v471_v32 = vpop.f32.mrb[7].mxu1 }
  0xf3   : > { %537 = vst.msk [vmem:[%s881_s23 + $0xa8] sm:$0xff] %vm515_vm1, %v471_v32 }
  0xf6   : > { %v712_v33 = vpop.f32.mrb[8].mxu0 }
  0xf7   : > { %526 = vst.msk [vmem:[%s881_s23 + $0x50] sm:$0xff] %vm515_vm1, %v712_v33  ;;  %v728_v34 = vpop.f32.mrb[8].mxu1  ;;  %v420_v35 = vpop.f32.mrb[9].mxu0 }
  0xf8   : > { %542 = vst.msk [vmem:[%s881_s23 + $0xd0] sm:$0xff] %vm515_vm1, %v728_v34  ;;  %524 = vst.msk [vmem:[%s881_s23 + $0x40] sm:$0xff] %vm515_vm1, %v420_v35  ;;  %v484_v36 = vpop.f32.mrb[9].mxu1  ;;  %v713_v37 = vpop.f32.mrb[10].mxu0 }
  0xf9   : > { %540 = vst.msk [vmem:[%s881_s23 + $0xc0] sm:$0xff] %vm515_vm1, %v484_v36  ;;  %527 = vst.msk [vmem:[%s881_s23 + $0x58] sm:$0xff] %vm515_vm1, %v713_v37  ;;  %v729_v38 = vpop.f32.mrb[10].mxu1  ;;  %v423_v39 = vpop.f32.mrb[11].mxu0 }
  0xfa   : > { %543 = vst.msk [vmem:[%s881_s23 + $0xd8] sm:$0xff] %vm515_vm1, %v729_v38  ;;  %525 = vst.msk [vmem:[%s881_s23 + $0x48] sm:$0xff] %vm515_vm1, %v423_v39  ;;  %v487_v40 = vpop.f32.mrb[11].mxu1 }
  0xfb   : > { %541 = vst.msk [vmem:[%s881_s23 + $0xc8] sm:$0xff] %vm515_vm1, %v487_v40 }
  0xfe   : > { %v716_v41 = vpop.f32.mrb[12].mxu0 }
  0xff   : > { %530 = vst.msk [vmem:[%s881_s23 + $0x70] sm:$0xff] %vm515_vm1, %v716_v41  ;;  %v732_v42 = vpop.f32.mrb[12].mxu1  ;;  %v436_v43 = vpop.f32.mrb[13].mxu0 }
 0x100   : > { %546 = vst.msk [vmem:[%s881_s23 + $0xf0] sm:$0xff] %vm515_vm1, %v732_v42  ;;  %528 = vst.msk [vmem:[%s881_s23 + $0x60] sm:$0xff] %vm515_vm1, %v436_v43  ;;  %v500_v44 = vpop.f32.mrb[13].mxu1  ;;  %v717_v45 = vpop.f32.mrb[14].mxu0 }
 0x101   : > { %544 = vst.msk [vmem:[%s881_s23 + $0xe0] sm:$0xff] %vm515_vm1, %v500_v44  ;;  %531 = vst.msk [vmem:[%s881_s23 + $0x78] sm:$0xff] %vm515_vm1, %v717_v45  ;;  %v733_v46 = vpop.f32.mrb[14].mxu1  ;;  %v439_v47 = vpop.f32.mrb[15].mxu0 }
 0x102   : > { %547 = vst.msk [vmem:[%s881_s23 + $0xf8] sm:$0xff] %vm515_vm1, %v733_v46  ;;  %529 = vst.msk [vmem:[%s881_s23 + $0x68] sm:$0xff] %vm515_vm1, %v439_v47  ;;  %v503_v48 = vpop.f32.mrb[15].mxu1 }
 0x103   : > { %545 = vst.msk [vmem:[%s881_s23 + $0xe8] sm:$0xff] %vm515_vm1, %v503_v48 }
 0x104 PF: > { %s12_s11 = sadd.s32 1, %s799_s11   ;;  %s959_s9 = smov %s795_s10 }
 0x105   : > { %p9_p5 = scmp.ge.s32.totalorder %s12_s11, 4   ;;  %s960_s10 = smov %s962_s12 }
 0x107   :  { %11 = sbr.rel (!%p9_p5) target bundleno = 2 (0x2), region = 61 }

// kernel: _lambda_.13
= control target key start
LH: loop header
LB: loop body
LE: loop exit
PB: predicated region body
PF: predicated region fallthrough
CT: control target
= control target key end

     0   :  { %vm78_vm0 = vcmask 130048   ;;  %s2132_s0 = inlined_call_operand.vmem [shape: f32[512,16], index: 0, kind: input, shape index: {}]   ;;  %s2133_s1 = inlined_call_operand.vmem [shape: f32[1,16], index: 1, kind: input, shape index: {}]   ;;  %s2134_s2 = inlined_call_operand.vmem [shape: f32[1,16], index: 2, kind: input, shape index: {}]   ;;  %s2135_s3 = inlined_call_operand.vmem [shape: f32[512,16], index: 3, kind: output, shape index: {}]  }
   0x1   :  { %v779_v0 = vld [vmem:[%s2132_s0] sm:$0xff]  ;;  %v784_v1 = vld [vmem:[%s2132_s0 + $0x8] sm:$0xff]  ;;  %v789_v2 = vld [vmem:[%s2132_s0 + $0x10] sm:$0xff] }
   0x2   :  { %v794_v3 = vld [vmem:[%s2132_s0 + $0x18] sm:$0xff]  ;;  %v79_v4 = vsel %vm78_vm0, %v779_v0, 0.0  ;;  %v80_v5 = vsel %vm78_vm0, %v784_v1, 0.0  ;;  %v82_v6 = vsel %vm78_vm0, %v789_v2, 0.0  ;;  %v805_v7 = vld [vmem:[%s2132_s0 + $0x20] sm:$0xff]  ;;  %v812_v10 = vld [vmem:[%s2132_s0 + $0x28] sm:$0xff] }
   0x3   :  { %v81_v8 = vadd.f32 %v80_v5, %v79_v4  ;;  %v84_v9 = vsel %vm78_vm0, %v794_v3, 0.0  ;;  %v86_v12 = vsel %vm78_vm0, %v805_v7, 0.0  ;;  %v819_v13 = vld [vmem:[%s2132_s0 + $0x30] sm:$0xff]  ;;  %v88_v15 = vsel %vm78_vm0, %v812_v10, 0.0  ;;  %v826_v16 = vld [vmem:[%s2132_s0 + $0x38] sm:$0xff]  ;;  %v833_v19 = vld [vmem:[%s2132_s0 + $0x40] sm:$0xff] }
   0x4   :  { %v90_v18 = vsel %vm78_vm0, %v819_v13, 0.0  ;;  %v92_v21 = vsel %vm78_vm0, %v826_v16, 0.0  ;;  %v840_v22 = vld [vmem:[%s2132_s0 + $0x48] sm:$0xff]  ;;  %v94_v24 = vsel %vm78_vm0, %v833_v19, 0.0  ;;  %v847_v25 = vld [vmem:[%s2132_s0 + $0x50] sm:$0xff]  ;;  %v854_v28 = vld [vmem:[%s2132_s0 + $0x58] sm:$0xff] }
   0x5   :  { %v83_v11 = vadd.f32 %v82_v6, %v81_v8  ;;  %v96_v27 = vsel %vm78_vm0, %v840_v22, 0.0  ;;  %v98_v30 = vsel %vm78_vm0, %v847_v25, 0.0  ;;  %v861_v31 = vld [vmem:[%s2132_s0 + $0x60] sm:$0xff]  ;;  %v100_v33 = vsel %vm78_vm0, %v854_v28, 0.0  ;;  %v868_v34 = vld [vmem:[%s2132_s0 + $0x68] sm:$0xff]  ;;  %v875_v37 = vld [vmem:[%s2132_s0 + $0x70] sm:$0xff] }
   0x6   :  { %v102_v36 = vsel %vm78_vm0, %v861_v31, 0.0  ;;  %v104_v39 = vsel %vm78_vm0, %v868_v34, 0.0  ;;  %v882_v40 = vld [vmem:[%s2132_s0 + $0x78] sm:$0xff]  ;;  %v106_v42 = vsel %vm78_vm0, %v875_v37, 0.0  ;;  %v889_v43 = vld [vmem:[%s2132_s0 + $0x80] sm:$0xff]  ;;  %v896_v46 = vld [vmem:[%s2132_s0 + $0x88] sm:$0xff] }
   0x7   :  { %v85_v14 = vadd.f32 %v84_v9, %v83_v11  ;;  %v108_v45 = vsel %vm78_vm0, %v882_v40, 0.0  ;;  %v110_v48 = vsel %vm78_vm0, %v889_v43, 0.0  ;;  %v903_v49 = vld [vmem:[%s2132_s0 + $0x90] sm:$0xff]  ;;  %v112_v51 = vsel %vm78_vm0, %v896_v46, 0.0  ;;  %v910_v52 = vld [vmem:[%s2132_s0 + $0x98] sm:$0xff]  ;;  %v917_v55 = vld [vmem:[%s2132_s0 + $0xa0] sm:$0xff] }
   0x8   :  { %v114_v54 = vsel %vm78_vm0, %v903_v49, 0.0  ;;  %v116_v57 = vsel %vm78_vm0, %v910_v52, 0.0  ;;  %v924_v58 = vld [vmem:[%s2132_s0 + $0xa8] sm:$0xff]  ;;  %v118_v60 = vsel %vm78_vm0, %v917_v55, 0.0  ;;  %v931_v61 = vld [vmem:[%s2132_s0 + $0xb0] sm:$0xff]  ;;  %v938_v4 = vld [vmem:[%s2132_s0 + $0xb8] sm:$0xff] }
   0x9   :  { %v87_v17 = vadd.f32 %v86_v12, %v85_v14  ;;  %v120_v63 = vsel %vm78_vm0, %v924_v58, 0.0  ;;  %v122_v6 = vsel %vm78_vm0, %v931_v61, 0.0  ;;  %v945_v8 = vld [vmem:[%s2132_s0 + $0xc0] sm:$0xff]  ;;  %v124_v11 = vsel %vm78_vm0, %v938_v4, 0.0  ;;  %v952_v12 = vld [vmem:[%s2132_s0 + $0xc8] sm:$0xff] }
   0xb   :  { %v89_v20 = vadd.f32 %v88_v15, %v87_v17  ;;  %v126_v15 = vsel %vm78_vm0, %v945_v8, 0.0  ;;  %v959_v17 = vld [vmem:[%s2132_s0 + $0xd0] sm:$0xff] }
   0xd   :  { %v91_v23 = vadd.f32 %v90_v18, %v89_v20  ;;  %v128_v20 = vsel %vm78_vm0, %v952_v12, 0.0 }
   0xf   :  { %v93_v26 = vadd.f32 %v92_v21, %v91_v23  ;;  %v966_v21 = vld [vmem:[%s2132_s0 + $0xd8] sm:$0xff] }
  0x11   :  { %v95_v29 = vadd.f32 %v94_v24, %v93_v26  ;;  %v130_v24 = vsel %vm78_vm0, %v959_v17, 0.0  ;;  %v973_v26 = vld [vmem:[%s2132_s0 + $0xe0] sm:$0xff] }
  0x13   :  { %v97_v32 = vadd.f32 %v96_v27, %v95_v29  ;;  %v132_v29 = vsel %vm78_vm0, %v966_v21, 0.0 }
  0x15   :  { %v99_v35 = vadd.f32 %v98_v30, %v97_v32  ;;  %v980_v30 = vld [vmem:[%s2132_s0 + $0xe8] sm:$0xff] }
  0x17   :  { %v101_v38 = vadd.f32 %v100_v33, %v99_v35  ;;  %v134_v33 = vsel %vm78_vm0, %v973_v26, 0.0  ;;  %v987_v35 = vld [vmem:[%s2132_s0 + $0xf0] sm:$0xff] }
  0x19   :  { %v103_v41 = vadd.f32 %v102_v36, %v101_v38  ;;  %v136_v38 = vsel %vm78_vm0, %v980_v30, 0.0 }
  0x1b   :  { %v105_v44 = vadd.f32 %v104_v39, %v103_v41  ;;  %v994_v39 = vld [vmem:[%s2132_s0 + $0xf8] sm:$0xff] }
  0x1d   :  { %v107_v47 = vadd.f32 %v106_v42, %v105_v44  ;;  %v138_v42 = vsel %vm78_vm0, %v987_v35, 0.0  ;;  %v1001_v44 = vld [vmem:[%s2132_s0 + $0x100] sm:$0xff] }
  0x1f   :  { %v109_v50 = vadd.f32 %v108_v45, %v107_v47  ;;  %v140_v47 = vsel %vm78_vm0, %v994_v39, 0.0 }
  0x21   :  { %v111_v53 = vadd.f32 %v110_v48, %v109_v50  ;;  %v1008_v48 = vld [vmem:[%s2132_s0 + $0x108] sm:$0xff] }
  0x23   :  { %v113_v56 = vadd.f32 %v112_v51, %v111_v53  ;;  %v142_v51 = vsel %vm78_vm0, %v1001_v44, 0.0  ;;  %v1015_v53 = vld [vmem:[%s2132_s0 + $0x110] sm:$0xff] }
  0x25   :  { %v115_v59 = vadd.f32 %v114_v54, %v113_v56  ;;  %v144_v56 = vsel %vm78_vm0, %v1008_v48, 0.0 }
  0x27   :  { %v117_v62 = vadd.f32 %v116_v57, %v115_v59  ;;  %v1022_v57 = vld [vmem:[%s2132_s0 + $0x118] sm:$0xff] }
  0x29   :  { %v119_v5 = vadd.f32 %v118_v60, %v117_v62  ;;  %v146_v60 = vsel %vm78_vm0, %v1015_v53, 0.0  ;;  %v1029_v62 = vld [vmem:[%s2132_s0 + $0x120] sm:$0xff] }
  0x2b   :  { %v121_v9 = vadd.f32 %v120_v63, %v119_v5  ;;  %v148_v5 = vsel %vm78_vm0, %v1022_v57, 0.0 }
  0x2d   :  { %v123_v14 = vadd.f32 %v122_v6, %v121_v9  ;;  %v1036_v6 = vld [vmem:[%s2132_s0 + $0x128] sm:$0xff] }
  0x2f   :  { %v125_v18 = vadd.f32 %v124_v11, %v123_v14  ;;  %v150_v11 = vsel %vm78_vm0, %v1029_v62, 0.0  ;;  %v1043_v14 = vld [vmem:[%s2132_s0 + $0x130] sm:$0xff] }
  0x31   :  { %v127_v23 = vadd.f32 %v126_v15, %v125_v18  ;;  %v152_v18 = vsel %vm78_vm0, %v1036_v6, 0.0 }
  0x33   :  { %v129_v27 = vadd.f32 %v128_v20, %v127_v23  ;;  %v1050_v20 = vld [vmem:[%s2132_s0 + $0x138] sm:$0xff] }
  0x35   :  { %v131_v32 = vadd.f32 %v130_v24, %v129_v27  ;;  %v154_v24 = vsel %vm78_vm0, %v1043_v14, 0.0  ;;  %v1057_v27 = vld [vmem:[%s2132_s0 + $0x140] sm:$0xff] }
  0x37   :  { %v133_v36 = vadd.f32 %v132_v29, %v131_v32  ;;  %v156_v32 = vsel %vm78_vm0, %v1050_v20, 0.0 }
  0x39   :  { %v135_v41 = vadd.f32 %v134_v33, %v133_v36  ;;  %v1064_v33 = vld [vmem:[%s2132_s0 + $0x148] sm:$0xff] }
  0x3b   :  { %v137_v45 = vadd.f32 %v136_v38, %v135_v41  ;;  %v158_v38 = vsel %vm78_vm0, %v1057_v27, 0.0  ;;  %v1071_v41 = vld [vmem:[%s2132_s0 + $0x150] sm:$0xff] }
  0x3d   :  { %v139_v50 = vadd.f32 %v138_v42, %v137_v45  ;;  %v160_v45 = vsel %vm78_vm0, %v1064_v33, 0.0 }
  0x3f   :  { %v141_v54 = vadd.f32 %v140_v47, %v139_v50  ;;  %v1078_v47 = vld [vmem:[%s2132_s0 + $0x158] sm:$0xff] }
  0x41   :  { %v143_v59 = vadd.f32 %v142_v51, %v141_v54  ;;  %v162_v51 = vsel %vm78_vm0, %v1071_v41, 0.0  ;;  %v1085_v54 = vld [vmem:[%s2132_s0 + $0x160] sm:$0xff] }
  0x43   :  { %v145_v63 = vadd.f32 %v144_v56, %v143_v59  ;;  %v164_v59 = vsel %vm78_vm0, %v1078_v47, 0.0 }
  0x45   :  { %v147_v9 = vadd.f32 %v146_v60, %v145_v63  ;;  %v1092_v60 = vld [vmem:[%s2132_s0 + $0x168] sm:$0xff] }
  0x47   :  { %v149_v15 = vadd.f32 %v148_v5, %v147_v9  ;;  %v166_v5 = vsel %vm78_vm0, %v1085_v54, 0.0  ;;  %v1099_v9 = vld [vmem:[%s2132_s0 + $0x170] sm:$0xff] }
  0x49   :  { %v151_v23 = vadd.f32 %v150_v11, %v149_v15  ;;  %v168_v15 = vsel %vm78_vm0, %v1092_v60, 0.0 }
  0x4b   :  { %v153_v29 = vadd.f32 %v152_v18, %v151_v23  ;;  %v1106_v18 = vld [vmem:[%s2132_s0 + $0x178] sm:$0xff] }
  0x4d   :  { %v155_v36 = vadd.f32 %v154_v24, %v153_v29  ;;  %v170_v24 = vsel %vm78_vm0, %v1099_v9, 0.0  ;;  %v1113_v29 = vld [vmem:[%s2132_s0 + $0x180] sm:$0xff] }
  0x4f   :  { %v157_v42 = vadd.f32 %v156_v32, %v155_v36  ;;  %v172_v36 = vsel %vm78_vm0, %v1106_v18, 0.0 }
  0x51   :  { %v159_v50 = vadd.f32 %v158_v38, %v157_v42  ;;  %v1120_v38 = vld [vmem:[%s2132_s0 + $0x188] sm:$0xff] }
  0x52   :  { %2172 = vst [vmem:[#allocation2_spill] sm:$0xff] %v1120_v38 }
  0x53   :  { %v161_v56 = vadd.f32 %v160_v45, %v159_v50  ;;  %v174_v45 = vsel %vm78_vm0, %v1113_v29, 0.0  ;;  %v1127_v50 = vld [vmem:[%s2132_s0 + $0x190] sm:$0xff] }
  0x54   :  { %2173 = vst [vmem:[#allocation3_spill] sm:$0xff] %v1127_v50 }
  0x55   :  { %v163_v63 = vadd.f32 %v162_v51, %v161_v56  ;;  %v176_v56 = vsel %vm78_vm0, %v1120_v38, 0.0 }
  0x57   :  { %v165_v11 = vadd.f32 %v164_v59, %v163_v63  ;;  %v1134_v59 = vld [vmem:[%s2132_s0 + $0x198] sm:$0xff] }
  0x58   :  { %2174 = vst [vmem:[#allocation4_spill] sm:$0xff] %v1134_v59 }
  0x59   :  { %v167_v23 = vadd.f32 %v166_v5, %v165_v11  ;;  %v178_v5 = vsel %vm78_vm0, %v1127_v50, 0.0  ;;  %v1141_v11 = vld [vmem:[%s2132_s0 + $0x1a0] sm:$0xff] }
  0x5a   :  { %2175 = vst [vmem:[#allocation5_spill] sm:$0xff] %v1141_v11 }
  0x5b   :  { %v169_v32 = vadd.f32 %v168_v15, %v167_v23  ;;  %v180_v23 = vsel %vm78_vm0, %v1134_v59, 0.0 }
  0x5d   :  { %v171_v42 = vadd.f32 %v170_v24, %v169_v32  ;;  %v1148_v24 = vld [vmem:[%s2132_s0 + $0x1a8] sm:$0xff] }
  0x5e   :  { %2176 = vst [vmem:[#allocation6_spill] sm:$0xff] %v1148_v24 }
  0x5f   :  { %v173_v51 = vadd.f32 %v172_v36, %v171_v42  ;;  %v182_v36 = vsel %vm78_vm0, %v1141_v11, 0.0  ;;  %v1155_v42 = vld [vmem:[%s2132_s0 + $0x1b0] sm:$0xff] }
  0x60   :  { %2177 = vst [vmem:[#allocation7_spill] sm:$0xff] %v1155_v42 }
  0x61   :  { %v175_v63 = vadd.f32 %v174_v45, %v173_v51  ;;  %v184_v51 = vsel %vm78_vm0, %v1148_v24, 0.0 }
  0x63   :  { %v177_v15 = vadd.f32 %v176_v56, %v175_v63  ;;  %v1162_v56 = vld [vmem:[%s2132_s0 + $0x1b8] sm:$0xff] }
  0x64   :  { %2178 = vst [vmem:[#allocation8_spill] sm:$0xff] %v1162_v56 }
  0x65   :  { %v179_v32 = vadd.f32 %v178_v5, %v177_v15  ;;  %v186_v5 = vsel %vm78_vm0, %v1155_v42, 0.0  ;;  %v1169_v15 = vld [vmem:[%s2132_s0 + $0x1c0] sm:$0xff] }
  0x66   :  { %2179 = vst [vmem:[#allocation9_spill] sm:$0xff] %v1169_v15 }
  0x67   :  { %v181_v45 = vadd.f32 %v180_v23, %v179_v32  ;;  %v188_v23 = vsel %vm78_vm0, %v1162_v56, 0.0  ;;  %v1176_v32 = vld [vmem:[%s2132_s0 + $0x1c8] sm:$0xff] }
  0x68   :  { %2180 = vst [vmem:[#allocation10_spill] sm:$0xff] %v1176_v32 }
  0x69   :  { %v183_v63 = vadd.f32 %v182_v36, %v181_v45  ;;  %v190_v36 = vsel %vm78_vm0, %v1169_v15, 0.0  ;;  %v1183_v45 = vld [vmem:[%s2132_s0 + $0x1d0] sm:$0xff] }
  0x6a   :  { %2181 = vst [vmem:[#allocation11_spill] sm:$0xff] %v1183_v45 }
  0x6b   :  { %v185_v11 = vadd.f32 %v184_v51, %v183_v63  ;;  %v192_v51 = vsel %vm78_vm0, %v1176_v32, 0.0  ;;  %v1190_v63 = vld [vmem:[%s2132_s0 + $0x1d8] sm:$0xff] }
  0x6c   :  { %2182 = vst [vmem:[#allocation12_spill] sm:$0xff] %v1190_v63  ;;  %v196_v15 = vsel %vm78_vm0, %v1190_v63, 0.0 }
  0x6d   :  { %v187_v24 = vadd.f32 %v186_v5, %v185_v11  ;;  %v194_v11 = vsel %vm78_vm0, %v1183_v45, 0.0 }
  0x6f   :  { %v189_v42 = vadd.f32 %v188_v23, %v187_v24  ;;  %v1199_v24 = vld [vmem:[%s2132_s0 + $0x1e0] sm:$0xff] }
  0x70   :  { %2183 = vst [vmem:[#allocation13_spill] sm:$0xff] %v1199_v24  ;;  %v198_v59 = vsel %vm78_vm0, %v1199_v24, 0.0 }
  0x71   :  { %v191_v56 = vadd.f32 %v190_v36, %v189_v42  ;;  %v1206_v42 = vld [vmem:[%s2132_s0 + $0x1e8] sm:$0xff] }
  0x72   :  { %2184 = vst [vmem:[#allocation14_spill] sm:$0xff] %v1206_v42 }
  0x73   :  { %v193_v5 = vadd.f32 %v192_v51, %v191_v56  ;;  %v200_v56 = vsel %vm78_vm0, %v1206_v42, 0.0  ;;  %v1213_v51 = vld [vmem:[%s2132_s0 + $0x1f0] sm:$0xff] }
  0x74   :  { %2185 = vst [vmem:[#allocation15_spill] sm:$0xff] %v1213_v51 }
  0x75   :  { %v195_v23 = vadd.f32 %v194_v11, %v193_v5  ;;  %v1220_v11 = vld [vmem:[%s2132_s0 + $0x1f8] sm:$0xff] }
  0x77   :  { %v197_v32 = vadd.f32 %v196_v15, %v195_v23  ;;  %v202_v15 = vsel %vm78_vm0, %v1213_v51, 0.0 }
  0x79   :  { %v199_v36 = vadd.f32 %v198_v59, %v197_v32  ;;  %v204_v59 = vsel %vm78_vm0, %v1220_v11, 0.0 }
  0x7b   :  { %v201_v63 = vadd.f32 %v200_v56, %v199_v36 }
  0x7d   :  { %v203_v5 = vadd.f32 %v202_v15, %v201_v63 }
  0x7f   :  { %v205_v32 = vadd.f32 %v204_v59, %v203_v5 }
  0x81   :  { %v206_v23 = vrot.slane %v205_v32, 4 }
  0x83   :  { %v207_v42 = vadd.f32 %v206_v23, %v205_v32 }
  0x85   :  { %v208_v24 = vrot.slane %v207_v42, 2 }
  0x87   :  { %v209_v45 = vadd.f32 %v208_v24, %v207_v42 }
  0x89   :  { %v210_v50 = vrot.slane %v209_v45, 1 }
  0x8b   :  { %v211_v38 = vadd.f32 %v210_v50, %v209_v45 }
  0x8d   :  { %v1224_v36 = vmul.f32 0.001953125, %v211_v38 }
  0x8f   :  { %v1228_v56 = vsub.f32 %v779_v0, %v1224_v36  ;;  %v1232_v51 = vsub.f32 %v784_v1, %v1224_v36  ;;  %v1236_v63 = vsub.f32 %v789_v2, %v1224_v36  ;;  %v1240_v15 = vsub.f32 %v794_v3, %v1224_v36 }
  0x90   :  { %v1244_v38 = vsub.f32 %v805_v7, %v1224_v36  ;;  %v1254_v2 = vsub.f32 %v812_v10, %v1224_v36  ;;  %v1260_v7 = vsub.f32 %v819_v13, %v1224_v36  ;;  %v1269_v10 = vsub.f32 %v826_v16, %v1224_v36 }
  0x91   :  { %v278_v0 = vmul.f32 %v1228_v56, %v1228_v56  ;;  %v279_v50 = vmul.f32 %v1232_v51, %v1232_v51  ;;  %v280_v1 = vmul.f32 %v1236_v63, %v1236_v63  ;;  %v281_v3 = vmul.f32 %v1240_v15, %v1240_v15 }
  0x92   :  { %2186 = vst [vmem:[#allocation16_spill] sm:$0xff] %v1244_v38  ;;  %v282_v45 = vmul.f32 %v1244_v38, %v1244_v38  ;;  %v283_v32 = vmul.f32 %v1254_v2, %v1254_v2  ;;  %v1276_v38 = vsub.f32 %v833_v19, %v1224_v36  ;;  %v1283_v16 = vsub.f32 %v840_v22, %v1224_v36 }
  0x93   :  { %v342_v24 = vsel %vm78_vm0, %v278_v0, 0.0  ;;  %v343_v42 = vsel %vm78_vm0, %v279_v50, 0.0  ;;  %v345_v5 = vsel %vm78_vm0, %v280_v1, 0.0  ;;  %v347_v13 = vsel %vm78_vm0, %v281_v3, 0.0 }
  0x94   :  { %v344_v59 = vadd.f32 %v343_v42, %v342_v24  ;;  %v284_v0 = vmul.f32 %v1260_v7, %v1260_v7  ;;  %v349_v50 = vsel %vm78_vm0, %v282_v45, 0.0  ;;  %v285_v24 = vmul.f32 %v1269_v10, %v1269_v10 }
  0x95   :  { %v351_v3 = vsel %vm78_vm0, %v283_v32, 0.0  ;;  %v1290_v19 = vsub.f32 %v847_v25, %v1224_v36  ;;  %v1297_v22 = vsub.f32 %v854_v28, %v1224_v36  ;;  %v1304_v25 = vsub.f32 %v861_v31, %v1224_v36 }
  0x96   :  { %v346_v23 = vadd.f32 %v345_v5, %v344_v59  ;;  %v286_v5 = vmul.f32 %v1276_v38, %v1276_v38  ;;  %v353_v45 = vsel %vm78_vm0, %v284_v0, 0.0  ;;  %v355_v32 = vsel %vm78_vm0, %v285_v24, 0.0 }
  0x97   :  { %v1311_v28 = vsub.f32 %v868_v34, %v1224_v36  ;;  %v1318_v31 = vsub.f32 %v875_v37, %v1224_v36  ;;  %v1325_v34 = vsub.f32 %v882_v40, %v1224_v36  ;;  %v1332_v37 = vsub.f32 %v889_v43, %v1224_v36 }
  0x98   :  { %v348_v1 = vadd.f32 %v347_v13, %v346_v23  ;;  %v287_v13 = vmul.f32 %v1283_v16, %v1283_v16  ;;  %v357_v0 = vsel %vm78_vm0, %v286_v5, 0.0  ;;  %v1339_v40 = vsub.f32 %v896_v46, %v1224_v36 }
  0x99   :  { %v1346_v43 = vsub.f32 %v903_v49, %v1224_v36  ;;  %v1353_v46 = vsub.f32 %v910_v52, %v1224_v36  ;;  %v1360_v49 = vsub.f32 %v917_v55, %v1224_v36  ;;  %v1367_v52 = vsub.f32 %v924_v58, %v1224_v36 }
  0x9a   :  { %v350_v42 = vadd.f32 %v349_v50, %v348_v1  ;;  %v288_v50 = vmul.f32 %v1290_v19, %v1290_v19  ;;  %v359_v24 = vsel %vm78_vm0, %v287_v13, 0.0  ;;  %v1374_v55 = vsub.f32 %v931_v61, %v1224_v36 }
  0x9b   :  { %v1381_v58 = vsub.f32 %v938_v4, %v1224_v36  ;;  %v1388_v61 = vsub.f32 %v945_v8, %v1224_v36  ;;  %v1395_v4 = vsub.f32 %v952_v12, %v1224_v36  ;;  %v1402_v8 = vsub.f32 %v959_v17, %v1224_v36 }
  0x9c   :  { %v352_v59 = vadd.f32 %v351_v3, %v350_v42  ;;  %v289_v3 = vmul.f32 %v1297_v22, %v1297_v22  ;;  %v361_v5 = vsel %vm78_vm0, %v288_v50, 0.0  ;;  %v1409_v12 = vsub.f32 %v966_v21, %v1224_v36 }
  0x9d   :  { %v1416_v17 = vsub.f32 %v973_v26, %v1224_v36  ;;  %v1423_v21 = vsub.f32 %v980_v30, %v1224_v36  ;;  %v1430_v26 = vsub.f32 %v987_v35, %v1224_v36  ;;  %v1437_v30 = vsub.f32 %v994_v39, %v1224_v36 }
  0x9e   :  { %v354_v23 = vadd.f32 %v353_v45, %v352_v59  ;;  %v290_v45 = vmul.f32 %v1304_v25, %v1304_v25  ;;  %v363_v13 = vsel %vm78_vm0, %v289_v3, 0.0  ;;  %v1444_v35 = vsub.f32 %v1001_v44, %v1224_v36 }
  0x9f   :  { %v1451_v39 = vsub.f32 %v1008_v48, %v1224_v36  ;;  %v1458_v44 = vsub.f32 %v1015_v53, %v1224_v36  ;;  %v1465_v48 = vsub.f32 %v1022_v57, %v1224_v36  ;;  %v1472_v53 = vsub.f32 %v1029_v62, %v1224_v36 }
  0xa0   :  { %v356_v1 = vadd.f32 %v355_v32, %v354_v23  ;;  %v291_v32 = vmul.f32 %v1311_v28, %v1311_v28  ;;  %v365_v50 = vsel %vm78_vm0, %v290_v45, 0.0  ;;  %v1479_v57 = vsub.f32 %v1036_v6, %v1224_v36 }
  0xa1   :  { %v1486_v62 = vsub.f32 %v1043_v14, %v1224_v36  ;;  %v1493_v6 = vsub.f32 %v1050_v20, %v1224_v36  ;;  %v1500_v14 = vsub.f32 %v1057_v27, %v1224_v36  ;;  %v1507_v20 = vsub.f32 %v1064_v33, %v1224_v36 }
  0xa2   :  { %v358_v42 = vadd.f32 %v357_v0, %v356_v1  ;;  %v292_v0 = vmul.f32 %v1318_v31, %v1318_v31  ;;  %v367_v3 = vsel %vm78_vm0, %v291_v32, 0.0  ;;  %v1514_v27 = vsub.f32 %v1071_v41, %v1224_v36 }
  0xa3   :  { %v1521_v33 = vsub.f32 %v1078_v47, %v1224_v36  ;;  %v1528_v41 = vsub.f32 %v1085_v54, %v1224_v36  ;;  %v1535_v47 = vsub.f32 %v1092_v60, %v1224_v36  ;;  %v1542_v54 = vsub.f32 %v1099_v9, %v1224_v36 }
  0xa4   :  { %v360_v59 = vadd.f32 %v359_v24, %v358_v42  ;;  %v293_v24 = vmul.f32 %v1325_v34, %v1325_v34  ;;  %v369_v45 = vsel %vm78_vm0, %v292_v0, 0.0  ;;  %v1549_v60 = vsub.f32 %v1106_v18, %v1224_v36 }
  0xa5   :  { %2187 = vst [vmem:[#allocation17_spill] sm:$0xff] %v1521_v33  ;;  %2188 = vst [vmem:[#allocation18_spill] sm:$0xff] %v1528_v41  ;;  %v1556_v9 = vsub.f32 %v1113_v29, %v1224_v36 }
  0xa6   :  { %v362_v23 = vadd.f32 %v361_v5, %v360_v59  ;;  %v294_v5 = vmul.f32 %v1332_v37, %v1332_v37  ;;  %v371_v32 = vsel %vm78_vm0, %v293_v24, 0.0  ;;  %2189 = vst [vmem:[#allocation19_spill] sm:$0xff] %v1535_v47  ;;  %2190 = vst [vmem:[#allocation20_spill] sm:$0xff] %v1542_v54 }
  0xa7   :  { %2191 = vst [vmem:[#allocation21_spill] sm:$0xff] %v1549_v60  ;;  %2192 = vst [vmem:[#allocation22_spill] sm:$0xff] %v1556_v9 }
  0xa8   :  { %v364_v1 = vadd.f32 %v363_v13, %v362_v23  ;;  %v295_v13 = vmul.f32 %v1339_v40, %v1339_v40  ;;  %v373_v0 = vsel %vm78_vm0, %v294_v5, 0.0 }
  0xaa   :  { %v366_v42 = vadd.f32 %v365_v50, %v364_v1  ;;  %v296_v50 = vmul.f32 %v1346_v43, %v1346_v43  ;;  %v375_v24 = vsel %vm78_vm0, %v295_v13, 0.0 }
  0xac   :  { %v368_v59 = vadd.f32 %v367_v3, %v366_v42  ;;  %v297_v3 = vmul.f32 %v1353_v46, %v1353_v46  ;;  %v377_v5 = vsel %vm78_vm0, %v296_v50, 0.0 }
  0xae   :  { %v370_v23 = vadd.f32 %v369_v45, %v368_v59  ;;  %v298_v45 = vmul.f32 %v1360_v49, %v1360_v49  ;;  %v379_v13 = vsel %vm78_vm0, %v297_v3, 0.0 }
  0xb0   :  { %v372_v1 = vadd.f32 %v371_v32, %v370_v23  ;;  %v299_v32 = vmul.f32 %v1367_v52, %v1367_v52  ;;  %v381_v50 = vsel %vm78_vm0, %v298_v45, 0.0 }
  0xb2   :  { %v374_v42 = vadd.f32 %v373_v0, %v372_v1  ;;  %v300_v0 = vmul.f32 %v1374_v55, %v1374_v55  ;;  %v383_v3 = vsel %vm78_vm0, %v299_v32, 0.0 }
  0xb4   :  { %v376_v59 = vadd.f32 %v375_v24, %v374_v42  ;;  %v301_v24 = vmul.f32 %v1381_v58, %v1381_v58  ;;  %v385_v45 = vsel %vm78_vm0, %v300_v0, 0.0 }
  0xb6   :  { %v378_v23 = vadd.f32 %v377_v5, %v376_v59  ;;  %v302_v5 = vmul.f32 %v1388_v61, %v1388_v61  ;;  %v387_v32 = vsel %vm78_vm0, %v301_v24, 0.0 }
  0xb8   :  { %v380_v1 = vadd.f32 %v379_v13, %v378_v23  ;;  %v303_v13 = vmul.f32 %v1395_v4, %v1395_v4  ;;  %v389_v0 = vsel %vm78_vm0, %v302_v5, 0.0 }
  0xba   :  { %v382_v42 = vadd.f32 %v381_v50, %v380_v1  ;;  %v304_v50 = vmul.f32 %v1402_v8, %v1402_v8  ;;  %v391_v24 = vsel %vm78_vm0, %v303_v13, 0.0 }
  0xbc   :  { %v384_v59 = vadd.f32 %v383_v3, %v382_v42  ;;  %v305_v3 = vmul.f32 %v1409_v12, %v1409_v12  ;;  %v393_v5 = vsel %vm78_vm0, %v304_v50, 0.0 }
  0xbe   :  { %v386_v23 = vadd.f32 %v385_v45, %v384_v59  ;;  %v306_v45 = vmul.f32 %v1416_v17, %v1416_v17  ;;  %v395_v13 = vsel %vm78_vm0, %v305_v3, 0.0 }
  0xc0   :  { %v388_v1 = vadd.f32 %v387_v32, %v386_v23  ;;  %v307_v32 = vmul.f32 %v1423_v21, %v1423_v21  ;;  %v397_v50 = vsel %vm78_vm0, %v306_v45, 0.0 }
  0xc2   :  { %v390_v42 = vadd.f32 %v389_v0, %v388_v1  ;;  %v308_v0 = vmul.f32 %v1430_v26, %v1430_v26  ;;  %v399_v3 = vsel %vm78_vm0, %v307_v32, 0.0 }
  0xc4   :  { %v392_v59 = vadd.f32 %v391_v24, %v390_v42  ;;  %v309_v24 = vmul.f32 %v1437_v30, %v1437_v30  ;;  %v401_v45 = vsel %vm78_vm0, %v308_v0, 0.0 }
  0xc6   :  { %v394_v23 = vadd.f32 %v393_v5, %v392_v59  ;;  %v310_v5 = vmul.f32 %v1444_v35, %v1444_v35  ;;  %v403_v32 = vsel %vm78_vm0, %v309_v24, 0.0 }
  0xc8   :  { %v396_v1 = vadd.f32 %v395_v13, %v394_v23  ;;  %v311_v13 = vmul.f32 %v1451_v39, %v1451_v39  ;;  %v405_v0 = vsel %vm78_vm0, %v310_v5, 0.0 }
  0xca   :  { %v398_v42 = vadd.f32 %v397_v50, %v396_v1  ;;  %v312_v50 = vmul.f32 %v1458_v44, %v1458_v44  ;;  %v407_v24 = vsel %vm78_vm0, %v311_v13, 0.0 }
  0xcc   :  { %v400_v59 = vadd.f32 %v399_v3, %v398_v42  ;;  %v313_v3 = vmul.f32 %v1465_v48, %v1465_v48  ;;  %v409_v5 = vsel %vm78_vm0, %v312_v50, 0.0 }
  0xce   :  { %v402_v23 = vadd.f32 %v401_v45, %v400_v59  ;;  %v314_v45 = vmul.f32 %v1472_v53, %v1472_v53  ;;  %v411_v13 = vsel %vm78_vm0, %v313_v3, 0.0 }
  0xd0   :  { %v404_v1 = vadd.f32 %v403_v32, %v402_v23  ;;  %v315_v32 = vmul.f32 %v1479_v57, %v1479_v57  ;;  %v413_v50 = vsel %vm78_vm0, %v314_v45, 0.0 }
  0xd2   :  { %v406_v42 = vadd.f32 %v405_v0, %v404_v1  ;;  %v316_v0 = vmul.f32 %v1486_v62, %v1486_v62  ;;  %v415_v3 = vsel %vm78_vm0, %v315_v32, 0.0 }
  0xd4   :  { %v408_v59 = vadd.f32 %v407_v24, %v406_v42  ;;  %v317_v24 = vmul.f32 %v1493_v6, %v1493_v6  ;;  %v417_v45 = vsel %vm78_vm0, %v316_v0, 0.0 }
  0xd6   :  { %v410_v23 = vadd.f32 %v409_v5, %v408_v59  ;;  %v318_v5 = vmul.f32 %v1500_v14, %v1500_v14  ;;  %v419_v32 = vsel %vm78_vm0, %v317_v24, 0.0 }
  0xd8   :  { %v412_v1 = vadd.f32 %v411_v13, %v410_v23  ;;  %v319_v13 = vmul.f32 %v1507_v20, %v1507_v20  ;;  %v421_v0 = vsel %vm78_vm0, %v318_v5, 0.0 }
  0xda   :  { %v414_v42 = vadd.f32 %v413_v50, %v412_v1  ;;  %v320_v50 = vmul.f32 %v1514_v27, %v1514_v27  ;;  %v423_v24 = vsel %vm78_vm0, %v319_v13, 0.0 }
  0xdc   :  { %v416_v59 = vadd.f32 %v415_v3, %v414_v42  ;;  %v321_v3 = vmul.f32 %v1521_v33, %v1521_v33  ;;  %v425_v5 = vsel %vm78_vm0, %v320_v50, 0.0 }
  0xde   :  { %v418_v23 = vadd.f32 %v417_v45, %v416_v59  ;;  %v322_v45 = vmul.f32 %v1528_v41, %v1528_v41  ;;  %v427_v13 = vsel %vm78_vm0, %v321_v3, 0.0 }
  0xe0   :  { %v420_v1 = vadd.f32 %v419_v32, %v418_v23  ;;  %v323_v32 = vmul.f32 %v1535_v47, %v1535_v47  ;;  %v429_v50 = vsel %vm78_vm0, %v322_v45, 0.0 }
  0xe2   :  { %v422_v42 = vadd.f32 %v421_v0, %v420_v1  ;;  %v324_v0 = vmul.f32 %v1542_v54, %v1542_v54  ;;  %v431_v3 = vsel %vm78_vm0, %v323_v32, 0.0  ;;  %v326_v54 = vmul.f32 %v1556_v9, %v1556_v9 }
  0xe4   :  { %v424_v59 = vadd.f32 %v423_v24, %v422_v42  ;;  %v2193_v24 = vld [vmem:[#allocation2_spill] sm:$0xff]  ;;  %v325_v42 = vmul.f32 %v1549_v60, %v1549_v60  ;;  %v433_v45 = vsel %vm78_vm0, %v324_v0, 0.0  ;;  %v437_v0 = vsel %vm78_vm0, %v326_v54, 0.0 }
  0xe5   :  { %v1563_v18 = vsub.f32 %v2193_v24, %v1224_v36 }
  0xe6   :  { %v426_v23 = vadd.f32 %v425_v5, %v424_v59  ;;  %v2195_v59 = vld [vmem:[#allocation3_spill] sm:$0xff]  ;;  %v435_v32 = vsel %vm78_vm0, %v325_v42, 0.0 }
  0xe7   :  { %2194 = vst [vmem:[#allocation2_spill] sm:$0xff] %v1563_v18  ;;  %v1570_v29 = vsub.f32 %v2195_v59, %v1224_v36  ;;  %v327_v60 = vmul.f32 %v1563_v18, %v1563_v18 }
  0xe8   :  { %v428_v1 = vadd.f32 %v427_v13, %v426_v23  ;;  %v2197_v23 = vld [vmem:[#allocation4_spill] sm:$0xff] }
  0xe9   :  { %2196 = vst [vmem:[#allocation3_spill] sm:$0xff] %v1570_v29  ;;  %v1577_v24 = vsub.f32 %v2197_v23, %v1224_v36  ;;  %v328_v9 = vmul.f32 %v1570_v29, %v1570_v29  ;;  %v439_v42 = vsel %vm78_vm0, %v327_v60, 0.0 }
  0xea   :  { %v430_v5 = vadd.f32 %v429_v50, %v428_v1  ;;  %v2199_v1 = vld [vmem:[#allocation5_spill] sm:$0xff] }
  0xeb   :  { %2198 = vst [vmem:[#allocation4_spill] sm:$0xff] %v1577_v24  ;;  %v1584_v59 = vsub.f32 %v2199_v1, %v1224_v36  ;;  %v329_v18 = vmul.f32 %v1577_v24, %v1577_v24  ;;  %v441_v54 = vsel %vm78_vm0, %v328_v9, 0.0 }
  0xec   :  { %v432_v13 = vadd.f32 %v431_v3, %v430_v5  ;;  %v2201_v5 = vld [vmem:[#allocation6_spill] sm:$0xff] }
  0xed   :  { %2200 = vst [vmem:[#allocation5_spill] sm:$0xff] %v1584_v59  ;;  %v1591_v23 = vsub.f32 %v2201_v5, %v1224_v36  ;;  %v330_v29 = vmul.f32 %v1584_v59, %v1584_v59  ;;  %v443_v60 = vsel %vm78_vm0, %v329_v18, 0.0 }
  0xee   :  { %v434_v50 = vadd.f32 %v433_v45, %v432_v13  ;;  %v2203_v13 = vld [vmem:[#allocation7_spill] sm:$0xff] }
  0xef   :  { %2202 = vst [vmem:[#allocation6_spill] sm:$0xff] %v1591_v23  ;;  %v1598_v1 = vsub.f32 %v2203_v13, %v1224_v36  ;;  %v331_v24 = vmul.f32 %v1591_v23, %v1591_v23  ;;  %v445_v9 = vsel %vm78_vm0, %v330_v29, 0.0 }
  0xf0   :  { %v436_v3 = vadd.f32 %v435_v32, %v434_v50  ;;  %v2205_v50 = vld [vmem:[#allocation8_spill] sm:$0xff] }
  0xf1   :  { %2204 = vst [vmem:[#allocation7_spill] sm:$0xff] %v1598_v1  ;;  %v1605_v5 = vsub.f32 %v2205_v50, %v1224_v36  ;;  %v332_v59 = vmul.f32 %v1598_v1, %v1598_v1  ;;  %v447_v18 = vsel %vm78_vm0, %v331_v24, 0.0 }
  0xf2   :  { %v438_v45 = vadd.f32 %v437_v0, %v436_v3  ;;  %v2207_v3 = vld [vmem:[#allocation9_spill] sm:$0xff] }
  0xf3   :  { %2206 = vst [vmem:[#allocation8_spill] sm:$0xff] %v1605_v5  ;;  %v1612_v13 = vsub.f32 %v2207_v3, %v1224_v36  ;;  %v333_v23 = vmul.f32 %v1605_v5, %v1605_v5  ;;  %v449_v29 = vsel %vm78_vm0, %v332_v59, 0.0 }
  0xf4   :  { %v440_v32 = vadd.f32 %v439_v42, %v438_v45  ;;  %v2209_v45 = vld [vmem:[#allocation10_spill] sm:$0xff] }
  0xf5   :  { %2208 = vst [vmem:[#allocation9_spill] sm:$0xff] %v1612_v13  ;;  %v1619_v50 = vsub.f32 %v2209_v45, %v1224_v36  ;;  %v334_v1 = vmul.f32 %v1612_v13, %v1612_v13  ;;  %v451_v24 = vsel %vm78_vm0, %v333_v23, 0.0 }
  0xf6   :  { %v442_v0 = vadd.f32 %v441_v54, %v440_v32  ;;  %v2211_v32 = vld [vmem:[#allocation11_spill] sm:$0xff] }
  0xf7   :  { %2210 = vst [vmem:[#allocation10_spill] sm:$0xff] %v1619_v50  ;;  %v1626_v3 = vsub.f32 %v2211_v32, %v1224_v36  ;;  %v335_v5 = vmul.f32 %v1619_v50, %v1619_v50  ;;  %v453_v59 = vsel %vm78_vm0, %v334_v1, 0.0 }
  0xf8   :  { %v444_v42 = vadd.f32 %v443_v60, %v442_v0  ;;  %v2213_v0 = vld [vmem:[#allocation12_spill] sm:$0xff] }
  0xf9   :  { %2212 = vst [vmem:[#allocation11_spill] sm:$0xff] %v1626_v3  ;;  %v1633_v45 = vsub.f32 %v2213_v0, %v1224_v36  ;;  %v336_v13 = vmul.f32 %v1626_v3, %v1626_v3  ;;  %v455_v23 = vsel %vm78_vm0, %v335_v5, 0.0 }
  0xfa   :  { %v446_v54 = vadd.f32 %v445_v9, %v444_v42  ;;  %v2215_v42 = vld [vmem:[#allocation13_spill] sm:$0xff] }
  0xfb   :  { %2214 = vst [vmem:[#allocation12_spill] sm:$0xff] %v1633_v45  ;;  %v1640_v32 = vsub.f32 %v2215_v42, %v1224_v36  ;;  %v337_v50 = vmul.f32 %v1633_v45, %v1633_v45  ;;  %v457_v1 = vsel %vm78_vm0, %v336_v13, 0.0 }
  0xfc   :  { %v448_v60 = vadd.f32 %v447_v18, %v446_v54  ;;  %v2217_v54 = vld [vmem:[#allocation14_spill] sm:$0xff] }
  0xfd   :  { %2216 = vst [vmem:[#allocation13_spill] sm:$0xff] %v1640_v32  ;;  %v1647_v0 = vsub.f32 %v2217_v54, %v1224_v36  ;;  %v338_v3 = vmul.f32 %v1640_v32, %v1640_v32  ;;  %v459_v5 = vsel %vm78_vm0, %v337_v50, 0.0 }
  0xfe   :  { %v450_v9 = vadd.f32 %v449_v29, %v448_v60  ;;  %v2219_v60 = vld [vmem:[#allocation15_spill] sm:$0xff] }
  0xff   :  { %2218 = vst [vmem:[#allocation14_spill] sm:$0xff] %v1647_v0  ;;  %v1654_v42 = vsub.f32 %v2219_v60, %v1224_v36  ;;  %v339_v54 = vmul.f32 %v1647_v0, %v1647_v0  ;;  %v461_v60 = vsel %vm78_vm0, %v338_v3, 0.0 }
 0x100   :  { %v452_v18 = vadd.f32 %v451_v24, %v450_v9  ;;  %v1661_v9 = vsub.f32 %v1220_v11, %v1224_v36 }
 0x101   :  { %2220 = vst [vmem:[#allocation15_spill] sm:$0xff] %v1654_v42 }
 0x102   :  { %v454_v29 = vadd.f32 %v453_v59, %v452_v18  ;;  %2221 = vst [vmem:[#allocation23_spill] sm:$0xff] %v1661_v9  ;;  %v340_v18 = vmul.f32 %v1654_v42, %v1654_v42  ;;  %v341_v13 = vmul.f32 %v1661_v9, %v1661_v9  ;;  %v481_v9 = vlaneseq }
 0x104   :  { %v456_v24 = vadd.f32 %v455_v23, %v454_v29  ;;  %v463_v23 = vsel %vm78_vm0, %v339_v54, 0.0  ;;  %v465_v11 = vsel %vm78_vm0, %v340_v18, 0.0  ;;  %v467_v0 = vsel %vm78_vm0, %v341_v13, 0.0 }
 0x105   :  { %v482_v33 = vshrl.u32 %v481_v9, 7 }
 0x106   :  { %v458_v59 = vadd.f32 %v457_v1, %v456_v24 }
 0x107   :  { %v483_v54 = vsub.s32 0, %v482_v33 }
 0x108   :  { %v460_v45 = vadd.f32 %v459_v5, %v458_v59 }
 0x10a   :  { %v462_v29 = vadd.f32 %v461_v60, %v460_v45  ;;  %v476_v45 = vld [vmem:[%s2133_s1] sm:$0x1] }
 0x10c   :  { %v464_v36 = vadd.f32 %v463_v23, %v462_v29 }
 0x10e   :  { %v466_v32 = vadd.f32 %v465_v11, %v464_v36 }
 0x110   :  { %v468_v50 = vadd.f32 %v467_v0, %v466_v32 }
 0x112   :  { %v469_v1 = vrot.slane %v468_v50, 4 }
 0x114   :  { %v470_v24 = vadd.f32 %v469_v1, %v468_v50 }
 0x116   :  { %v471_v47 = vrot.slane %v470_v24, 2 }
 0x118   :  { %v472_v42 = vadd.f32 %v471_v47, %v470_v24  ;;  %v1682_v47 = vld [vmem:[%s2134_s2] ss:$0 sm:$0xff] }
 0x11a   :  { %v473_v41 = vrot.slane %v472_v42, 1 }
 0x11c   :  { %v474_v3 = vadd.f32 %v473_v41, %v472_v42  ;;  %v2222_v42 = vld [vmem:[#allocation16_spill] sm:$0xff] }
 0x11e   :  { %v475_v5 = vmul.f32 0.001953125, %v474_v3 }
 0x120   :  { %v477_v59 = vadd.f32 1e-05, %v475_v5 }
 0x122   :  { %754 = vrsqrt.f32 %v477_v59 }
 0x12c   :  { %v755_v18 = vpop.eup %754 }
 0x12d   :  { %v479_v60 = vmul.f32 %v755_v18, %v476_v45 }
 0x12f   :  { %v1677_v13 = vrot.slane %v479_v60, %v483_v54 }
 0x131   :  { %v486_v41 = vmul.f32 %v1677_v13, %v1228_v56  ;;  %v487_v32 = vmul.f32 %v1677_v13, %v1232_v51  ;;  %v488_v0 = vmul.f32 %v1677_v13, %v1236_v63  ;;  %v489_v33 = vmul.f32 %v1677_v13, %v1240_v15 }
 0x132   :  { %v490_v9 = vmul.f32 %v1677_v13, %v2222_v42  ;;  %v491_v23 = vmul.f32 %v1677_v13, %v1254_v2  ;;  %v492_v29 = vmul.f32 %v1677_v13, %v1260_v7  ;;  %v493_v56 = vmul.f32 %v1677_v13, %v1269_v10 }
 0x133   :  { %v557_v51 = vadd.f32 %v1682_v47, %v486_v41  ;;  %v558_v11 = vadd.f32 %v1682_v47, %v487_v32  ;;  %v559_v63 = vadd.f32 %v1682_v47, %v488_v0  ;;  %v560_v15 = vadd.f32 %v1682_v47, %v489_v33 }
 0x134   :  { %v561_v36 = vadd.f32 %v1682_v47, %v490_v9  ;;  %v562_v50 = vadd.f32 %v1682_v47, %v491_v23  ;;  %v563_v2 = vadd.f32 %v1682_v47, %v492_v29  ;;  %v564_v1 = vadd.f32 %v1682_v47, %v493_v56 }
 0x135   :  { %v621_v7 = vmax.f32 %v557_v51, 0.0  ;;  %v622_v24 = vmax.f32 %v558_v11, 0.0  ;;  %v623_v3 = vmax.f32 %v559_v63, 0.0  ;;  %v624_v10 = vmax.f32 %v560_v15, 0.0 }
 0x136   :  { %v625_v5 = vmax.f32 %v561_v36, 0.0  ;;  %v626_v59 = vmax.f32 %v562_v50, 0.0  ;;  %v627_v45 = vmax.f32 %v563_v2, 0.0  ;;  %v628_v54 = vmax.f32 %v564_v1, 0.0 }
 0x137   :  { %685 = vst.msk [vmem:[%s2135_s3] sm:$0xff] %vm78_vm0, %v621_v7  ;;  %686 = vst.msk [vmem:[%s2135_s3 + $0x8] sm:$0xff] %vm78_vm0, %v622_v24  ;;  %v494_v18 = vmul.f32 %v1677_v13, %v1276_v38  ;;  %v495_v60 = vmul.f32 %v1677_v13, %v1283_v16  ;;  %v496_v41 = vmul.f32 %v1677_v13, %v1290_v19 }
 0x138   :  { %687 = vst.msk [vmem:[%s2135_s3 + $0x10] sm:$0xff] %vm78_vm0, %v623_v3  ;;  %688 = vst.msk [vmem:[%s2135_s3 + $0x18] sm:$0xff] %vm78_vm0, %v624_v10  ;;  %v497_v32 = vmul.f32 %v1677_v13, %v1297_v22  ;;  %v498_v38 = vmul.f32 %v1677_v13, %v1304_v25  ;;  %v499_v16 = vmul.f32 %v1677_v13, %v1311_v28 }
 0x139   :  { %689 = vst.msk [vmem:[%s2135_s3 + $0x20] sm:$0xff] %vm78_vm0, %v625_v5  ;;  %690 = vst.msk [vmem:[%s2135_s3 + $0x28] sm:$0xff] %vm78_vm0, %v626_v59  ;;  %v500_v19 = vmul.f32 %v1677_v13, %v1318_v31  ;;  %v501_v22 = vmul.f32 %v1677_v13, %v1325_v34  ;;  %v565_v0 = vadd.f32 %v1682_v47, %v494_v18 }
 0x13a   :  { %691 = vst.msk [vmem:[%s2135_s3 + $0x30] sm:$0xff] %vm78_vm0, %v627_v45  ;;  %692 = vst.msk [vmem:[%s2135_s3 + $0x38] sm:$0xff] %vm78_vm0, %v628_v54  ;;  %v566_v33 = vadd.f32 %v1682_v47, %v495_v60  ;;  %v567_v42 = vadd.f32 %v1682_v47, %v496_v41  ;;  %v568_v9 = vadd.f32 %v1682_v47, %v497_v32 }
 0x13b   :  { %v569_v23 = vadd.f32 %v1682_v47, %v498_v38  ;;  %v570_v25 = vadd.f32 %v1682_v47, %v499_v16  ;;  %v571_v28 = vadd.f32 %v1682_v47, %v500_v19  ;;  %v572_v29 = vadd.f32 %v1682_v47, %v501_v22 }
 0x13c   :  { %v629_v31 = vmax.f32 %v565_v0, 0.0  ;;  %v630_v56 = vmax.f32 %v566_v33, 0.0  ;;  %v631_v51 = vmax.f32 %v567_v42, 0.0  ;;  %v632_v34 = vmax.f32 %v568_v9, 0.0 }
 0x13d   :  { %v633_v11 = vmax.f32 %v569_v23, 0.0  ;;  %v634_v63 = vmax.f32 %v570_v25, 0.0  ;;  %v635_v15 = vmax.f32 %v571_v28, 0.0  ;;  %v636_v36 = vmax.f32 %v572_v29, 0.0 }
 0x13e   :  { %693 = vst.msk [vmem:[%s2135_s3 + $0x40] sm:$0xff] %vm78_vm0, %v629_v31  ;;  %694 = vst.msk [vmem:[%s2135_s3 + $0x48] sm:$0xff] %vm78_vm0, %v630_v56  ;;  %v502_v50 = vmul.f32 %v1677_v13, %v1332_v37  ;;  %v503_v2 = vmul.f32 %v1677_v13, %v1339_v40  ;;  %v504_v1 = vmul.f32 %v1677_v13, %v1346_v43 }
 0x13f   :  { %695 = vst.msk [vmem:[%s2135_s3 + $0x50] sm:$0xff] %vm78_vm0, %v631_v51  ;;  %696 = vst.msk [vmem:[%s2135_s3 + $0x58] sm:$0xff] %vm78_vm0, %v632_v34  ;;  %v505_v7 = vmul.f32 %v1677_v13, %v1353_v46  ;;  %v506_v37 = vmul.f32 %v1677_v13, %v1360_v49  ;;  %v507_v40 = vmul.f32 %v1677_v13, %v1367_v52 }
 0x140   :  { %697 = vst.msk [vmem:[%s2135_s3 + $0x60] sm:$0xff] %vm78_vm0, %v633_v11  ;;  %698 = vst.msk [vmem:[%s2135_s3 + $0x68] sm:$0xff] %vm78_vm0, %v634_v63  ;;  %v508_v43 = vmul.f32 %v1677_v13, %v1374_v55  ;;  %v509_v46 = vmul.f32 %v1677_v13, %v1381_v58  ;;  %v573_v24 = vadd.f32 %v1682_v47, %v502_v50 }
 0x141   :  { %699 = vst.msk [vmem:[%s2135_s3 + $0x70] sm:$0xff] %vm78_vm0, %v635_v15  ;;  %700 = vst.msk [vmem:[%s2135_s3 + $0x78] sm:$0xff] %vm78_vm0, %v636_v36  ;;  %v574_v3 = vadd.f32 %v1682_v47, %v503_v2  ;;  %v575_v10 = vadd.f32 %v1682_v47, %v504_v1  ;;  %v576_v5 = vadd.f32 %v1682_v47, %v505_v7 }
 0x142   :  { %v577_v59 = vadd.f32 %v1682_v47, %v506_v37  ;;  %v578_v49 = vadd.f32 %v1682_v47, %v507_v40  ;;  %v579_v52 = vadd.f32 %v1682_v47, %v508_v43  ;;  %v580_v45 = vadd.f32 %v1682_v47, %v509_v46 }
 0x143   :  { %v637_v55 = vmax.f32 %v573_v24, 0.0  ;;  %v638_v54 = vmax.f32 %v574_v3, 0.0  ;;  %v639_v18 = vmax.f32 %v575_v10, 0.0  ;;  %v640_v58 = vmax.f32 %v576_v5, 0.0 }
 0x144   :  { %v641_v60 = vmax.f32 %v577_v59, 0.0  ;;  %v642_v41 = vmax.f32 %v578_v49, 0.0  ;;  %v643_v32 = vmax.f32 %v579_v52, 0.0  ;;  %v644_v38 = vmax.f32 %v580_v45, 0.0 }
 0x145   :  { %701 = vst.msk [vmem:[%s2135_s3 + $0x80] sm:$0xff] %vm78_vm0, %v637_v55  ;;  %702 = vst.msk [vmem:[%s2135_s3 + $0x88] sm:$0xff] %vm78_vm0, %v638_v54  ;;  %v510_v16 = vmul.f32 %v1677_v13, %v1388_v61  ;;  %v511_v19 = vmul.f32 %v1677_v13, %v1395_v4  ;;  %v512_v22 = vmul.f32 %v1677_v13, %v1402_v8  ;;  %v2223_v55 = vld [vmem:[#allocation17_spill] sm:$0xff] }
 0x146   :  { %703 = vst.msk [vmem:[%s2135_s3 + $0x90] sm:$0xff] %vm78_vm0, %v639_v18  ;;  %704 = vst.msk [vmem:[%s2135_s3 + $0x98] sm:$0xff] %vm78_vm0, %v640_v58  ;;  %v513_v0 = vmul.f32 %v1677_v13, %v1409_v12  ;;  %v514_v61 = vmul.f32 %v1677_v13, %v1416_v17  ;;  %v515_v4 = vmul.f32 %v1677_v13, %v1423_v21  ;;  %v2226_v58 = vld [vmem:[#allocation20_spill] sm:$0xff] }
 0x147   :  { %705 = vst.msk [vmem:[%s2135_s3 + $0xa0] sm:$0xff] %vm78_vm0, %v641_v60  ;;  %706 = vst.msk [vmem:[%s2135_s3 + $0xa8] sm:$0xff] %vm78_vm0, %v642_v41  ;;  %v516_v8 = vmul.f32 %v1677_v13, %v1430_v26  ;;  %v517_v12 = vmul.f32 %v1677_v13, %v1437_v30  ;;  %v581_v33 = vadd.f32 %v1682_v47, %v510_v16  ;;  %v2227_v41 = vld [vmem:[#allocation21_spill] sm:$0xff] }
 0x148   :  { %707 = vst.msk [vmem:[%s2135_s3 + $0xb0] sm:$0xff] %vm78_vm0, %v643_v32  ;;  %708 = vst.msk [vmem:[%s2135_s3 + $0xb8] sm:$0xff] %vm78_vm0, %v644_v38  ;;  %v582_v42 = vadd.f32 %v1682_v47, %v511_v19  ;;  %v583_v9 = vadd.f32 %v1682_v47, %v512_v22  ;;  %v584_v23 = vadd.f32 %v1682_v47, %v513_v0 }
 0x149   :  { %v585_v25 = vadd.f32 %v1682_v47, %v514_v61  ;;  %v586_v17 = vadd.f32 %v1682_v47, %v515_v4  ;;  %v587_v21 = vadd.f32 %v1682_v47, %v516_v8  ;;  %v588_v28 = vadd.f32 %v1682_v47, %v517_v12 }
 0x14a   :  { %v645_v26 = vmax.f32 %v581_v33, 0.0  ;;  %v646_v29 = vmax.f32 %v582_v42, 0.0  ;;  %v647_v31 = vmax.f32 %v583_v9, 0.0  ;;  %v648_v30 = vmax.f32 %v584_v23, 0.0 }
 0x14b   :  { %v649_v56 = vmax.f32 %v585_v25, 0.0  ;;  %v650_v51 = vmax.f32 %v586_v17, 0.0  ;;  %v651_v34 = vmax.f32 %v587_v21, 0.0  ;;  %v652_v11 = vmax.f32 %v588_v28, 0.0  ;;  %v2228_v28 = vld [vmem:[#allocation22_spill] sm:$0xff] }
 0x14c   :  { %709 = vst.msk [vmem:[%s2135_s3 + $0xc0] sm:$0xff] %vm78_vm0, %v645_v26  ;;  %710 = vst.msk [vmem:[%s2135_s3 + $0xc8] sm:$0xff] %vm78_vm0, %v646_v29  ;;  %v518_v63 = vmul.f32 %v1677_v13, %v1444_v35  ;;  %v519_v15 = vmul.f32 %v1677_v13, %v1451_v39  ;;  %v520_v36 = vmul.f32 %v1677_v13, %v1458_v44  ;;  %v2229_v29 = vld [vmem:[#allocation2_spill] sm:$0xff] }
 0x14d   :  { %711 = vst.msk [vmem:[%s2135_s3 + $0xd0] sm:$0xff] %vm78_vm0, %v647_v31  ;;  %712 = vst.msk [vmem:[%s2135_s3 + $0xd8] sm:$0xff] %vm78_vm0, %v648_v30  ;;  %v521_v50 = vmul.f32 %v1677_v13, %v1465_v48  ;;  %v522_v35 = vmul.f32 %v1677_v13, %v1472_v53  ;;  %v523_v39 = vmul.f32 %v1677_v13, %v1479_v57  ;;  %v2230_v30 = vld [vmem:[#allocation3_spill] sm:$0xff] }
 0x14e   :  { %713 = vst.msk [vmem:[%s2135_s3 + $0xe0] sm:$0xff] %vm78_vm0, %v649_v56  ;;  %714 = vst.msk [vmem:[%s2135_s3 + $0xe8] sm:$0xff] %vm78_vm0, %v650_v51  ;;  %v524_v44 = vmul.f32 %v1677_v13, %v1486_v62  ;;  %v525_v48 = vmul.f32 %v1677_v13, %v1493_v6  ;;  %v589_v2 = vadd.f32 %v1682_v47, %v518_v63  ;;  %v2231_v51 = vld [vmem:[#allocation4_spill] sm:$0xff] }
 0x14f   :  { %715 = vst.msk [vmem:[%s2135_s3 + $0xf0] sm:$0xff] %vm78_vm0, %v651_v34  ;;  %716 = vst.msk [vmem:[%s2135_s3 + $0xf8] sm:$0xff] %vm78_vm0, %v652_v11  ;;  %v590_v1 = vadd.f32 %v1682_v47, %v519_v15  ;;  %v591_v7 = vadd.f32 %v1682_v47, %v520_v36  ;;  %v592_v37 = vadd.f32 %v1682_v47, %v521_v50  ;;  %v2232_v11 = vld [vmem:[#allocation5_spill] sm:$0xff]  ;;  %v2233_v15 = vld [vmem:[#allocation6_spill] sm:$0xff] }
 0x150   :  { %v593_v40 = vadd.f32 %v1682_v47, %v522_v35  ;;  %v594_v53 = vadd.f32 %v1682_v47, %v523_v39  ;;  %v595_v57 = vadd.f32 %v1682_v47, %v524_v44  ;;  %v596_v43 = vadd.f32 %v1682_v47, %v525_v48  ;;  %v2234_v50 = vld [vmem:[#allocation7_spill] sm:$0xff]  ;;  %v2235_v39 = vld [vmem:[#allocation8_spill] sm:$0xff] }
 0x151   :  { %v653_v62 = vmax.f32 %v589_v2, 0.0  ;;  %v654_v46 = vmax.f32 %v590_v1, 0.0  ;;  %v655_v24 = vmax.f32 %v591_v7, 0.0  ;;  %v656_v6 = vmax.f32 %v592_v37, 0.0 }
 0x152   :  { %v657_v3 = vmax.f32 %v593_v40, 0.0  ;;  %v658_v10 = vmax.f32 %v594_v53, 0.0  ;;  %v659_v5 = vmax.f32 %v595_v57, 0.0  ;;  %v660_v59 = vmax.f32 %v596_v43, 0.0 }
 0x153   :  { %717 = vst.msk [vmem:[%s2135_s3 + $0x100] sm:$0xff] %vm78_vm0, %v653_v62  ;;  %718 = vst.msk [vmem:[%s2135_s3 + $0x108] sm:$0xff] %vm78_vm0, %v654_v46  ;;  %v526_v49 = vmul.f32 %v1677_v13, %v1500_v14  ;;  %v527_v52 = vmul.f32 %v1677_v13, %v1507_v20  ;;  %v528_v45 = vmul.f32 %v1677_v13, %v1514_v27  ;;  %v2224_v14 = vld [vmem:[#allocation18_spill] sm:$0xff]  ;;  %v2225_v27 = vld [vmem:[#allocation19_spill] sm:$0xff] }
 0x154   :  { %719 = vst.msk [vmem:[%s2135_s3 + $0x110] sm:$0xff] %vm78_vm0, %v655_v24  ;;  %720 = vst.msk [vmem:[%s2135_s3 + $0x118] sm:$0xff] %vm78_vm0, %v656_v6  ;;  %v529_v54 = vmul.f32 %v1677_v13, %v2223_v55  ;;  %v530_v20 = vmul.f32 %v1677_v13, %v2224_v14  ;;  %v531_v18 = vmul.f32 %v1677_v13, %v2225_v27  ;;  %v2238_v55 = vld [vmem:[#allocation11_spill] sm:$0xff]  ;;  %v2239_v14 = vld [vmem:[#allocation12_spill] sm:$0xff] }
 0x155   :  { %721 = vst.msk [vmem:[%s2135_s3 + $0x120] sm:$0xff] %vm78_vm0, %v657_v3  ;;  %722 = vst.msk [vmem:[%s2135_s3 + $0x128] sm:$0xff] %vm78_vm0, %v658_v10  ;;  %v532_v60 = vmul.f32 %v1677_v13, %v2226_v58  ;;  %v533_v32 = vmul.f32 %v1677_v13, %v2227_v41  ;;  %v597_v38 = vadd.f32 %v1682_v47, %v526_v49  ;;  %v2240_v27 = vld [vmem:[#allocation13_spill] sm:$0xff]  ;;  %v2241_v58 = vld [vmem:[#allocation14_spill] sm:$0xff] }
 0x156   :  { %723 = vst.msk [vmem:[%s2135_s3 + $0x130] sm:$0xff] %vm78_vm0, %v659_v5  ;;  %724 = vst.msk [vmem:[%s2135_s3 + $0x138] sm:$0xff] %vm78_vm0, %v660_v59  ;;  %v598_v16 = vadd.f32 %v1682_v47, %v527_v52  ;;  %v599_v19 = vadd.f32 %v1682_v47, %v528_v45  ;;  %v600_v22 = vadd.f32 %v1682_v47, %v529_v54  ;;  %v2236_v59 = vld [vmem:[#allocation9_spill] sm:$0xff]  ;;  %v2237_v52 = vld [vmem:[#allocation10_spill] sm:$0xff] }
 0x157   :  { %v601_v0 = vadd.f32 %v1682_v47, %v530_v20  ;;  %v602_v61 = vadd.f32 %v1682_v47, %v531_v18  ;;  %v603_v4 = vadd.f32 %v1682_v47, %v532_v60  ;;  %v604_v8 = vadd.f32 %v1682_v47, %v533_v32  ;;  %v2242_v41 = vld [vmem:[#allocation15_spill] sm:$0xff] }
 0x158   :  { %v661_v12 = vmax.f32 %v597_v38, 0.0  ;;  %v662_v33 = vmax.f32 %v598_v16, 0.0  ;;  %v663_v42 = vmax.f32 %v599_v19, 0.0  ;;  %v664_v9 = vmax.f32 %v600_v22, 0.0  ;;  %v2243_v38 = vld [vmem:[#allocation23_spill] sm:$0xff] }
 0x159   :  { %v665_v23 = vmax.f32 %v601_v0, 0.0  ;;  %v666_v25 = vmax.f32 %v602_v61, 0.0  ;;  %v667_v17 = vmax.f32 %v603_v4, 0.0  ;;  %v668_v21 = vmax.f32 %v604_v8, 0.0 }
 0x15a   :  { %725 = vst.msk [vmem:[%s2135_s3 + $0x140] sm:$0xff] %vm78_vm0, %v661_v12  ;;  %726 = vst.msk [vmem:[%s2135_s3 + $0x148] sm:$0xff] %vm78_vm0, %v662_v33  ;;  %v534_v26 = vmul.f32 %v1677_v13, %v2228_v28  ;;  %v535_v31 = vmul.f32 %v1677_v13, %v2229_v29  ;;  %v536_v56 = vmul.f32 %v1677_v13, %v2230_v30 }
 0x15b   :  { %727 = vst.msk [vmem:[%s2135_s3 + $0x150] sm:$0xff] %vm78_vm0, %v663_v42  ;;  %728 = vst.msk [vmem:[%s2135_s3 + $0x158] sm:$0xff] %vm78_vm0, %v664_v9  ;;  %v537_v34 = vmul.f32 %v1677_v13, %v2231_v51  ;;  %v538_v63 = vmul.f32 %v1677_v13, %v2232_v11  ;;  %v539_v36 = vmul.f32 %v1677_v13, %v2233_v15 }
 0x15c   :  { %729 = vst.msk [vmem:[%s2135_s3 + $0x160] sm:$0xff] %vm78_vm0, %v665_v23  ;;  %730 = vst.msk [vmem:[%s2135_s3 + $0x168] sm:$0xff] %vm78_vm0, %v666_v25  ;;  %v540_v35 = vmul.f32 %v1677_v13, %v2234_v50  ;;  %v541_v44 = vmul.f32 %v1677_v13, %v2235_v39  ;;  %v605_v48 = vadd.f32 %v1682_v47, %v534_v26 }
 0x15d   :  { %731 = vst.msk [vmem:[%s2135_s3 + $0x170] sm:$0xff] %vm78_vm0, %v667_v17  ;;  %732 = vst.msk [vmem:[%s2135_s3 + $0x178] sm:$0xff] %vm78_vm0, %v668_v21  ;;  %v606_v2 = vadd.f32 %v1682_v47, %v535_v31  ;;  %v607_v1 = vadd.f32 %v1682_v47, %v536_v56  ;;  %v608_v7 = vadd.f32 %v1682_v47, %v537_v34 }
 0x15e   :  { %v609_v37 = vadd.f32 %v1682_v47, %v538_v63  ;;  %v610_v40 = vadd.f32 %v1682_v47, %v539_v36  ;;  %v611_v53 = vadd.f32 %v1682_v47, %v540_v35  ;;  %v612_v57 = vadd.f32 %v1682_v47, %v541_v44 }
 0x15f   :  { %v669_v43 = vmax.f32 %v605_v48, 0.0  ;;  %v670_v62 = vmax.f32 %v606_v2, 0.0  ;;  %v671_v46 = vmax.f32 %v607_v1, 0.0  ;;  %v672_v24 = vmax.f32 %v608_v7, 0.0 }
 0x160   :  { %v673_v6 = vmax.f32 %v609_v37, 0.0  ;;  %v674_v3 = vmax.f32 %v610_v40, 0.0  ;;  %v675_v10 = vmax.f32 %v611_v53, 0.0  ;;  %v676_v5 = vmax.f32 %v612_v57, 0.0 }
 0x161   :  { %733 = vst.msk [vmem:[%s2135_s3 + $0x180] sm:$0xff] %vm78_vm0, %v669_v43  ;;  %734 = vst.msk [vmem:[%s2135_s3 + $0x188] sm:$0xff] %vm78_vm0, %v670_v62  ;;  %v542_v49 = vmul.f32 %v1677_v13, %v2236_v59  ;;  %v543_v45 = vmul.f32 %v1677_v13, %v2237_v52  ;;  %v544_v54 = vmul.f32 %v1677_v13, %v2238_v55 }
 0x162   :  { %735 = vst.msk [vmem:[%s2135_s3 + $0x190] sm:$0xff] %vm78_vm0, %v671_v46  ;;  %736 = vst.msk [vmem:[%s2135_s3 + $0x198] sm:$0xff] %vm78_vm0, %v672_v24  ;;  %v545_v20 = vmul.f32 %v1677_v13, %v2239_v14  ;;  %v546_v18 = vmul.f32 %v1677_v13, %v2240_v27  ;;  %v547_v60 = vmul.f32 %v1677_v13, %v2241_v58 }
 0x163   :  { %737 = vst.msk [vmem:[%s2135_s3 + $0x1a0] sm:$0xff] %vm78_vm0, %v673_v6  ;;  %738 = vst.msk [vmem:[%s2135_s3 + $0x1a8] sm:$0xff] %vm78_vm0, %v674_v3  ;;  %v548_v32 = vmul.f32 %v1677_v13, %v2242_v41  ;;  %v549_v16 = vmul.f32 %v1677_v13, %v2243_v38  ;;  %v613_v19 = vadd.f32 %v1682_v47, %v542_v49 }
 0x164   :  { %739 = vst.msk [vmem:[%s2135_s3 + $0x1b0] sm:$0xff] %vm78_vm0, %v675_v10  ;;  %740 = vst.msk [vmem:[%s2135_s3 + $0x1b8] sm:$0xff] %vm78_vm0, %v676_v5  ;;  %v614_v22 = vadd.f32 %v1682_v47, %v543_v45  ;;  %v615_v0 = vadd.f32 %v1682_v47, %v544_v54  ;;  %v616_v61 = vadd.f32 %v1682_v47, %v545_v20 }
 0x165   :  { %v617_v4 = vadd.f32 %v1682_v47, %v546_v18  ;;  %v618_v8 = vadd.f32 %v1682_v47, %v547_v60  ;;  %v619_v12 = vadd.f32 %v1682_v47, %v548_v32  ;;  %v620_v33 = vadd.f32 %v1682_v47, %v549_v16 }
 0x166   :  { %v677_v42 = vmax.f32 %v613_v19, 0.0  ;;  %v678_v9 = vmax.f32 %v614_v22, 0.0  ;;  %v679_v23 = vmax.f32 %v615_v0, 0.0  ;;  %v680_v13 = vmax.f32 %v616_v61, 0.0 }
 0x167   :  { %v681_v25 = vmax.f32 %v617_v4, 0.0  ;;  %v682_v17 = vmax.f32 %v618_v8, 0.0  ;;  %v683_v21 = vmax.f32 %v619_v12, 0.0  ;;  %v684_v28 = vmax.f32 %v620_v33, 0.0 }
 0x168   :  { %741 = vst.msk [vmem:[%s2135_s3 + $0x1c0] sm:$0xff] %vm78_vm0, %v677_v42  ;;  %742 = vst.msk [vmem:[%s2135_s3 + $0x1c8] sm:$0xff] %vm78_vm0, %v678_v9 }
 0x169   :  { %743 = vst.msk [vmem:[%s2135_s3 + $0x1d0] sm:$0xff] %vm78_vm0, %v679_v23  ;;  %744 = vst.msk [vmem:[%s2135_s3 + $0x1d8] sm:$0xff] %vm78_vm0, %v680_v13 }
 0x16a   :  { %745 = vst.msk [vmem:[%s2135_s3 + $0x1e0] sm:$0xff] %vm78_vm0, %v681_v25  ;;  %746 = vst.msk [vmem:[%s2135_s3 + $0x1e8] sm:$0xff] %vm78_vm0, %v682_v17 }
 0x16b   :  { %747 = vst.msk [vmem:[%s2135_s3 + $0x1f0] sm:$0xff] %vm78_vm0, %v683_v21  ;;  %748 = vst.msk [vmem:[%s2135_s3 + $0x1f8] sm:$0xff] %vm78_vm0, %v684_v28 }

// kernel: _lambda_.15
= control target key start
LH: loop header
LB: loop body
LE: loop exit
PB: predicated region body
PF: predicated region fallthrough
CT: control target
= control target key end

     0   :  { %vm142_vm0 = vcmask 23552   ;;  %s807_s0 = inlined_call_operand.vmem [shape: f32[512,3], index: 0, kind: input, shape index: {}]   ;;  %s808_s1 = inlined_call_operand.vmem [shape: f32[1,3], index: 1, kind: input, shape index: {}]   ;;  %s809_s2 = inlined_call_operand.vmem [shape: f32[1,3], index: 2, kind: input, shape index: {}]   ;;  %s810_s3 = inlined_call_operand.vmem [shape: f32[512,3], index: 3, kind: output, shape index: {}]  }
   0x1   :  { %v14_v0 = vld [vmem:[%s807_s0] sm:$0xff]  ;;  %v15_v1 = vld [vmem:[%s807_s0 + $0x8] sm:$0xff]  ;;  %v16_v2 = vld [vmem:[%s807_s0 + $0x10] sm:$0xff] }
   0x2   :  { %211 = vtanh.f32 %v14_v0  ;;  %v17_v3 = vld [vmem:[%s807_s0 + $0x18] sm:$0xff]  ;;  %v18_v4 = vld [vmem:[%s807_s0 + $0x20] sm:$0xff]  ;;  %v19_v5 = vld [vmem:[%s807_s0 + $0x28] sm:$0xff] }
   0x3   :  { %213 = vtanh.f32 %v15_v1  ;;  %v20_v6 = vld [vmem:[%s807_s0 + $0x30] sm:$0xff]  ;;  %v21_v7 = vld [vmem:[%s807_s0 + $0x38] sm:$0xff]  ;;  %v22_v8 = vld [vmem:[%s807_s0 + $0x40] sm:$0xff] }
   0x4   :  { %215 = vtanh.f32 %v16_v2  ;;  %v23_v9 = vld [vmem:[%s807_s0 + $0x48] sm:$0xff]  ;;  %v24_v10 = vld [vmem:[%s807_s0 + $0x50] sm:$0xff]  ;;  %v25_v11 = vld [vmem:[%s807_s0 + $0x58] sm:$0xff] }
   0x5   :  { %217 = vtanh.f32 %v17_v3  ;;  %v26_v12 = vld [vmem:[%s807_s0 + $0x60] sm:$0xff]  ;;  %v27_v14 = vld [vmem:[%s807_s0 + $0x68] sm:$0xff]  ;;  %v28_v16 = vld [vmem:[%s807_s0 + $0x70] sm:$0xff] }
   0x6   :  { %219 = vtanh.f32 %v18_v4  ;;  %v29_v18 = vld [vmem:[%s807_s0 + $0x78] sm:$0xff]  ;;  %v30_v20 = vld [vmem:[%s807_s0 + $0x80] sm:$0xff]  ;;  %v31_v22 = vld [vmem:[%s807_s0 + $0x88] sm:$0xff] }
   0x7   :  { %221 = vtanh.f32 %v19_v5  ;;  %v32_v24 = vld [vmem:[%s807_s0 + $0x90] sm:$0xff]  ;;  %v33_v26 = vld [vmem:[%s807_s0 + $0x98] sm:$0xff]  ;;  %v34_v28 = vld [vmem:[%s807_s0 + $0xa0] sm:$0xff] }
   0x8   :  { %223 = vtanh.f32 %v20_v6  ;;  %v35_v30 = vld [vmem:[%s807_s0 + $0xa8] sm:$0xff]  ;;  %v36_v32 = vld [vmem:[%s807_s0 + $0xb0] sm:$0xff]  ;;  %v37_v34 = vld [vmem:[%s807_s0 + $0xb8] sm:$0xff] }
   0x9   :  { %225 = vtanh.f32 %v21_v7  ;;  %v38_v36 = vld [vmem:[%s807_s0 + $0xc0] sm:$0xff]  ;;  %v39_v38 = vld [vmem:[%s807_s0 + $0xc8] sm:$0xff]  ;;  %v40_v40 = vld [vmem:[%s807_s0 + $0xd0] sm:$0xff] }
   0xa   :  { %227 = vtanh.f32 %v22_v8  ;;  %v41_v42 = vld [vmem:[%s807_s0 + $0xd8] sm:$0xff]  ;;  %v42_v44 = vld [vmem:[%s807_s0 + $0xe0] sm:$0xff]  ;;  %v43_v46 = vld [vmem:[%s807_s0 + $0xe8] sm:$0xff] }
   0xb   :  { %229 = vtanh.f32 %v23_v9  ;;  %v44_v48 = vld [vmem:[%s807_s0 + $0xf0] sm:$0xff]  ;;  %v45_v50 = vld [vmem:[%s807_s0 + $0xf8] sm:$0xff]  ;;  %v46_v52 = vld [vmem:[%s807_s0 + $0x100] sm:$0xff] }
   0xc   :  { %v212_v13 = vpop.eup %211  ;;  %231 = vtanh.f32 %v24_v10  ;;  %v47_v54 = vld [vmem:[%s807_s0 + $0x108] sm:$0xff]  ;;  %v48_v56 = vld [vmem:[%s807_s0 + $0x110] sm:$0xff]  ;;  %v49_v58 = vld [vmem:[%s807_s0 + $0x118] sm:$0xff] }
   0xd   :  { %v214_v15 = vpop.eup %213  ;;  %143 = vst.msk [vmem:[%s810_s3] sm:$0xff] %vm142_vm0, %v212_v13  ;;  %233 = vtanh.f32 %v25_v11  ;;  %v50_v60 = vld [vmem:[%s807_s0 + $0x120] sm:$0xff]  ;;  %v51_v62 = vld [vmem:[%s807_s0 + $0x128] sm:$0xff]  ;;  %v52_v0 = vld [vmem:[%s807_s0 + $0x130] sm:$0xff] }
   0xe   :  { %v216_v17 = vpop.eup %215  ;;  %144 = vst.msk [vmem:[%s810_s3 + $0x8] sm:$0xff] %vm142_vm0, %v214_v15  ;;  %235 = vtanh.f32 %v26_v12  ;;  %v53_v2 = vld [vmem:[%s807_s0 + $0x138] sm:$0xff]  ;;  %v54_v4 = vld [vmem:[%s807_s0 + $0x140] sm:$0xff]  ;;  %v55_v6 = vld [vmem:[%s807_s0 + $0x148] sm:$0xff] }
   0xf   :  { %v218_v19 = vpop.eup %217  ;;  %145 = vst.msk [vmem:[%s810_s3 + $0x10] sm:$0xff] %vm142_vm0, %v216_v17  ;;  %237 = vtanh.f32 %v27_v14  ;;  %v56_v8 = vld [vmem:[%s807_s0 + $0x150] sm:$0xff]  ;;  %v57_v10 = vld [vmem:[%s807_s0 + $0x158] sm:$0xff]  ;;  %v58_v12 = vld [vmem:[%s807_s0 + $0x160] sm:$0xff] }
  0x10   :  { %v220_v21 = vpop.eup %219  ;;  %146 = vst.msk [vmem:[%s810_s3 + $0x18] sm:$0xff] %vm142_vm0, %v218_v19  ;;  %239 = vtanh.f32 %v28_v16  ;;  %v59_v14 = vld [vmem:[%s807_s0 + $0x168] sm:$0xff]  ;;  %v60_v16 = vld [vmem:[%s807_s0 + $0x170] sm:$0xff] }
  0x11   :  { %v222_v23 = vpop.eup %221  ;;  %147 = vst.msk [vmem:[%s810_s3 + $0x20] sm:$0xff] %vm142_vm0, %v220_v21  ;;  %241 = vtanh.f32 %v29_v18  ;;  %v61_v18 = vld [vmem:[%s807_s0 + $0x178] sm:$0xff] }
  0x12   :  { %v224_v25 = vpop.eup %223  ;;  %148 = vst.msk [vmem:[%s810_s3 + $0x28] sm:$0xff] %vm142_vm0, %v222_v23  ;;  %243 = vtanh.f32 %v30_v20  ;;  %v62_v20 = vld [vmem:[%s807_s0 + $0x180] sm:$0xff] }
  0x13   :  { %v226_v27 = vpop.eup %225  ;;  %149 = vst.msk [vmem:[%s810_s3 + $0x30] sm:$0xff] %vm142_vm0, %v224_v25  ;;  %245 = vtanh.f32 %v31_v22  ;;  %v63_v22 = vld [vmem:[%s807_s0 + $0x188] sm:$0xff] }
  0x14   :  { %v228_v29 = vpop.eup %227  ;;  %150 = vst.msk [vmem:[%s810_s3 + $0x38] sm:$0xff] %vm142_vm0, %v226_v27  ;;  %247 = vtanh.f32 %v32_v24  ;;  %v64_v24 = vld [vmem:[%s807_s0 + $0x190] sm:$0xff] }
  0x15   :  { %v230_v31 = vpop.eup %229  ;;  %151 = vst.msk [vmem:[%s810_s3 + $0x40] sm:$0xff] %vm142_vm0, %v228_v29  ;;  %249 = vtanh.f32 %v33_v26  ;;  %v65_v26 = vld [vmem:[%s807_s0 + $0x198] sm:$0xff] }
  0x16   :  { %v232_v33 = vpop.eup %231  ;;  %152 = vst.msk [vmem:[%s810_s3 + $0x48] sm:$0xff] %vm142_vm0, %v230_v31  ;;  %251 = vtanh.f32 %v34_v28  ;;  %v66_v28 = vld [vmem:[%s807_s0 + $0x1a0] sm:$0xff] }
  0x17   :  { %v234_v35 = vpop.eup %233  ;;  %153 = vst.msk [vmem:[%s810_s3 + $0x50] sm:$0xff] %vm142_vm0, %v232_v33  ;;  %253 = vtanh.f32 %v35_v30  ;;  %v67_v30 = vld [vmem:[%s807_s0 + $0x1a8] sm:$0xff] }
  0x18   :  { %v236_v37 = vpop.eup %235  ;;  %154 = vst.msk [vmem:[%s810_s3 + $0x58] sm:$0xff] %vm142_vm0, %v234_v35  ;;  %255 = vtanh.f32 %v36_v32  ;;  %v68_v32 = vld [vmem:[%s807_s0 + $0x1b0] sm:$0xff] }
  0x19   :  { %v238_v39 = vpop.eup %237  ;;  %155 = vst.msk [vmem:[%s810_s3 + $0x60] sm:$0xff] %vm142_vm0, %v236_v37  ;;  %257 = vtanh.f32 %v37_v34  ;;  %v69_v34 = vld [vmem:[%s807_s0 + $0x1b8] sm:$0xff] }
  0x1a   :  { %v240_v41 = vpop.eup %239  ;;  %156 = vst.msk [vmem:[%s810_s3 + $0x68] sm:$0xff] %vm142_vm0, %v238_v39  ;;  %259 = vtanh.f32 %v38_v36  ;;  %v70_v36 = vld [vmem:[%s807_s0 + $0x1c0] sm:$0xff] }
  0x1b   :  { %v242_v43 = vpop.eup %241  ;;  %157 = vst.msk [vmem:[%s810_s3 + $0x70] sm:$0xff] %vm142_vm0, %v240_v41  ;;  %261 = vtanh.f32 %v39_v38  ;;  %v71_v38 = vld [vmem:[%s807_s0 + $0x1c8] sm:$0xff] }
  0x1c   :  { %v244_v45 = vpop.eup %243  ;;  %158 = vst.msk [vmem:[%s810_s3 + $0x78] sm:$0xff] %vm142_vm0, %v242_v43  ;;  %263 = vtanh.f32 %v40_v40  ;;  %v72_v40 = vld [vmem:[%s807_s0 + $0x1d0] sm:$0xff] }
  0x1d   :  { %v246_v47 = vpop.eup %245  ;;  %159 = vst.msk [vmem:[%s810_s3 + $0x80] sm:$0xff] %vm142_vm0, %v244_v45  ;;  %265 = vtanh.f32 %v41_v42  ;;  %v73_v42 = vld [vmem:[%s807_s0 + $0x1d8] sm:$0xff] }
  0x1e   :  { %v248_v49 = vpop.eup %247  ;;  %160 = vst.msk [vmem:[%s810_s3 + $0x88] sm:$0xff] %vm142_vm0, %v246_v47  ;;  %267 = vtanh.f32 %v42_v44  ;;  %v74_v44 = vld [vmem:[%s807_s0 + $0x1e0] sm:$0xff] }
  0x1f   :  { %v250_v51 = vpop.eup %249  ;;  %161 = vst.msk [vmem:[%s810_s3 + $0x90] sm:$0xff] %vm142_vm0, %v248_v49  ;;  %269 = vtanh.f32 %v43_v46  ;;  %v75_v46 = vld [vmem:[%s807_s0 + $0x1e8] sm:$0xff] }
  0x20   :  { %v252_v53 = vpop.eup %251  ;;  %162 = vst.msk [vmem:[%s810_s3 + $0x98] sm:$0xff] %vm142_vm0, %v250_v51  ;;  %271 = vtanh.f32 %v44_v48  ;;  %v76_v48 = vld [vmem:[%s807_s0 + $0x1f0] sm:$0xff] }
  0x21   :  { %v254_v55 = vpop.eup %253  ;;  %163 = vst.msk [vmem:[%s810_s3 + $0xa0] sm:$0xff] %vm142_vm0, %v252_v53  ;;  %273 = vtanh.f32 %v45_v50  ;;  %v77_v50 = vld [vmem:[%s807_s0 + $0x1f8] sm:$0xff] }
  0x22   :  { %v256_v57 = vpop.eup %255  ;;  %164 = vst.msk [vmem:[%s810_s3 + $0xa8] sm:$0xff] %vm142_vm0, %v254_v55  ;;  %275 = vtanh.f32 %v46_v52 }
  0x23   :  { %v258_v59 = vpop.eup %257  ;;  %165 = vst.msk [vmem:[%s810_s3 + $0xb0] sm:$0xff] %vm142_vm0, %v256_v57  ;;  %277 = vtanh.f32 %v47_v54 }
  0x24   :  { %v260_v61 = vpop.eup %259  ;;  %166 = vst.msk [vmem:[%s810_s3 + $0xb8] sm:$0xff] %vm142_vm0, %v258_v59  ;;  %279 = vtanh.f32 %v48_v56 }
  0x25   :  { %v262_v63 = vpop.eup %261  ;;  %167 = vst.msk [vmem:[%s810_s3 + $0xc0] sm:$0xff] %vm142_vm0, %v260_v61  ;;  %281 = vtanh.f32 %v49_v58 }
  0x26   :  { %v264_v1 = vpop.eup %263  ;;  %168 = vst.msk [vmem:[%s810_s3 + $0xc8] sm:$0xff] %vm142_vm0, %v262_v63  ;;  %283 = vtanh.f32 %v50_v60 }
  0x27   :  { %v266_v3 = vpop.eup %265  ;;  %169 = vst.msk [vmem:[%s810_s3 + $0xd0] sm:$0xff] %vm142_vm0, %v264_v1  ;;  %285 = vtanh.f32 %v51_v62 }
  0x28   :  { %v268_v5 = vpop.eup %267  ;;  %170 = vst.msk [vmem:[%s810_s3 + $0xd8] sm:$0xff] %vm142_vm0, %v266_v3  ;;  %287 = vtanh.f32 %v52_v0 }
  0x29   :  { %v270_v7 = vpop.eup %269  ;;  %171 = vst.msk [vmem:[%s810_s3 + $0xe0] sm:$0xff] %vm142_vm0, %v268_v5  ;;  %289 = vtanh.f32 %v53_v2 }
  0x2a   :  { %v272_v9 = vpop.eup %271  ;;  %172 = vst.msk [vmem:[%s810_s3 + $0xe8] sm:$0xff] %vm142_vm0, %v270_v7  ;;  %291 = vtanh.f32 %v54_v4 }
  0x2b   :  { %v274_v11 = vpop.eup %273  ;;  %173 = vst.msk [vmem:[%s810_s3 + $0xf0] sm:$0xff] %vm142_vm0, %v272_v9  ;;  %293 = vtanh.f32 %v55_v6 }
  0x2c   :  { %v276_v13 = vpop.eup %275  ;;  %174 = vst.msk [vmem:[%s810_s3 + $0xf8] sm:$0xff] %vm142_vm0, %v274_v11  ;;  %295 = vtanh.f32 %v56_v8 }
  0x2d   :  { %v278_v15 = vpop.eup %277  ;;  %175 = vst.msk [vmem:[%s810_s3 + $0x100] sm:$0xff] %vm142_vm0, %v276_v13  ;;  %297 = vtanh.f32 %v57_v10 }
  0x2e   :  { %v280_v17 = vpop.eup %279  ;;  %176 = vst.msk [vmem:[%s810_s3 + $0x108] sm:$0xff] %vm142_vm0, %v278_v15  ;;  %299 = vtanh.f32 %v58_v12 }
  0x2f   :  { %v282_v19 = vpop.eup %281  ;;  %177 = vst.msk [vmem:[%s810_s3 + $0x110] sm:$0xff] %vm142_vm0, %v280_v17  ;;  %301 = vtanh.f32 %v59_v14 }
  0x30   :  { %v284_v21 = vpop.eup %283  ;;  %178 = vst.msk [vmem:[%s810_s3 + $0x118] sm:$0xff] %vm142_vm0, %v282_v19  ;;  %303 = vtanh.f32 %v60_v16 }
  0x31   :  { %v286_v23 = vpop.eup %285  ;;  %179 = vst.msk [vmem:[%s810_s3 + $0x120] sm:$0xff] %vm142_vm0, %v284_v21  ;;  %305 = vtanh.f32 %v61_v18 }
  0x32   :  { %v288_v25 = vpop.eup %287  ;;  %180 = vst.msk [vmem:[%s810_s3 + $0x128] sm:$0xff] %vm142_vm0, %v286_v23  ;;  %307 = vtanh.f32 %v62_v20 }
  0x33   :  { %v290_v27 = vpop.eup %289  ;;  %181 = vst.msk [vmem:[%s810_s3 + $0x130] sm:$0xff] %vm142_vm0, %v288_v25  ;;  %309 = vtanh.f32 %v63_v22 }
  0x34   :  { %v292_v29 = vpop.eup %291  ;;  %182 = vst.msk [vmem:[%s810_s3 + $0x138] sm:$0xff] %vm142_vm0, %v290_v27  ;;  %311 = vtanh.f32 %v64_v24 }
  0x35   :  { %v294_v31 = vpop.eup %293  ;;  %183 = vst.msk [vmem:[%s810_s3 + $0x140] sm:$0xff] %vm142_vm0, %v292_v29  ;;  %313 = vtanh.f32 %v65_v26 }
  0x36   :  { %v296_v33 = vpop.eup %295  ;;  %184 = vst.msk [vmem:[%s810_s3 + $0x148] sm:$0xff] %vm142_vm0, %v294_v31  ;;  %315 = vtanh.f32 %v66_v28 }
  0x37   :  { %v298_v35 = vpop.eup %297  ;;  %185 = vst.msk [vmem:[%s810_s3 + $0x150] sm:$0xff] %vm142_vm0, %v296_v33  ;;  %317 = vtanh.f32 %v67_v30 }
  0x38   :  { %v300_v37 = vpop.eup %299  ;;  %186 = vst.msk [vmem:[%s810_s3 + $0x158] sm:$0xff] %vm142_vm0, %v298_v35  ;;  %319 = vtanh.f32 %v68_v32 }
  0x39   :  { %v302_v39 = vpop.eup %301  ;;  %187 = vst.msk [vmem:[%s810_s3 + $0x160] sm:$0xff] %vm142_vm0, %v300_v37  ;;  %321 = vtanh.f32 %v69_v34 }
  0x3a   :  { %v304_v41 = vpop.eup %303  ;;  %188 = vst.msk [vmem:[%s810_s3 + $0x168] sm:$0xff] %vm142_vm0, %v302_v39  ;;  %323 = vtanh.f32 %v70_v36 }
  0x3b   :  { %v306_v43 = vpop.eup %305  ;;  %189 = vst.msk [vmem:[%s810_s3 + $0x170] sm:$0xff] %vm142_vm0, %v304_v41  ;;  %325 = vtanh.f32 %v71_v38 }
  0x3c   :  { %v308_v45 = vpop.eup %307  ;;  %190 = vst.msk [vmem:[%s810_s3 + $0x178] sm:$0xff] %vm142_vm0, %v306_v43  ;;  %327 = vtanh.f32 %v72_v40 }
  0x3d   :  { %v310_v47 = vpop.eup %309  ;;  %191 = vst.msk [vmem:[%s810_s3 + $0x180] sm:$0xff] %vm142_vm0, %v308_v45  ;;  %329 = vtanh.f32 %v73_v42 }
  0x3e   :  { %v312_v49 = vpop.eup %311  ;;  %192 = vst.msk [vmem:[%s810_s3 + $0x188] sm:$0xff] %vm142_vm0, %v310_v47  ;;  %331 = vtanh.f32 %v74_v44 }
  0x3f   :  { %v314_v51 = vpop.eup %313  ;;  %193 = vst.msk [vmem:[%s810_s3 + $0x190] sm:$0xff] %vm142_vm0, %v312_v49  ;;  %333 = vtanh.f32 %v75_v46 }
  0x40   :  { %v316_v52 = vpop.eup %315  ;;  %194 = vst.msk [vmem:[%s810_s3 + $0x198] sm:$0xff] %vm142_vm0, %v314_v51  ;;  %335 = vtanh.f32 %v76_v48 }
  0x41   :  { %v318_v53 = vpop.eup %317  ;;  %195 = vst.msk [vmem:[%s810_s3 + $0x1a0] sm:$0xff] %vm142_vm0, %v316_v52  ;;  %337 = vtanh.f32 %v77_v50 }
  0x42   :  { %v320_v54 = vpop.eup %319  ;;  %196 = vst.msk [vmem:[%s810_s3 + $0x1a8] sm:$0xff] %vm142_vm0, %v318_v53 }
  0x43   :  { %v322_v55 = vpop.eup %321  ;;  %197 = vst.msk [vmem:[%s810_s3 + $0x1b0] sm:$0xff] %vm142_vm0, %v320_v54 }
  0x44   :  { %v324_v56 = vpop.eup %323  ;;  %198 = vst.msk [vmem:[%s810_s3 + $0x1b8] sm:$0xff] %vm142_vm0, %v322_v55 }
  0x45   :  { %v326_v57 = vpop.eup %325  ;;  %199 = vst.msk [vmem:[%s810_s3 + $0x1c0] sm:$0xff] %vm142_vm0, %v324_v56 }
  0x46   :  { %v328_v58 = vpop.eup %327  ;;  %200 = vst.msk [vmem:[%s810_s3 + $0x1c8] sm:$0xff] %vm142_vm0, %v326_v57 }
  0x47   :  { %v330_v59 = vpop.eup %329  ;;  %201 = vst.msk [vmem:[%s810_s3 + $0x1d0] sm:$0xff] %vm142_vm0, %v328_v58 }
  0x48   :  { %v332_v60 = vpop.eup %331  ;;  %202 = vst.msk [vmem:[%s810_s3 + $0x1d8] sm:$0xff] %vm142_vm0, %v330_v59 }
  0x49   :  { %v334_v61 = vpop.eup %333  ;;  %203 = vst.msk [vmem:[%s810_s3 + $0x1e0] sm:$0xff] %vm142_vm0, %v332_v60 }
  0x4a   :  { %v336_v62 = vpop.eup %335  ;;  %204 = vst.msk [vmem:[%s810_s3 + $0x1e8] sm:$0xff] %vm142_vm0, %v334_v61 }
  0x4b   :  { %v338_v63 = vpop.eup %337  ;;  %205 = vst.msk [vmem:[%s810_s3 + $0x1f0] sm:$0xff] %vm142_vm0, %v336_v62 }
  0x4c   :  { %206 = vst.msk [vmem:[%s810_s3 + $0x1f8] sm:$0xff] %vm142_vm0, %v338_v63 }

</bundles_post_ra>
